<compile_context>
chip_gen: v6e
topology: v6e:2x2x1
jax: 0.10.0
libtpu: 0.0.40
codegen_flags: <defaults>
</compile_context>

<pallas_src>
import math

import jax
import jax.numpy as jnp
from jax.experimental import pallas as pl
from jax.experimental.pallas import tpu as pltpu

# ---------------------------- model configuration ---------------------------
N_LAYERS = 2
D_MODEL = 32
N_HEADS = 4
D_HEAD = D_MODEL // N_HEADS
D_FF = 64
EPS = 1e-6

_VMEM = pl.BlockSpec(memory_space=pltpu.MemorySpace.VMEM)


# ------------------------------ fused kernel --------------------------------
def _decoder_kernel(x_ref, mem_ref, tmask_ref, smask_ref,
                    ln_a_ref, ln_b_ref,
                    wsqkv_ref, bsqkv_ref, wso_ref, bso_ref,
                    wcq_ref, bcq_ref, wckv_ref, bckv_ref, wco_ref, bco_ref,
                    wf1_ref, bf1_ref, wf2_ref, bf2_ref,
                    na_ref, nb_ref, o_ref):
    f32 = jnp.float32
    x = x_ref[...].astype(f32)        # (B*St, D)  decoder input, flat rows
    mem = mem_ref[...].astype(f32)    # (B*Ss, D)  encoder memory, flat rows
    tmask = tmask_ref[...]            # (B, St, St) nonzero == attend
    smask = smask_ref[...]            # (B, St, Ss)

    def layer_norm(v, a, b):
        # matches torch: mean / unbiased std (N-1) / (std + eps) denominator
        mean = jnp.mean(v, axis=-1, keepdims=True)
        d = v - mean
        var = jnp.sum(d * d, axis=-1, keepdims=True) * (1.0 / (D_MODEL - 1))
        return a * d / (jnp.sqrt(var) + EPS) + b

    scale = 1.0 / math.sqrt(D_HEAD)

    def attention(q, k, v, mask):
        # q: (B*Sq, D), k/v: (B*Sk, D), mask: (B, Sq, Sk)
        B, Sq, Sk = mask.shape
        heads = []
        for h in range(N_HEADS):                       # static unroll, H = 4
            lo = h * D_HEAD
            qh = q[:, lo:lo + D_HEAD].reshape(B, Sq, D_HEAD)
            kh = k[:, lo:lo + D_HEAD].reshape(B, Sk, D_HEAD)
            vh = v[:, lo:lo + D_HEAD].reshape(B, Sk, D_HEAD)
            s = jnp.einsum('bqd,bkd->bqk', qh, kh,
                           preferred_element_type=f32) * scale
            s = jnp.where(mask == 0, f32(-1e9), s)
            s = s - jnp.max(s, axis=-1, keepdims=True)
            p = jnp.exp(s)
            p = p * pl.reciprocal(jnp.sum(p, axis=-1, keepdims=True),
                                  approx=True)
            oh = jnp.einsum('bqk,bkd->bqd', p, vh, preferred_element_type=f32)
            heads.append(oh.reshape(B * Sq, D_HEAD))
        return jnp.concatenate(heads, axis=-1)          # (B*Sq, D)

    for i in range(N_LAYERS):                           # static unroll, N = 2
        ln_a = ln_a_ref[i]                              # (3, D)
        ln_b = ln_b_ref[i]

        # ---- sublayer 0: masked self-attention (pre-norm residual) ----
        xn = layer_norm(x, ln_a[0:1], ln_b[0:1])
        qkv = jnp.dot(xn, wsqkv_ref[i], preferred_element_type=f32) + bsqkv_ref[i]
        attn = attention(qkv[:, 0:D_MODEL],
                         qkv[:, D_MODEL:2 * D_MODEL],
                         qkv[:, 2 * D_MODEL:3 * D_MODEL], tmask)
        x = x + jnp.dot(attn, wso_ref[i], preferred_element_type=f32) + bso_ref[i]

        # ---- sublayer 1: source (cross) attention ----
        xn = layer_norm(x, ln_a[1:2], ln_b[1:2])
        q = jnp.dot(xn, wcq_ref[i], preferred_element_type=f32) + bcq_ref[i]
        kv = jnp.dot(mem, wckv_ref[i], preferred_element_type=f32) + bckv_ref[i]
        attn = attention(q, kv[:, 0:D_MODEL], kv[:, D_MODEL:2 * D_MODEL], smask)
        x = x + jnp.dot(attn, wco_ref[i], preferred_element_type=f32) + bco_ref[i]

        # ---- sublayer 2: position-wise feed-forward ----
        xn = layer_norm(x, ln_a[2:3], ln_b[2:3])
        h1 = jnp.dot(xn, wf1_ref[i], preferred_element_type=f32) + bf1_ref[i]
        h1 = jnp.maximum(h1, 0.0)
        x = x + jnp.dot(h1, wf2_ref[i], preferred_element_type=f32) + bf2_ref[i]

    # ---- final LayerNorm ----
    o_ref[...] = layer_norm(x, na_ref[...], nb_ref[...]).astype(o_ref.dtype)


# -------------------------------- wrapper ------------------------------------
def decoder_forward(packed, x, memory, src_mask, tgt_mask):
    B, St, D = x.shape
    Ss = memory.shape[1]
    out = pl.pallas_call(
        _decoder_kernel,
        out_shape=jax.ShapeDtypeStruct((B * St, D), x.dtype),
        in_specs=[_VMEM] * (4 + len(packed)),
        out_specs=_VMEM,
    )(x.reshape(B * St, D),
      memory.reshape(B * Ss, D),
      tgt_mask.reshape(B, St, St),
      src_mask.reshape(B, St, Ss),
      *packed)
    return out.reshape(B, St, D)


# --------------------------- deterministic params ----------------------------
def _attn_params(key):
    ks = jax.random.split(key, 4)

    def wb(k):
        return (0.1 * jax.random.normal(k, (D_MODEL, D_MODEL), jnp.float32),
                jnp.zeros((D_MODEL,), jnp.float32))

    wq, bq = wb(ks[0]); wk, bk = wb(ks[1]); wv, bv = wb(ks[2]); wo, bo = wb(ks[3])
    return dict(wq=wq, bq=bq, wk=wk, bk=bk, wv=wv, bv=bv, wo=wo, bo=bo)


def make_params(key):
    """Parameters in the original torch nn.Linear layout (Dout, Din)."""
    layers = []
    for i in range(N_LAYERS):
        k = jax.random.fold_in(key, i)
        k_sa, k_ca, k_f1, k_f2 = jax.random.split(k, 4)
        layers.append(dict(
            self_attn=_attn_params(k_sa),
            src_attn=_attn_params(k_ca),
            ff_w1=0.1 * jax.random.normal(k_f1, (D_FF, D_MODEL), jnp.float32),
            ff_b1=jnp.zeros((D_FF,), jnp.float32),
            ff_w2=0.1 * jax.random.normal(k_f2, (D_MODEL, D_FF), jnp.float32),
            ff_b2=jnp.zeros((D_MODEL,), jnp.float32),
            ln0_a=jnp.ones((D_MODEL,), jnp.float32), ln0_b=jnp.zeros((D_MODEL,), jnp.float32),
            ln1_a=jnp.ones((D_MODEL,), jnp.float32), ln1_b=jnp.zeros((D_MODEL,), jnp.float32),
            ln2_a=jnp.ones((D_MODEL,), jnp.float32), ln2_b=jnp.zeros((D_MODEL,), jnp.float32),
        ))
    return dict(layers=layers,
                norm_a=jnp.ones((D_MODEL,), jnp.float32),
                norm_b=jnp.zeros((D_MODEL,), jnp.float32))


def pack_params(params):
    """Pre-transpose to (Din, Dout), fuse QKV / KV, stack over layers."""
    lps = params["layers"]

    def stack(fn):
        return jnp.stack([fn(lp) for lp in lps])

    ln_a = stack(lambda lp: jnp.stack([lp["ln0_a"], lp["ln1_a"], lp["ln2_a"]]))
    ln_b = stack(lambda lp: jnp.stack([lp["ln0_b"], lp["ln1_b"], lp["ln2_b"]]))

    wsqkv = stack(lambda lp: jnp.concatenate(
        [lp["self_attn"]["wq"].T, lp["self_attn"]["wk"].T, lp["self_attn"]["wv"].T], axis=1))
    bsqkv = stack(lambda lp: jnp.concatenate(
        [lp["self_attn"]["bq"], lp["self_attn"]["bk"], lp["self_attn"]["bv"]])[None, :])
    wso = stack(lambda lp: lp["self_attn"]["wo"].T)
    bso = stack(lambda lp: lp["self_attn"]["bo"][None, :])

    wcq = stack(lambda lp: lp["src_attn"]["wq"].T)
    bcq = stack(lambda lp: lp["src_attn"]["bq"][None, :])
    wckv = stack(lambda lp: jnp.concatenate(
        [lp["src_attn"]["wk"].T, lp["src_attn"]["wv"].T], axis=1))
    bckv = stack(lambda lp: jnp.concatenate(
        [lp["src_attn"]["bk"], lp["src_attn"]["bv"]])[None, :])
    wco = stack(lambda lp: lp["src_attn"]["wo"].T)
    bco = stack(lambda lp: lp["src_attn"]["bo"][None, :])

    wf1 = stack(lambda lp: lp["ff_w1"].T)
    bf1 = stack(lambda lp: lp["ff_b1"][None, :])
    wf2 = stack(lambda lp: lp["ff_w2"].T)
    bf2 = stack(lambda lp: lp["ff_b2"][None, :])

    na = params["norm_a"][None, :]
    nb = params["norm_b"][None, :]
    return (ln_a, ln_b, wsqkv, bsqkv, wso, bso, wcq, bcq, wckv, bckv,
            wco, bco, wf1, bf1, wf2, bf2, na, nb)


# ----------------------------------- main -------------------------------------
if __name__ == "__main__":
    B, S_TGT, S_SRC = 2, 8, 8
    key = jax.random.PRNGKey(0)
    k_p, k_x, k_m = jax.random.split(key, 3)

    params = make_params(k_p)
    packed = pack_params(params)

    x = jax.random.normal(k_x, (B, S_TGT, D_MODEL), jnp.float32)
    memory = jax.random.normal(k_m, (B, S_SRC, D_MODEL), jnp.float32)

    # causal target mask, full source mask (nonzero == attend)
    tgt_mask = jnp.tril(jnp.ones((S_TGT, S_TGT), jnp.float32))[None, None]
    tgt_mask = jnp.broadcast_to(tgt_mask, (B, 1, S_TGT, S_TGT))
    src_mask = jnp.ones((B, 1, S_TGT, S_SRC), jnp.float32)

    out = jax.jit(decoder_forward)(packed, x, memory, src_mask, tgt_mask)
    jax.block_until_ready(out)
    assert out.shape == (B, S_TGT, D_MODEL)
    # TODO(synk): `layer` is a generic argument in the PyTorch Decoder; the standard
    # Annotated-Transformer DecoderLayer (eval mode, dropout=identity) is assumed here.
    print("KERNEL_OK")
</pallas_src>

<mosaic_0001>
module attributes {stable_mosaic.version = 11 : i64} {
  func.func @_decoder_kernel(%arg0: memref<16x32xf32, #tpu.memory_space<vmem>>, %arg1: memref<16x32xf32, #tpu.memory_space<vmem>>, %arg2: memref<2x8x8xf32, #tpu.memory_space<vmem>>, %arg3: memref<2x8x8xf32, #tpu.memory_space<vmem>>, %arg4: memref<2x3x32xf32, #tpu.memory_space<vmem>>, %arg5: memref<2x3x32xf32, #tpu.memory_space<vmem>>, %arg6: memref<2x32x96xf32, #tpu.memory_space<vmem>>, %arg7: memref<2x1x96xf32, #tpu.memory_space<vmem>>, %arg8: memref<2x32x32xf32, #tpu.memory_space<vmem>>, %arg9: memref<2x1x32xf32, #tpu.memory_space<vmem>>, %arg10: memref<2x32x32xf32, #tpu.memory_space<vmem>>, %arg11: memref<2x1x32xf32, #tpu.memory_space<vmem>>, %arg12: memref<2x32x64xf32, #tpu.memory_space<vmem>>, %arg13: memref<2x1x64xf32, #tpu.memory_space<vmem>>, %arg14: memref<2x32x32xf32, #tpu.memory_space<vmem>>, %arg15: memref<2x1x32xf32, #tpu.memory_space<vmem>>, %arg16: memref<2x32x64xf32, #tpu.memory_space<vmem>>, %arg17: memref<2x1x64xf32, #tpu.memory_space<vmem>>, %arg18: memref<2x64x32xf32, #tpu.memory_space<vmem>>, %arg19: memref<2x1x32xf32, #tpu.memory_space<vmem>>, %arg20: memref<1x32xf32, #tpu.memory_space<vmem>>, %arg21: memref<1x32xf32, #tpu.memory_space<vmem>>, %arg22: memref<16x32xf32, #tpu.memory_space<vmem>>) attributes {dimension_semantics = [], scalar_prefetch = 0 : i64, scratch_operands = 0 : i64, tpu.core_type = #tpu.core_type<tc>} {
    %c0 = arith.constant 0 : index
    %c0_0 = arith.constant 0 : index
    %0 = vector.load %arg0[%c0, %c0_0] : memref<16x32xf32, #tpu.memory_space<vmem>>, vector<16x32xf32>
    %c0_1 = arith.constant 0 : index
    %c0_2 = arith.constant 0 : index
    %1 = vector.load %arg1[%c0_1, %c0_2] : memref<16x32xf32, #tpu.memory_space<vmem>>, vector<16x32xf32>
    %c0_3 = arith.constant 0 : index
    %c0_4 = arith.constant 0 : index
    %c0_5 = arith.constant 0 : index
    %2 = vector.load %arg2[%c0_3, %c0_4, %c0_5] : memref<2x8x8xf32, #tpu.memory_space<vmem>>, vector<2x8x8xf32>
    %c0_6 = arith.constant 0 : index
    %c0_7 = arith.constant 0 : index
    %c0_8 = arith.constant 0 : index
    %3 = vector.load %arg3[%c0_6, %c0_7, %c0_8] : memref<2x8x8xf32, #tpu.memory_space<vmem>>, vector<2x8x8xf32>
    %c0_9 = arith.constant 0 : index
    %c0_10 = arith.constant 0 : index
    %c0_11 = arith.constant 0 : index
    %4 = vector.load %arg4[%c0_9, %c0_10, %c0_11] : memref<2x3x32xf32, #tpu.memory_space<vmem>>, vector<1x3x32xf32>
    %5 = vector.shape_cast %4 : vector<1x3x32xf32> to vector<3x32xf32>
    %c0_12 = arith.constant 0 : index
    %c0_13 = arith.constant 0 : index
    %c0_14 = arith.constant 0 : index
    %6 = vector.load %arg5[%c0_12, %c0_13, %c0_14] : memref<2x3x32xf32, #tpu.memory_space<vmem>>, vector<1x3x32xf32>
    %7 = vector.shape_cast %6 : vector<1x3x32xf32> to vector<3x32xf32>
    %8 = vector.extract_strided_slice %5 {offsets = [0, 0], sizes = [1, 32], strides = [1, 1]} : vector<3x32xf32> to vector<1x32xf32>
    %9 = vector.extract_strided_slice %7 {offsets = [0, 0], sizes = [1, 32], strides = [1, 1]} : vector<3x32xf32> to vector<1x32xf32>
    %cst = arith.constant dense<0.000000e+00> : vector<16xf32>
    %10 = vector.multi_reduction <add>, %0, %cst [1] : vector<16x32xf32> to vector<16xf32>
    %11 = vector.shape_cast %10 : vector<16xf32> to vector<16x1xf32>
    %cst_15 = arith.constant 3.200000e+01 : f32
    %12 = vector.broadcast %cst_15 : f32 to vector<16x1xf32>
    %13 = arith.divf %11, %12 : vector<16x1xf32>
    %14 = vector.broadcast %13 : vector<16x1xf32> to vector<16x32xf32>
    %15 = arith.subf %0, %14 : vector<16x32xf32>
    %16 = arith.mulf %15, %15 : vector<16x32xf32>
    %cst_16 = arith.constant dense<0.000000e+00> : vector<16xf32>
    %17 = vector.multi_reduction <add>, %16, %cst_16 [1] : vector<16x32xf32> to vector<16xf32>
    %18 = vector.shape_cast %17 : vector<16xf32> to vector<16x1xf32>
    %cst_17 = arith.constant 0.0322580636 : f32
    %19 = vector.broadcast %cst_17 : f32 to vector<16x1xf32>
    %20 = arith.mulf %18, %19 : vector<16x1xf32>
    %21 = vector.broadcast %8 : vector<1x32xf32> to vector<16x32xf32>
    %22 = arith.mulf %21, %15 : vector<16x32xf32>
    %23 = math.sqrt %20 : vector<16x1xf32>
    %cst_18 = arith.constant 9.99999997E-7 : f32
    %24 = vector.broadcast %cst_18 : f32 to vector<16x1xf32>
    %25 = arith.addf %23, %24 : vector<16x1xf32>
    %26 = vector.broadcast %25 : vector<16x1xf32> to vector<16x32xf32>
    %27 = arith.divf %22, %26 : vector<16x32xf32>
    %28 = vector.broadcast %9 : vector<1x32xf32> to vector<16x32xf32>
    %29 = arith.addf %27, %28 : vector<16x32xf32>
    %c0_19 = arith.constant 0 : index
    %c0_20 = arith.constant 0 : index
    %c0_21 = arith.constant 0 : index
    %30 = vector.load %arg6[%c0_19, %c0_20, %c0_21] : memref<2x32x96xf32, #tpu.memory_space<vmem>>, vector<1x32x96xf32>
    %31 = vector.shape_cast %30 : vector<1x32x96xf32> to vector<32x96xf32>
    %cst_22 = arith.constant dense<0.000000e+00> : vector<16x96xf32>
    %32 = tpu.matmul %29, %31, %cst_22 {dimension_numbers = #tpu.dot_dimension_numbers<[1], [0], [0], [1], [0, 0, 1, 1], [], []>} : vector<16x32xf32>, vector<32x96xf32>, vector<16x96xf32> -> vector<16x96xf32>
    %c0_23 = arith.constant 0 : index
    %c0_24 = arith.constant 0 : index
    %c0_25 = arith.constant 0 : index
    %33 = vector.load %arg7[%c0_23, %c0_24, %c0_25] : memref<2x1x96xf32, #tpu.memory_space<vmem>>, vector<1x1x96xf32>
    %34 = vector.shape_cast %33 : vector<1x1x96xf32> to vector<1x96xf32>
    %35 = vector.broadcast %34 : vector<1x96xf32> to vector<16x96xf32>
    %36 = arith.addf %32, %35 : vector<16x96xf32>
    %37 = vector.extract_strided_slice %36 {offsets = [0, 0], sizes = [16, 32], strides = [1, 1]} : vector<16x96xf32> to vector<16x32xf32>
    %38 = vector.extract_strided_slice %36 {offsets = [0, 32], sizes = [16, 32], strides = [1, 1]} : vector<16x96xf32> to vector<16x32xf32>
    %39 = vector.extract_strided_slice %36 {offsets = [0, 64], sizes = [16, 32], strides = [1, 1]} : vector<16x96xf32> to vector<16x32xf32>
    %40 = vector.extract_strided_slice %37 {offsets = [0, 0], sizes = [16, 8], strides = [1, 1]} : vector<16x32xf32> to vector<16x8xf32>
    %41 = vector.shape_cast %40 : vector<16x8xf32> to vector<2x8x8xf32>
    %42 = vector.extract_strided_slice %38 {offsets = [0, 0], sizes = [16, 8], strides = [1, 1]} : vector<16x32xf32> to vector<16x8xf32>
    %43 = vector.shape_cast %42 : vector<16x8xf32> to vector<2x8x8xf32>
    %44 = vector.extract_strided_slice %39 {offsets = [0, 0], sizes = [16, 8], strides = [1, 1]} : vector<16x32xf32> to vector<16x8xf32>
    %45 = vector.shape_cast %44 : vector<16x8xf32> to vector<2x8x8xf32>
    "tpu.trace_start"() <{level = 10 : i32, message = "bqd,bkd->bqk"}> : () -> ()
    %cst_26 = arith.constant dense<0.000000e+00> : vector<2x8x8xf32>
    %46 = tpu.matmul %41, %43, %cst_26 {dimension_numbers = #tpu.dot_dimension_numbers<[2], [2], [1], [1], [0, 0, 0, 1, 1, 1], [0], [0]>} : vector<2x8x8xf32>, vector<2x8x8xf32>, vector<2x8x8xf32> -> vector<2x8x8xf32>
    "tpu.trace_stop"() : () -> ()
    %cst_27 = arith.constant 0.353553385 : f32
    %47 = vector.broadcast %cst_27 : f32 to vector<2x8x8xf32>
    %48 = arith.mulf %46, %47 : vector<2x8x8xf32>
    %cst_28 = arith.constant 0.000000e+00 : f32
    %49 = vector.broadcast %cst_28 : f32 to vector<2x8x8xf32>
    %50 = arith.cmpf oeq, %2, %49 : vector<2x8x8xf32>
    %cst_29 = arith.constant -1.000000e+09 : f32
    %51 = vector.broadcast %cst_29 : f32 to vector<2x8x8xf32>
    %52 = arith.select %50, %51, %48 : vector<2x8x8xi1>, vector<2x8x8xf32>
    %cst_30 = arith.constant dense<0xFF800000> : vector<2x8xf32>
    %53 = vector.multi_reduction <maximumf>, %52, %cst_30 [2] : vector<2x8x8xf32> to vector<2x8xf32>
    %54 = vector.shape_cast %53 : vector<2x8xf32> to vector<2x8x1xf32>
    %55 = vector.broadcast %54 : vector<2x8x1xf32> to vector<2x8x8xf32>
    %56 = arith.subf %52, %55 : vector<2x8x8xf32>
    %57 = math.exp %56 : vector<2x8x8xf32>
    %cst_31 = arith.constant dense<0.000000e+00> : vector<2x8xf32>
    %58 = vector.multi_reduction <add>, %57, %cst_31 [2] : vector<2x8x8xf32> to vector<2x8xf32>
    %59 = vector.shape_cast %58 : vector<2x8xf32> to vector<2x8x1xf32>
    %60 = tpu.reciprocal %59 {approx = true} : vector<2x8x1xf32> -> vector<2x8x1xf32>
    %61 = vector.broadcast %60 : vector<2x8x1xf32> to vector<2x8x8xf32>
    %62 = arith.mulf %57, %61 : vector<2x8x8xf32>
    "tpu.trace_start"() <{level = 10 : i32, message = "bqk,bkd->bqd"}> : () -> ()
    %cst_32 = arith.constant dense<0.000000e+00> : vector<2x8x8xf32>
    %63 = tpu.matmul %62, %45, %cst_32 {dimension_numbers = #tpu.dot_dimension_numbers<[2], [1], [1], [2], [0, 0, 0, 1, 1, 2], [0], [0]>} : vector<2x8x8xf32>, vector<2x8x8xf32>, vector<2x8x8xf32> -> vector<2x8x8xf32>
    "tpu.trace_stop"() : () -> ()
    %64 = vector.shape_cast %63 : vector<2x8x8xf32> to vector<16x8xf32>
    %65 = vector.extract_strided_slice %37 {offsets = [0, 8], sizes = [16, 8], strides = [1, 1]} : vector<16x32xf32> to vector<16x8xf32>
    %66 = vector.shape_cast %65 : vector<16x8xf32> to vector<2x8x8xf32>
    %67 = vector.extract_strided_slice %38 {offsets = [0, 8], sizes = [16, 8], strides = [1, 1]} : vector<16x32xf32> to vector<16x8xf32>
    %68 = vector.shape_cast %67 : vector<16x8xf32> to vector<2x8x8xf32>
    %69 = vector.extract_strided_slice %39 {offsets = [0, 8], sizes = [16, 8], strides = [1, 1]} : vector<16x32xf32> to vector<16x8xf32>
    %70 = vector.shape_cast %69 : vector<16x8xf32> to vector<2x8x8xf32>
    "tpu.trace_start"() <{level = 10 : i32, message = "bqd,bkd->bqk"}> : () -> ()
    %cst_33 = arith.constant dense<0.000000e+00> : vector<2x8x8xf32>
    %71 = tpu.matmul %66, %68, %cst_33 {dimension_numbers = #tpu.dot_dimension_numbers<[2], [2], [1], [1], [0, 0, 0, 1, 1, 1], [0], [0]>} : vector<2x8x8xf32>, vector<2x8x8xf32>, vector<2x8x8xf32> -> vector<2x8x8xf32>
    "tpu.trace_stop"() : () -> ()
    %cst_34 = arith.constant 0.353553385 : f32
    %72 = vector.broadcast %cst_34 : f32 to vector<2x8x8xf32>
    %73 = arith.mulf %71, %72 : vector<2x8x8xf32>
    %cst_35 = arith.constant 0.000000e+00 : f32
    %74 = vector.broadcast %cst_35 : f32 to vector<2x8x8xf32>
    %75 = arith.cmpf oeq, %2, %74 : vector<2x8x8xf32>
    %cst_36 = arith.constant -1.000000e+09 : f32
    %76 = vector.broadcast %cst_36 : f32 to vector<2x8x8xf32>
    %77 = arith.select %75, %76, %73 : vector<2x8x8xi1>, vector<2x8x8xf32>
    %cst_37 = arith.constant dense<0xFF800000> : vector<2x8xf32>
    %78 = vector.multi_reduction <maximumf>, %77, %cst_37 [2] : vector<2x8x8xf32> to vector<2x8xf32>
    %79 = vector.shape_cast %78 : vector<2x8xf32> to vector<2x8x1xf32>
    %80 = vector.broadcast %79 : vector<2x8x1xf32> to vector<2x8x8xf32>
    %81 = arith.subf %77, %80 : vector<2x8x8xf32>
    %82 = math.exp %81 : vector<2x8x8xf32>
    %cst_38 = arith.constant dense<0.000000e+00> : vector<2x8xf32>
    %83 = vector.multi_reduction <add>, %82, %cst_38 [2] : vector<2x8x8xf32> to vector<2x8xf32>
    %84 = vector.shape_cast %83 : vector<2x8xf32> to vector<2x8x1xf32>
    %85 = tpu.reciprocal %84 {approx = true} : vector<2x8x1xf32> -> vector<2x8x1xf32>
    %86 = vector.broadcast %85 : vector<2x8x1xf32> to vector<2x8x8xf32>
    %87 = arith.mulf %82, %86 : vector<2x8x8xf32>
    "tpu.trace_start"() <{level = 10 : i32, message = "bqk,bkd->bqd"}> : () -> ()
    %cst_39 = arith.constant dense<0.000000e+00> : vector<2x8x8xf32>
    %88 = tpu.matmul %87, %70, %cst_39 {dimension_numbers = #tpu.dot_dimension_numbers<[2], [1], [1], [2], [0, 0, 0, 1, 1, 2], [0], [0]>} : vector<2x8x8xf32>, vector<2x8x8xf32>, vector<2x8x8xf32> -> vector<2x8x8xf32>
    "tpu.trace_stop"() : () -> ()
    %89 = vector.shape_cast %88 : vector<2x8x8xf32> to vector<16x8xf32>
    %90 = vector.extract_strided_slice %37 {offsets = [0, 16], sizes = [16, 8], strides = [1, 1]} : vector<16x32xf32> to vector<16x8xf32>
    %91 = vector.shape_cast %90 : vector<16x8xf32> to vector<2x8x8xf32>
    %92 = vector.extract_strided_slice %38 {offsets = [0, 16], sizes = [16, 8], strides = [1, 1]} : vector<16x32xf32> to vector<16x8xf32>
    %93 = vector.shape_cast %92 : vector<16x8xf32> to vector<2x8x8xf32>
    %94 = vector.extract_strided_slice %39 {offsets = [0, 16], sizes = [16, 8], strides = [1, 1]} : vector<16x32xf32> to vector<16x8xf32>
    %95 = vector.shape_cast %94 : vector<16x8xf32> to vector<2x8x8xf32>
    "tpu.trace_start"() <{level = 10 : i32, message = "bqd,bkd->bqk"}> : () -> ()
    %cst_40 = arith.constant dense<0.000000e+00> : vector<2x8x8xf32>
    %96 = tpu.matmul %91, %93, %cst_40 {dimension_numbers = #tpu.dot_dimension_numbers<[2], [2], [1], [1], [0, 0, 0, 1, 1, 1], [0], [0]>} : vector<2x8x8xf32>, vector<2x8x8xf32>, vector<2x8x8xf32> -> vector<2x8x8xf32>
    "tpu.trace_stop"() : () -> ()
    %cst_41 = arith.constant 0.353553385 : f32
    %97 = vector.broadcast %cst_41 : f32 to vector<2x8x8xf32>
    %98 = arith.mulf %96, %97 : vector<2x8x8xf32>
    %cst_42 = arith.constant 0.000000e+00 : f32
    %99 = vector.broadcast %cst_42 : f32 to vector<2x8x8xf32>
    %100 = arith.cmpf oeq, %2, %99 : vector<2x8x8xf32>
    %cst_43 = arith.constant -1.000000e+09 : f32
    %101 = vector.broadcast %cst_43 : f32 to vector<2x8x8xf32>
    %102 = arith.select %100, %101, %98 : vector<2x8x8xi1>, vector<2x8x8xf32>
    %cst_44 = arith.constant dense<0xFF800000> : vector<2x8xf32>
    %103 = vector.multi_reduction <maximumf>, %102, %cst_44 [2] : vector<2x8x8xf32> to vector<2x8xf32>
    %104 = vector.shape_cast %103 : vector<2x8xf32> to vector<2x8x1xf32>
    %105 = vector.broadcast %104 : vector<2x8x1xf32> to vector<2x8x8xf32>
    %106 = arith.subf %102, %105 : vector<2x8x8xf32>
    %107 = math.exp %106 : vector<2x8x8xf32>
    %cst_45 = arith.constant dense<0.000000e+00> : vector<2x8xf32>
    %108 = vector.multi_reduction <add>, %107, %cst_45 [2] : vector<2x8x8xf32> to vector<2x8xf32>
    %109 = vector.shape_cast %108 : vector<2x8xf32> to vector<2x8x1xf32>
    %110 = tpu.reciprocal %109 {approx = true} : vector<2x8x1xf32> -> vector<2x8x1xf32>
    %111 = vector.broadcast %110 : vector<2x8x1xf32> to vector<2x8x8xf32>
    %112 = arith.mulf %107, %111 : vector<2x8x8xf32>
    "tpu.trace_start"() <{level = 10 : i32, message = "bqk,bkd->bqd"}> : () -> ()
    %cst_46 = arith.constant dense<0.000000e+00> : vector<2x8x8xf32>
    %113 = tpu.matmul %112, %95, %cst_46 {dimension_numbers = #tpu.dot_dimension_numbers<[2], [1], [1], [2], [0, 0, 0, 1, 1, 2], [0], [0]>} : vector<2x8x8xf32>, vector<2x8x8xf32>, vector<2x8x8xf32> -> vector<2x8x8xf32>
    "tpu.trace_stop"() : () -> ()
    %114 = vector.shape_cast %113 : vector<2x8x8xf32> to vector<16x8xf32>
    %115 = vector.extract_strided_slice %37 {offsets = [0, 24], sizes = [16, 8], strides = [1, 1]} : vector<16x32xf32> to vector<16x8xf32>
    %116 = vector.shape_cast %115 : vector<16x8xf32> to vector<2x8x8xf32>
    %117 = vector.extract_strided_slice %38 {offsets = [0, 24], sizes = [16, 8], strides = [1, 1]} : vector<16x32xf32> to vector<16x8xf32>
    %118 = vector.shape_cast %117 : vector<16x8xf32> to vector<2x8x8xf32>
    %119 = vector.extract_strided_slice %39 {offsets = [0, 24], sizes = [16, 8], strides = [1, 1]} : vector<16x32xf32> to vector<16x8xf32>
    %120 = vector.shape_cast %119 : vector<16x8xf32> to vector<2x8x8xf32>
    "tpu.trace_start"() <{level = 10 : i32, message = "bqd,bkd->bqk"}> : () -> ()
    %cst_47 = arith.constant dense<0.000000e+00> : vector<2x8x8xf32>
    %121 = tpu.matmul %116, %118, %cst_47 {dimension_numbers = #tpu.dot_dimension_numbers<[2], [2], [1], [1], [0, 0, 0, 1, 1, 1], [0], [0]>} : vector<2x8x8xf32>, vector<2x8x8xf32>, vector<2x8x8xf32> -> vector<2x8x8xf32>
    "tpu.trace_stop"() : () -> ()
    %cst_48 = arith.constant 0.353553385 : f32
    %122 = vector.broadcast %cst_48 : f32 to vector<2x8x8xf32>
    %123 = arith.mulf %121, %122 : vector<2x8x8xf32>
    %cst_49 = arith.constant 0.000000e+00 : f32
    %124 = vector.broadcast %cst_49 : f32 to vector<2x8x8xf32>
    %125 = arith.cmpf oeq, %2, %124 : vector<2x8x8xf32>
    %cst_50 = arith.constant -1.000000e+09 : f32
    %126 = vector.broadcast %cst_50 : f32 to vector<2x8x8xf32>
    %127 = arith.select %125, %126, %123 : vector<2x8x8xi1>, vector<2x8x8xf32>
    %cst_51 = arith.constant dense<0xFF800000> : vector<2x8xf32>
    %128 = vector.multi_reduction <maximumf>, %127, %cst_51 [2] : vector<2x8x8xf32> to vector<2x8xf32>
    %129 = vector.shape_cast %128 : vector<2x8xf32> to vector<2x8x1xf32>
    %130 = vector.broadcast %129 : vector<2x8x1xf32> to vector<2x8x8xf32>
    %131 = arith.subf %127, %130 : vector<2x8x8xf32>
    %132 = math.exp %131 : vector<2x8x8xf32>
    %cst_52 = arith.constant dense<0.000000e+00> : vector<2x8xf32>
    %133 = vector.multi_reduction <add>, %132, %cst_52 [2] : vector<2x8x8xf32> to vector<2x8xf32>
    %134 = vector.shape_cast %133 : vector<2x8xf32> to vector<2x8x1xf32>
    %135 = tpu.reciprocal %134 {approx = true} : vector<2x8x1xf32> -> vector<2x8x1xf32>
    %136 = vector.broadcast %135 : vector<2x8x1xf32> to vector<2x8x8xf32>
    %137 = arith.mulf %132, %136 : vector<2x8x8xf32>
    "tpu.trace_start"() <{level = 10 : i32, message = "bqk,bkd->bqd"}> : () -> ()
    %cst_53 = arith.constant dense<0.000000e+00> : vector<2x8x8xf32>
    %138 = tpu.matmul %137, %120, %cst_53 {dimension_numbers = #tpu.dot_dimension_numbers<[2], [1], [1], [2], [0, 0, 0, 1, 1, 2], [0], [0]>} : vector<2x8x8xf32>, vector<2x8x8xf32>, vector<2x8x8xf32> -> vector<2x8x8xf32>
    "tpu.trace_stop"() : () -> ()
    %139 = vector.shape_cast %138 : vector<2x8x8xf32> to vector<16x8xf32>
    %140 = tpu.concatenate %64, %89, %114, %139 in 1 : vector<16x8xf32>, vector<16x8xf32>, vector<16x8xf32>, vector<16x8xf32> -> vector<16x32xf32>
    %c0_54 = arith.constant 0 : index
    %c0_55 = arith.constant 0 : index
    %c0_56 = arith.constant 0 : index
    %141 = vector.load %arg8[%c0_54, %c0_55, %c0_56] : memref<2x32x32xf32, #tpu.memory_space<vmem>>, vector<1x32x32xf32>
    %142 = vector.shape_cast %141 : vector<1x32x32xf32> to vector<32x32xf32>
    %cst_57 = arith.constant dense<0.000000e+00> : vector<16x32xf32>
    %143 = tpu.matmul %140, %142, %cst_57 {dimension_numbers = #tpu.dot_dimension_numbers<[1], [0], [0], [1], [0, 0, 1, 1], [], []>} : vector<16x32xf32>, vector<32x32xf32>, vector<16x32xf32> -> vector<16x32xf32>
    %144 = arith.addf %0, %143 : vector<16x32xf32>
    %c0_58 = arith.constant 0 : index
    %c0_59 = arith.constant 0 : index
    %c0_60 = arith.constant 0 : index
    %145 = vector.load %arg9[%c0_58, %c0_59, %c0_60] : memref<2x1x32xf32, #tpu.memory_space<vmem>>, vector<1x1x32xf32>
    %146 = vector.shape_cast %145 : vector<1x1x32xf32> to vector<1x32xf32>
    %147 = vector.broadcast %146 : vector<1x32xf32> to vector<16x32xf32>
    %148 = arith.addf %144, %147 : vector<16x32xf32>
    %149 = vector.extract_strided_slice %5 {offsets = [1, 0], sizes = [1, 32], strides = [1, 1]} : vector<3x32xf32> to vector<1x32xf32>
    %150 = vector.extract_strided_slice %7 {offsets = [1, 0], sizes = [1, 32], strides = [1, 1]} : vector<3x32xf32> to vector<1x32xf32>
    %cst_61 = arith.constant dense<0.000000e+00> : vector<16xf32>
    %151 = vector.multi_reduction <add>, %148, %cst_61 [1] : vector<16x32xf32> to vector<16xf32>
    %152 = vector.shape_cast %151 : vector<16xf32> to vector<16x1xf32>
    %cst_62 = arith.constant 3.200000e+01 : f32
    %153 = vector.broadcast %cst_62 : f32 to vector<16x1xf32>
    %154 = arith.divf %152, %153 : vector<16x1xf32>
    %155 = vector.broadcast %154 : vector<16x1xf32> to vector<16x32xf32>
    %156 = arith.subf %148, %155 : vector<16x32xf32>
    %157 = arith.mulf %156, %156 : vector<16x32xf32>
    %cst_63 = arith.constant dense<0.000000e+00> : vector<16xf32>
    %158 = vector.multi_reduction <add>, %157, %cst_63 [1] : vector<16x32xf32> to vector<16xf32>
    %159 = vector.shape_cast %158 : vector<16xf32> to vector<16x1xf32>
    %cst_64 = arith.constant 0.0322580636 : f32
    %160 = vector.broadcast %cst_64 : f32 to vector<16x1xf32>
    %161 = arith.mulf %159, %160 : vector<16x1xf32>
    %162 = vector.broadcast %149 : vector<1x32xf32> to vector<16x32xf32>
    %163 = arith.mulf %162, %156 : vector<16x32xf32>
    %164 = math.sqrt %161 : vector<16x1xf32>
    %cst_65 = arith.constant 9.99999997E-7 : f32
    %165 = vector.broadcast %cst_65 : f32 to vector<16x1xf32>
    %166 = arith.addf %164, %165 : vector<16x1xf32>
    %167 = vector.broadcast %166 : vector<16x1xf32> to vector<16x32xf32>
    %168 = arith.divf %163, %167 : vector<16x32xf32>
    %169 = vector.broadcast %150 : vector<1x32xf32> to vector<16x32xf32>
    %170 = arith.addf %168, %169 : vector<16x32xf32>
    %c0_66 = arith.constant 0 : index
    %c0_67 = arith.constant 0 : index
    %c0_68 = arith.constant 0 : index
    %171 = vector.load %arg10[%c0_66, %c0_67, %c0_68] : memref<2x32x32xf32, #tpu.memory_space<vmem>>, vector<1x32x32xf32>
    %172 = vector.shape_cast %171 : vector<1x32x32xf32> to vector<32x32xf32>
    %cst_69 = arith.constant dense<0.000000e+00> : vector<16x32xf32>
    %173 = tpu.matmul %170, %172, %cst_69 {dimension_numbers = #tpu.dot_dimension_numbers<[1], [0], [0], [1], [0, 0, 1, 1], [], []>} : vector<16x32xf32>, vector<32x32xf32>, vector<16x32xf32> -> vector<16x32xf32>
    %c0_70 = arith.constant 0 : index
    %c0_71 = arith.constant 0 : index
    %c0_72 = arith.constant 0 : index
    %174 = vector.load %arg11[%c0_70, %c0_71, %c0_72] : memref<2x1x32xf32, #tpu.memory_space<vmem>>, vector<1x1x32xf32>
    %175 = vector.shape_cast %174 : vector<1x1x32xf32> to vector<1x32xf32>
    %176 = vector.broadcast %175 : vector<1x32xf32> to vector<16x32xf32>
    %177 = arith.addf %173, %176 : vector<16x32xf32>
    %c0_73 = arith.constant 0 : index
    %c0_74 = arith.constant 0 : index
    %c0_75 = arith.constant 0 : index
    %178 = vector.load %arg12[%c0_73, %c0_74, %c0_75] : memref<2x32x64xf32, #tpu.memory_space<vmem>>, vector<1x32x64xf32>
    %179 = vector.shape_cast %178 : vector<1x32x64xf32> to vector<32x64xf32>
    %cst_76 = arith.constant dense<0.000000e+00> : vector<16x64xf32>
    %180 = tpu.matmul %1, %179, %cst_76 {dimension_numbers = #tpu.dot_dimension_numbers<[1], [0], [0], [1], [0, 0, 1, 1], [], []>} : vector<16x32xf32>, vector<32x64xf32>, vector<16x64xf32> -> vector<16x64xf32>
    %c0_77 = arith.constant 0 : index
    %c0_78 = arith.constant 0 : index
    %c0_79 = arith.constant 0 : index
    %181 = vector.load %arg13[%c0_77, %c0_78, %c0_79] : memref<2x1x64xf32, #tpu.memory_space<vmem>>, vector<1x1x64xf32>
    %182 = vector.shape_cast %181 : vector<1x1x64xf32> to vector<1x64xf32>
    %183 = vector.broadcast %182 : vector<1x64xf32> to vector<16x64xf32>
    %184 = arith.addf %180, %183 : vector<16x64xf32>
    %185 = vector.extract_strided_slice %184 {offsets = [0, 0], sizes = [16, 32], strides = [1, 1]} : vector<16x64xf32> to vector<16x32xf32>
    %186 = vector.extract_strided_slice %184 {offsets = [0, 32], sizes = [16, 32], strides = [1, 1]} : vector<16x64xf32> to vector<16x32xf32>
    %187 = vector.extract_strided_slice %177 {offsets = [0, 0], sizes = [16, 8], strides = [1, 1]} : vector<16x32xf32> to vector<16x8xf32>
    %188 = vector.shape_cast %187 : vector<16x8xf32> to vector<2x8x8xf32>
    %189 = vector.extract_strided_slice %185 {offsets = [0, 0], sizes = [16, 8], strides = [1, 1]} : vector<16x32xf32> to vector<16x8xf32>
    %190 = vector.shape_cast %189 : vector<16x8xf32> to vector<2x8x8xf32>
    %191 = vector.extract_strided_slice %186 {offsets = [0, 0], sizes = [16, 8], strides = [1, 1]} : vector<16x32xf32> to vector<16x8xf32>
    %192 = vector.shape_cast %191 : vector<16x8xf32> to vector<2x8x8xf32>
    "tpu.trace_start"() <{level = 10 : i32, message = "bqd,bkd->bqk"}> : () -> ()
    %cst_80 = arith.constant dense<0.000000e+00> : vector<2x8x8xf32>
    %193 = tpu.matmul %188, %190, %cst_80 {dimension_numbers = #tpu.dot_dimension_numbers<[2], [2], [1], [1], [0, 0, 0, 1, 1, 1], [0], [0]>} : vector<2x8x8xf32>, vector<2x8x8xf32>, vector<2x8x8xf32> -> vector<2x8x8xf32>
    "tpu.trace_stop"() : () -> ()
    %cst_81 = arith.constant 0.353553385 : f32
    %194 = vector.broadcast %cst_81 : f32 to vector<2x8x8xf32>
    %195 = arith.mulf %193, %194 : vector<2x8x8xf32>
    %cst_82 = arith.constant 0.000000e+00 : f32
    %196 = vector.broadcast %cst_82 : f32 to vector<2x8x8xf32>
    %197 = arith.cmpf oeq, %3, %196 : vector<2x8x8xf32>
    %cst_83 = arith.constant -1.000000e+09 : f32
    %198 = vector.broadcast %cst_83 : f32 to vector<2x8x8xf32>
    %199 = arith.select %197, %198, %195 : vector<2x8x8xi1>, vector<2x8x8xf32>
    %cst_84 = arith.constant dense<0xFF800000> : vector<2x8xf32>
    %200 = vector.multi_reduction <maximumf>, %199, %cst_84 [2] : vector<2x8x8xf32> to vector<2x8xf32>
    %201 = vector.shape_cast %200 : vector<2x8xf32> to vector<2x8x1xf32>
    %202 = vector.broadcast %201 : vector<2x8x1xf32> to vector<2x8x8xf32>
    %203 = arith.subf %199, %202 : vector<2x8x8xf32>
    %204 = math.exp %203 : vector<2x8x8xf32>
    %cst_85 = arith.constant dense<0.000000e+00> : vector<2x8xf32>
    %205 = vector.multi_reduction <add>, %204, %cst_85 [2] : vector<2x8x8xf32> to vector<2x8xf32>
    %206 = vector.shape_cast %205 : vector<2x8xf32> to vector<2x8x1xf32>
    %207 = tpu.reciprocal %206 {approx = true} : vector<2x8x1xf32> -> vector<2x8x1xf32>
    %208 = vector.broadcast %207 : vector<2x8x1xf32> to vector<2x8x8xf32>
    %209 = arith.mulf %204, %208 : vector<2x8x8xf32>
    "tpu.trace_start"() <{level = 10 : i32, message = "bqk,bkd->bqd"}> : () -> ()
    %cst_86 = arith.constant dense<0.000000e+00> : vector<2x8x8xf32>
    %210 = tpu.matmul %209, %192, %cst_86 {dimension_numbers = #tpu.dot_dimension_numbers<[2], [1], [1], [2], [0, 0, 0, 1, 1, 2], [0], [0]>} : vector<2x8x8xf32>, vector<2x8x8xf32>, vector<2x8x8xf32> -> vector<2x8x8xf32>
    "tpu.trace_stop"() : () -> ()
    %211 = vector.shape_cast %210 : vector<2x8x8xf32> to vector<16x8xf32>
    %212 = vector.extract_strided_slice %177 {offsets = [0, 8], sizes = [16, 8], strides = [1, 1]} : vector<16x32xf32> to vector<16x8xf32>
    %213 = vector.shape_cast %212 : vector<16x8xf32> to vector<2x8x8xf32>
    %214 = vector.extract_strided_slice %185 {offsets = [0, 8], sizes = [16, 8], strides = [1, 1]} : vector<16x32xf32> to vector<16x8xf32>
    %215 = vector.shape_cast %214 : vector<16x8xf32> to vector<2x8x8xf32>
    %216 = vector.extract_strided_slice %186 {offsets = [0, 8], sizes = [16, 8], strides = [1, 1]} : vector<16x32xf32> to vector<16x8xf32>
    %217 = vector.shape_cast %216 : vector<16x8xf32> to vector<2x8x8xf32>
    "tpu.trace_start"() <{level = 10 : i32, message = "bqd,bkd->bqk"}> : () -> ()
    %cst_87 = arith.constant dense<0.000000e+00> : vector<2x8x8xf32>
    %218 = tpu.matmul %213, %215, %cst_87 {dimension_numbers = #tpu.dot_dimension_numbers<[2], [2], [1], [1], [0, 0, 0, 1, 1, 1], [0], [0]>} : vector<2x8x8xf32>, vector<2x8x8xf32>, vector<2x8x8xf32> -> vector<2x8x8xf32>
    "tpu.trace_stop"() : () -> ()
    %cst_88 = arith.constant 0.353553385 : f32
    %219 = vector.broadcast %cst_88 : f32 to vector<2x8x8xf32>
    %220 = arith.mulf %218, %219 : vector<2x8x8xf32>
    %cst_89 = arith.constant 0.000000e+00 : f32
    %221 = vector.broadcast %cst_89 : f32 to vector<2x8x8xf32>
    %222 = arith.cmpf oeq, %3, %221 : vector<2x8x8xf32>
    %cst_90 = arith.constant -1.000000e+09 : f32
    %223 = vector.broadcast %cst_90 : f32 to vector<2x8x8xf32>
    %224 = arith.select %222, %223, %220 : vector<2x8x8xi1>, vector<2x8x8xf32>
    %cst_91 = arith.constant dense<0xFF800000> : vector<2x8xf32>
    %225 = vector.multi_reduction <maximumf>, %224, %cst_91 [2] : vector<2x8x8xf32> to vector<2x8xf32>
    %226 = vector.shape_cast %225 : vector<2x8xf32> to vector<2x8x1xf32>
    %227 = vector.broadcast %226 : vector<2x8x1xf32> to vector<2x8x8xf32>
    %228 = arith.subf %224, %227 : vector<2x8x8xf32>
    %229 = math.exp %228 : vector<2x8x8xf32>
    %cst_92 = arith.constant dense<0.000000e+00> : vector<2x8xf32>
    %230 = vector.multi_reduction <add>, %229, %cst_92 [2] : vector<2x8x8xf32> to vector<2x8xf32>
    %231 = vector.shape_cast %230 : vector<2x8xf32> to vector<2x8x1xf32>
    %232 = tpu.reciprocal %231 {approx = true} : vector<2x8x1xf32> -> vector<2x8x1xf32>
    %233 = vector.broadcast %232 : vector<2x8x1xf32> to vector<2x8x8xf32>
    %234 = arith.mulf %229, %233 : vector<2x8x8xf32>
    "tpu.trace_start"() <{level = 10 : i32, message = "bqk,bkd->bqd"}> : () -> ()
    %cst_93 = arith.constant dense<0.000000e+00> : vector<2x8x8xf32>
    %235 = tpu.matmul %234, %217, %cst_93 {dimension_numbers = #tpu.dot_dimension_numbers<[2], [1], [1], [2], [0, 0, 0, 1, 1, 2], [0], [0]>} : vector<2x8x8xf32>, vector<2x8x8xf32>, vector<2x8x8xf32> -> vector<2x8x8xf32>
    "tpu.trace_stop"() : () -> ()
    %236 = vector.shape_cast %235 : vector<2x8x8xf32> to vector<16x8xf32>
    %237 = vector.extract_strided_slice %177 {offsets = [0, 16], sizes = [16, 8], strides = [1, 1]} : vector<16x32xf32> to vector<16x8xf32>
    %238 = vector.shape_cast %237 : vector<16x8xf32> to vector<2x8x8xf32>
    %239 = vector.extract_strided_slice %185 {offsets = [0, 16], sizes = [16, 8], strides = [1, 1]} : vector<16x32xf32> to vector<16x8xf32>
    %240 = vector.shape_cast %239 : vector<16x8xf32> to vector<2x8x8xf32>
    %241 = vector.extract_strided_slice %186 {offsets = [0, 16], sizes = [16, 8], strides = [1, 1]} : vector<16x32xf32> to vector<16x8xf32>
    %242 = vector.shape_cast %241 : vector<16x8xf32> to vector<2x8x8xf32>
    "tpu.trace_start"() <{level = 10 : i32, message = "bqd,bkd->bqk"}> : () -> ()
    %cst_94 = arith.constant dense<0.000000e+00> : vector<2x8x8xf32>
    %243 = tpu.matmul %238, %240, %cst_94 {dimension_numbers = #tpu.dot_dimension_numbers<[2], [2], [1], [1], [0, 0, 0, 1, 1, 1], [0], [0]>} : vector<2x8x8xf32>, vector<2x8x8xf32>, vector<2x8x8xf32> -> vector<2x8x8xf32>
    "tpu.trace_stop"() : () -> ()
    %cst_95 = arith.constant 0.353553385 : f32
    %244 = vector.broadcast %cst_95 : f32 to vector<2x8x8xf32>
    %245 = arith.mulf %243, %244 : vector<2x8x8xf32>
    %cst_96 = arith.constant 0.000000e+00 : f32
    %246 = vector.broadcast %cst_96 : f32 to vector<2x8x8xf32>
    %247 = arith.cmpf oeq, %3, %246 : vector<2x8x8xf32>
    %cst_97 = arith.constant -1.000000e+09 : f32
    %248 = vector.broadcast %cst_97 : f32 to vector<2x8x8xf32>
    %249 = arith.select %247, %248, %245 : vector<2x8x8xi1>, vector<2x8x8xf32>
    %cst_98 = arith.constant dense<0xFF800000> : vector<2x8xf32>
    %250 = vector.multi_reduction <maximumf>, %249, %cst_98 [2] : vector<2x8x8xf32> to vector<2x8xf32>
    %251 = vector.shape_cast %250 : vector<2x8xf32> to vector<2x8x1xf32>
    %252 = vector.broadcast %251 : vector<2x8x1xf32> to vector<2x8x8xf32>
    %253 = arith.subf %249, %252 : vector<2x8x8xf32>
    %254 = math.exp %253 : vector<2x8x8xf32>
    %cst_99 = arith.constant dense<0.000000e+00> : vector<2x8xf32>
    %255 = vector.multi_reduction <add>, %254, %cst_99 [2] : vector<2x8x8xf32> to vector<2x8xf32>
    %256 = vector.shape_cast %255 : vector<2x8xf32> to vector<2x8x1xf32>
    %257 = tpu.reciprocal %256 {approx = true} : vector<2x8x1xf32> -> vector<2x8x1xf32>
    %258 = vector.broadcast %257 : vector<2x8x1xf32> to vector<2x8x8xf32>
    %259 = arith.mulf %254, %258 : vector<2x8x8xf32>
    "tpu.trace_start"() <{level = 10 : i32, message = "bqk,bkd->bqd"}> : () -> ()
    %cst_100 = arith.constant dense<0.000000e+00> : vector<2x8x8xf32>
    %260 = tpu.matmul %259, %242, %cst_100 {dimension_numbers = #tpu.dot_dimension_numbers<[2], [1], [1], [2], [0, 0, 0, 1, 1, 2], [0], [0]>} : vector<2x8x8xf32>, vector<2x8x8xf32>, vector<2x8x8xf32> -> vector<2x8x8xf32>
    "tpu.trace_stop"() : () -> ()
    %261 = vector.shape_cast %260 : vector<2x8x8xf32> to vector<16x8xf32>
    %262 = vector.extract_strided_slice %177 {offsets = [0, 24], sizes = [16, 8], strides = [1, 1]} : vector<16x32xf32> to vector<16x8xf32>
    %263 = vector.shape_cast %262 : vector<16x8xf32> to vector<2x8x8xf32>
    %264 = vector.extract_strided_slice %185 {offsets = [0, 24], sizes = [16, 8], strides = [1, 1]} : vector<16x32xf32> to vector<16x8xf32>
    %265 = vector.shape_cast %264 : vector<16x8xf32> to vector<2x8x8xf32>
    %266 = vector.extract_strided_slice %186 {offsets = [0, 24], sizes = [16, 8], strides = [1, 1]} : vector<16x32xf32> to vector<16x8xf32>
    %267 = vector.shape_cast %266 : vector<16x8xf32> to vector<2x8x8xf32>
    "tpu.trace_start"() <{level = 10 : i32, message = "bqd,bkd->bqk"}> : () -> ()
    %cst_101 = arith.constant dense<0.000000e+00> : vector<2x8x8xf32>
    %268 = tpu.matmul %263, %265, %cst_101 {dimension_numbers = #tpu.dot_dimension_numbers<[2], [2], [1], [1], [0, 0, 0, 1, 1, 1], [0], [0]>} : vector<2x8x8xf32>, vector<2x8x8xf32>, vector<2x8x8xf32> -> vector<2x8x8xf32>
    "tpu.trace_stop"() : () -> ()
    %cst_102 = arith.constant 0.353553385 : f32
    %269 = vector.broadcast %cst_102 : f32 to vector<2x8x8xf32>
    %270 = arith.mulf %268, %269 : vector<2x8x8xf32>
    %cst_103 = arith.constant 0.000000e+00 : f32
    %271 = vector.broadcast %cst_103 : f32 to vector<2x8x8xf32>
    %272 = arith.cmpf oeq, %3, %271 : vector<2x8x8xf32>
    %cst_104 = arith.constant -1.000000e+09 : f32
    %273 = vector.broadcast %cst_104 : f32 to vector<2x8x8xf32>
    %274 = arith.select %272, %273, %270 : vector<2x8x8xi1>, vector<2x8x8xf32>
    %cst_105 = arith.constant dense<0xFF800000> : vector<2x8xf32>
    %275 = vector.multi_reduction <maximumf>, %274, %cst_105 [2] : vector<2x8x8xf32> to vector<2x8xf32>
    %276 = vector.shape_cast %275 : vector<2x8xf32> to vector<2x8x1xf32>
    %277 = vector.broadcast %276 : vector<2x8x1xf32> to vector<2x8x8xf32>
    %278 = arith.subf %274, %277 : vector<2x8x8xf32>
    %279 = math.exp %278 : vector<2x8x8xf32>
    %cst_106 = arith.constant dense<0.000000e+00> : vector<2x8xf32>
    %280 = vector.multi_reduction <add>, %279, %cst_106 [2] : vector<2x8x8xf32> to vector<2x8xf32>
    %281 = vector.shape_cast %280 : vector<2x8xf32> to vector<2x8x1xf32>
    %282 = tpu.reciprocal %281 {approx = true} : vector<2x8x1xf32> -> vector<2x8x1xf32>
    %283 = vector.broadcast %282 : vector<2x8x1xf32> to vector<2x8x8xf32>
    %284 = arith.mulf %279, %283 : vector<2x8x8xf32>
    "tpu.trace_start"() <{level = 10 : i32, message = "bqk,bkd->bqd"}> : () -> ()
    %cst_107 = arith.constant dense<0.000000e+00> : vector<2x8x8xf32>
    %285 = tpu.matmul %284, %267, %cst_107 {dimension_numbers = #tpu.dot_dimension_numbers<[2], [1], [1], [2], [0, 0, 0, 1, 1, 2], [0], [0]>} : vector<2x8x8xf32>, vector<2x8x8xf32>, vector<2x8x8xf32> -> vector<2x8x8xf32>
    "tpu.trace_stop"() : () -> ()
    %286 = vector.shape_cast %285 : vector<2x8x8xf32> to vector<16x8xf32>
    %287 = tpu.concatenate %211, %236, %261, %286 in 1 : vector<16x8xf32>, vector<16x8xf32>, vector<16x8xf32>, vector<16x8xf32> -> vector<16x32xf32>
    %c0_108 = arith.constant 0 : index
    %c0_109 = arith.constant 0 : index
    %c0_110 = arith.constant 0 : index
    %288 = vector.load %arg14[%c0_108, %c0_109, %c0_110] : memref<2x32x32xf32, #tpu.memory_space<vmem>>, vector<1x32x32xf32>
    %289 = vector.shape_cast %288 : vector<1x32x32xf32> to vector<32x32xf32>
    %cst_111 = arith.constant dense<0.000000e+00> : vector<16x32xf32>
    %290 = tpu.matmul %287, %289, %cst_111 {dimension_numbers = #tpu.dot_dimension_numbers<[1], [0], [0], [1], [0, 0, 1, 1], [], []>} : vector<16x32xf32>, vector<32x32xf32>, vector<16x32xf32> -> vector<16x32xf32>
    %291 = arith.addf %148, %290 : vector<16x32xf32>
    %c0_112 = arith.constant 0 : index
    %c0_113 = arith.constant 0 : index
    %c0_114 = arith.constant 0 : index
    %292 = vector.load %arg15[%c0_112, %c0_113, %c0_114] : memref<2x1x32xf32, #tpu.memory_space<vmem>>, vector<1x1x32xf32>
    %293 = vector.shape_cast %292 : vector<1x1x32xf32> to vector<1x32xf32>
    %294 = vector.broadcast %293 : vector<1x32xf32> to vector<16x32xf32>
    %295 = arith.addf %291, %294 : vector<16x32xf32>
    %296 = vector.extract_strided_slice %5 {offsets = [2, 0], sizes = [1, 32], strides = [1, 1]} : vector<3x32xf32> to vector<1x32xf32>
    %297 = vector.extract_strided_slice %7 {offsets = [2, 0], sizes = [1, 32], strides = [1, 1]} : vector<3x32xf32> to vector<1x32xf32>
    %cst_115 = arith.constant dense<0.000000e+00> : vector<16xf32>
    %298 = vector.multi_reduction <add>, %295, %cst_115 [1] : vector<16x32xf32> to vector<16xf32>
    %299 = vector.shape_cast %298 : vector<16xf32> to vector<16x1xf32>
    %cst_116 = arith.constant 3.200000e+01 : f32
    %300 = vector.broadcast %cst_116 : f32 to vector<16x1xf32>
    %301 = arith.divf %299, %300 : vector<16x1xf32>
    %302 = vector.broadcast %301 : vector<16x1xf32> to vector<16x32xf32>
    %303 = arith.subf %295, %302 : vector<16x32xf32>
    %304 = arith.mulf %303, %303 : vector<16x32xf32>
    %cst_117 = arith.constant dense<0.000000e+00> : vector<16xf32>
    %305 = vector.multi_reduction <add>, %304, %cst_117 [1] : vector<16x32xf32> to vector<16xf32>
    %306 = vector.shape_cast %305 : vector<16xf32> to vector<16x1xf32>
    %cst_118 = arith.constant 0.0322580636 : f32
    %307 = vector.broadcast %cst_118 : f32 to vector<16x1xf32>
    %308 = arith.mulf %306, %307 : vector<16x1xf32>
    %309 = vector.broadcast %296 : vector<1x32xf32> to vector<16x32xf32>
    %310 = arith.mulf %309, %303 : vector<16x32xf32>
    %311 = math.sqrt %308 : vector<16x1xf32>
    %cst_119 = arith.constant 9.99999997E-7 : f32
    %312 = vector.broadcast %cst_119 : f32 to vector<16x1xf32>
    %313 = arith.addf %311, %312 : vector<16x1xf32>
    %314 = vector.broadcast %313 : vector<16x1xf32> to vector<16x32xf32>
    %315 = arith.divf %310, %314 : vector<16x32xf32>
    %316 = vector.broadcast %297 : vector<1x32xf32> to vector<16x32xf32>
    %317 = arith.addf %315, %316 : vector<16x32xf32>
    %c0_120 = arith.constant 0 : index
    %c0_121 = arith.constant 0 : index
    %c0_122 = arith.constant 0 : index
    %318 = vector.load %arg16[%c0_120, %c0_121, %c0_122] : memref<2x32x64xf32, #tpu.memory_space<vmem>>, vector<1x32x64xf32>
    %319 = vector.shape_cast %318 : vector<1x32x64xf32> to vector<32x64xf32>
    %cst_123 = arith.constant dense<0.000000e+00> : vector<16x64xf32>
    %320 = tpu.matmul %317, %319, %cst_123 {dimension_numbers = #tpu.dot_dimension_numbers<[1], [0], [0], [1], [0, 0, 1, 1], [], []>} : vector<16x32xf32>, vector<32x64xf32>, vector<16x64xf32> -> vector<16x64xf32>
    %c0_124 = arith.constant 0 : index
    %c0_125 = arith.constant 0 : index
    %c0_126 = arith.constant 0 : index
    %321 = vector.load %arg17[%c0_124, %c0_125, %c0_126] : memref<2x1x64xf32, #tpu.memory_space<vmem>>, vector<1x1x64xf32>
    %322 = vector.shape_cast %321 : vector<1x1x64xf32> to vector<1x64xf32>
    %323 = vector.broadcast %322 : vector<1x64xf32> to vector<16x64xf32>
    %324 = arith.addf %320, %323 : vector<16x64xf32>
    %cst_127 = arith.constant 0.000000e+00 : f32
    %325 = vector.broadcast %cst_127 : f32 to vector<16x64xf32>
    %326 = arith.maximumf %324, %325 : vector<16x64xf32>
    %c0_128 = arith.constant 0 : index
    %c0_129 = arith.constant 0 : index
    %c0_130 = arith.constant 0 : index
    %327 = vector.load %arg18[%c0_128, %c0_129, %c0_130] : memref<2x64x32xf32, #tpu.memory_space<vmem>>, vector<1x64x32xf32>
    %328 = vector.shape_cast %327 : vector<1x64x32xf32> to vector<64x32xf32>
    %cst_131 = arith.constant dense<0.000000e+00> : vector<16x32xf32>
    %329 = tpu.matmul %326, %328, %cst_131 {dimension_numbers = #tpu.dot_dimension_numbers<[1], [0], [0], [1], [0, 0, 1, 1], [], []>} : vector<16x64xf32>, vector<64x32xf32>, vector<16x32xf32> -> vector<16x32xf32>
    %330 = arith.addf %295, %329 : vector<16x32xf32>
    %c0_132 = arith.constant 0 : index
    %c0_133 = arith.constant 0 : index
    %c0_134 = arith.constant 0 : index
    %331 = vector.load %arg19[%c0_132, %c0_133, %c0_134] : memref<2x1x32xf32, #tpu.memory_space<vmem>>, vector<1x1x32xf32>
    %332 = vector.shape_cast %331 : vector<1x1x32xf32> to vector<1x32xf32>
    %333 = vector.broadcast %332 : vector<1x32xf32> to vector<16x32xf32>
    %334 = arith.addf %330, %333 : vector<16x32xf32>
    %c1 = arith.constant 1 : index
    %c0_135 = arith.constant 0 : index
    %c0_136 = arith.constant 0 : index
    %335 = vector.load %arg4[%c1, %c0_135, %c0_136] : memref<2x3x32xf32, #tpu.memory_space<vmem>>, vector<1x3x32xf32>
    %336 = vector.shape_cast %335 : vector<1x3x32xf32> to vector<3x32xf32>
    %c1_137 = arith.constant 1 : index
    %c0_138 = arith.constant 0 : index
    %c0_139 = arith.constant 0 : index
    %337 = vector.load %arg5[%c1_137, %c0_138, %c0_139] : memref<2x3x32xf32, #tpu.memory_space<vmem>>, vector<1x3x32xf32>
    %338 = vector.shape_cast %337 : vector<1x3x32xf32> to vector<3x32xf32>
    %339 = vector.extract_strided_slice %336 {offsets = [0, 0], sizes = [1, 32], strides = [1, 1]} : vector<3x32xf32> to vector<1x32xf32>
    %340 = vector.extract_strided_slice %338 {offsets = [0, 0], sizes = [1, 32], strides = [1, 1]} : vector<3x32xf32> to vector<1x32xf32>
    %cst_140 = arith.constant dense<0.000000e+00> : vector<16xf32>
    %341 = vector.multi_reduction <add>, %334, %cst_140 [1] : vector<16x32xf32> to vector<16xf32>
    %342 = vector.shape_cast %341 : vector<16xf32> to vector<16x1xf32>
    %cst_141 = arith.constant 3.200000e+01 : f32
    %343 = vector.broadcast %cst_141 : f32 to vector<16x1xf32>
    %344 = arith.divf %342, %343 : vector<16x1xf32>
    %345 = vector.broadcast %344 : vector<16x1xf32> to vector<16x32xf32>
    %346 = arith.subf %334, %345 : vector<16x32xf32>
    %347 = arith.mulf %346, %346 : vector<16x32xf32>
    %cst_142 = arith.constant dense<0.000000e+00> : vector<16xf32>
    %348 = vector.multi_reduction <add>, %347, %cst_142 [1] : vector<16x32xf32> to vector<16xf32>
    %349 = vector.shape_cast %348 : vector<16xf32> to vector<16x1xf32>
    %cst_143 = arith.constant 0.0322580636 : f32
    %350 = vector.broadcast %cst_143 : f32 to vector<16x1xf32>
    %351 = arith.mulf %349, %350 : vector<16x1xf32>
    %352 = vector.broadcast %339 : vector<1x32xf32> to vector<16x32xf32>
    %353 = arith.mulf %352, %346 : vector<16x32xf32>
    %354 = math.sqrt %351 : vector<16x1xf32>
    %cst_144 = arith.constant 9.99999997E-7 : f32
    %355 = vector.broadcast %cst_144 : f32 to vector<16x1xf32>
    %356 = arith.addf %354, %355 : vector<16x1xf32>
    %357 = vector.broadcast %356 : vector<16x1xf32> to vector<16x32xf32>
    %358 = arith.divf %353, %357 : vector<16x32xf32>
    %359 = vector.broadcast %340 : vector<1x32xf32> to vector<16x32xf32>
    %360 = arith.addf %358, %359 : vector<16x32xf32>
    %c1_145 = arith.constant 1 : index
    %c0_146 = arith.constant 0 : index
    %c0_147 = arith.constant 0 : index
    %361 = vector.load %arg6[%c1_145, %c0_146, %c0_147] : memref<2x32x96xf32, #tpu.memory_space<vmem>>, vector<1x32x96xf32>
    %362 = vector.shape_cast %361 : vector<1x32x96xf32> to vector<32x96xf32>
    %cst_148 = arith.constant dense<0.000000e+00> : vector<16x96xf32>
    %363 = tpu.matmul %360, %362, %cst_148 {dimension_numbers = #tpu.dot_dimension_numbers<[1], [0], [0], [1], [0, 0, 1, 1], [], []>} : vector<16x32xf32>, vector<32x96xf32>, vector<16x96xf32> -> vector<16x96xf32>
    %c1_149 = arith.constant 1 : index
    %c0_150 = arith.constant 0 : index
    %c0_151 = arith.constant 0 : index
    %364 = vector.load %arg7[%c1_149, %c0_150, %c0_151] : memref<2x1x96xf32, #tpu.memory_space<vmem>>, vector<1x1x96xf32>
    %365 = vector.shape_cast %364 : vector<1x1x96xf32> to vector<1x96xf32>
    %366 = vector.broadcast %365 : vector<1x96xf32> to vector<16x96xf32>
    %367 = arith.addf %363, %366 : vector<16x96xf32>
    %368 = vector.extract_strided_slice %367 {offsets = [0, 0], sizes = [16, 32], strides = [1, 1]} : vector<16x96xf32> to vector<16x32xf32>
    %369 = vector.extract_strided_slice %367 {offsets = [0, 32], sizes = [16, 32], strides = [1, 1]} : vector<16x96xf32> to vector<16x32xf32>
    %370 = vector.extract_strided_slice %367 {offsets = [0, 64], sizes = [16, 32], strides = [1, 1]} : vector<16x96xf32> to vector<16x32xf32>
    %371 = vector.extract_strided_slice %368 {offsets = [0, 0], sizes = [16, 8], strides = [1, 1]} : vector<16x32xf32> to vector<16x8xf32>
    %372 = vector.shape_cast %371 : vector<16x8xf32> to vector<2x8x8xf32>
    %373 = vector.extract_strided_slice %369 {offsets = [0, 0], sizes = [16, 8], strides = [1, 1]} : vector<16x32xf32> to vector<16x8xf32>
    %374 = vector.shape_cast %373 : vector<16x8xf32> to vector<2x8x8xf32>
    %375 = vector.extract_strided_slice %370 {offsets = [0, 0], sizes = [16, 8], strides = [1, 1]} : vector<16x32xf32> to vector<16x8xf32>
    %376 = vector.shape_cast %375 : vector<16x8xf32> to vector<2x8x8xf32>
    "tpu.trace_start"() <{level = 10 : i32, message = "bqd,bkd->bqk"}> : () -> ()
    %cst_152 = arith.constant dense<0.000000e+00> : vector<2x8x8xf32>
    %377 = tpu.matmul %372, %374, %cst_152 {dimension_numbers = #tpu.dot_dimension_numbers<[2], [2], [1], [1], [0, 0, 0, 1, 1, 1], [0], [0]>} : vector<2x8x8xf32>, vector<2x8x8xf32>, vector<2x8x8xf32> -> vector<2x8x8xf32>
    "tpu.trace_stop"() : () -> ()
    %cst_153 = arith.constant 0.353553385 : f32
    %378 = vector.broadcast %cst_153 : f32 to vector<2x8x8xf32>
    %379 = arith.mulf %377, %378 : vector<2x8x8xf32>
    %cst_154 = arith.constant 0.000000e+00 : f32
    %380 = vector.broadcast %cst_154 : f32 to vector<2x8x8xf32>
    %381 = arith.cmpf oeq, %2, %380 : vector<2x8x8xf32>
    %cst_155 = arith.constant -1.000000e+09 : f32
    %382 = vector.broadcast %cst_155 : f32 to vector<2x8x8xf32>
    %383 = arith.select %381, %382, %379 : vector<2x8x8xi1>, vector<2x8x8xf32>
    %cst_156 = arith.constant dense<0xFF800000> : vector<2x8xf32>
    %384 = vector.multi_reduction <maximumf>, %383, %cst_156 [2] : vector<2x8x8xf32> to vector<2x8xf32>
    %385 = vector.shape_cast %384 : vector<2x8xf32> to vector<2x8x1xf32>
    %386 = vector.broadcast %385 : vector<2x8x1xf32> to vector<2x8x8xf32>
    %387 = arith.subf %383, %386 : vector<2x8x8xf32>
    %388 = math.exp %387 : vector<2x8x8xf32>
    %cst_157 = arith.constant dense<0.000000e+00> : vector<2x8xf32>
    %389 = vector.multi_reduction <add>, %388, %cst_157 [2] : vector<2x8x8xf32> to vector<2x8xf32>
    %390 = vector.shape_cast %389 : vector<2x8xf32> to vector<2x8x1xf32>
    %391 = tpu.reciprocal %390 {approx = true} : vector<2x8x1xf32> -> vector<2x8x1xf32>
    %392 = vector.broadcast %391 : vector<2x8x1xf32> to vector<2x8x8xf32>
    %393 = arith.mulf %388, %392 : vector<2x8x8xf32>
    "tpu.trace_start"() <{level = 10 : i32, message = "bqk,bkd->bqd"}> : () -> ()
    %cst_158 = arith.constant dense<0.000000e+00> : vector<2x8x8xf32>
    %394 = tpu.matmul %393, %376, %cst_158 {dimension_numbers = #tpu.dot_dimension_numbers<[2], [1], [1], [2], [0, 0, 0, 1, 1, 2], [0], [0]>} : vector<2x8x8xf32>, vector<2x8x8xf32>, vector<2x8x8xf32> -> vector<2x8x8xf32>
    "tpu.trace_stop"() : () -> ()
    %395 = vector.shape_cast %394 : vector<2x8x8xf32> to vector<16x8xf32>
    %396 = vector.extract_strided_slice %368 {offsets = [0, 8], sizes = [16, 8], strides = [1, 1]} : vector<16x32xf32> to vector<16x8xf32>
    %397 = vector.shape_cast %396 : vector<16x8xf32> to vector<2x8x8xf32>
    %398 = vector.extract_strided_slice %369 {offsets = [0, 8], sizes = [16, 8], strides = [1, 1]} : vector<16x32xf32> to vector<16x8xf32>
    %399 = vector.shape_cast %398 : vector<16x8xf32> to vector<2x8x8xf32>
    %400 = vector.extract_strided_slice %370 {offsets = [0, 8], sizes = [16, 8], strides = [1, 1]} : vector<16x32xf32> to vector<16x8xf32>
    %401 = vector.shape_cast %400 : vector<16x8xf32> to vector<2x8x8xf32>
    "tpu.trace_start"() <{level = 10 : i32, message = "bqd,bkd->bqk"}> : () -> ()
    %cst_159 = arith.constant dense<0.000000e+00> : vector<2x8x8xf32>
    %402 = tpu.matmul %397, %399, %cst_159 {dimension_numbers = #tpu.dot_dimension_numbers<[2], [2], [1], [1], [0, 0, 0, 1, 1, 1], [0], [0]>} : vector<2x8x8xf32>, vector<2x8x8xf32>, vector<2x8x8xf32> -> vector<2x8x8xf32>
    "tpu.trace_stop"() : () -> ()
    %cst_160 = arith.constant 0.353553385 : f32
    %403 = vector.broadcast %cst_160 : f32 to vector<2x8x8xf32>
    %404 = arith.mulf %402, %403 : vector<2x8x8xf32>
    %cst_161 = arith.constant 0.000000e+00 : f32
    %405 = vector.broadcast %cst_161 : f32 to vector<2x8x8xf32>
    %406 = arith.cmpf oeq, %2, %405 : vector<2x8x8xf32>
    %cst_162 = arith.constant -1.000000e+09 : f32
    %407 = vector.broadcast %cst_162 : f32 to vector<2x8x8xf32>
    %408 = arith.select %406, %407, %404 : vector<2x8x8xi1>, vector<2x8x8xf32>
    %cst_163 = arith.constant dense<0xFF800000> : vector<2x8xf32>
    %409 = vector.multi_reduction <maximumf>, %408, %cst_163 [2] : vector<2x8x8xf32> to vector<2x8xf32>
    %410 = vector.shape_cast %409 : vector<2x8xf32> to vector<2x8x1xf32>
    %411 = vector.broadcast %410 : vector<2x8x1xf32> to vector<2x8x8xf32>
    %412 = arith.subf %408, %411 : vector<2x8x8xf32>
    %413 = math.exp %412 : vector<2x8x8xf32>
    %cst_164 = arith.constant dense<0.000000e+00> : vector<2x8xf32>
    %414 = vector.multi_reduction <add>, %413, %cst_164 [2] : vector<2x8x8xf32> to vector<2x8xf32>
    %415 = vector.shape_cast %414 : vector<2x8xf32> to vector<2x8x1xf32>
    %416 = tpu.reciprocal %415 {approx = true} : vector<2x8x1xf32> -> vector<2x8x1xf32>
    %417 = vector.broadcast %416 : vector<2x8x1xf32> to vector<2x8x8xf32>
    %418 = arith.mulf %413, %417 : vector<2x8x8xf32>
    "tpu.trace_start"() <{level = 10 : i32, message = "bqk,bkd->bqd"}> : () -> ()
    %cst_165 = arith.constant dense<0.000000e+00> : vector<2x8x8xf32>
    %419 = tpu.matmul %418, %401, %cst_165 {dimension_numbers = #tpu.dot_dimension_numbers<[2], [1], [1], [2], [0, 0, 0, 1, 1, 2], [0], [0]>} : vector<2x8x8xf32>, vector<2x8x8xf32>, vector<2x8x8xf32> -> vector<2x8x8xf32>
    "tpu.trace_stop"() : () -> ()
    %420 = vector.shape_cast %419 : vector<2x8x8xf32> to vector<16x8xf32>
    %421 = vector.extract_strided_slice %368 {offsets = [0, 16], sizes = [16, 8], strides = [1, 1]} : vector<16x32xf32> to vector<16x8xf32>
    %422 = vector.shape_cast %421 : vector<16x8xf32> to vector<2x8x8xf32>
    %423 = vector.extract_strided_slice %369 {offsets = [0, 16], sizes = [16, 8], strides = [1, 1]} : vector<16x32xf32> to vector<16x8xf32>
    %424 = vector.shape_cast %423 : vector<16x8xf32> to vector<2x8x8xf32>
    %425 = vector.extract_strided_slice %370 {offsets = [0, 16], sizes = [16, 8], strides = [1, 1]} : vector<16x32xf32> to vector<16x8xf32>
    %426 = vector.shape_cast %425 : vector<16x8xf32> to vector<2x8x8xf32>
    "tpu.trace_start"() <{level = 10 : i32, message = "bqd,bkd->bqk"}> : () -> ()
    %cst_166 = arith.constant dense<0.000000e+00> : vector<2x8x8xf32>
    %427 = tpu.matmul %422, %424, %cst_166 {dimension_numbers = #tpu.dot_dimension_numbers<[2], [2], [1], [1], [0, 0, 0, 1, 1, 1], [0], [0]>} : vector<2x8x8xf32>, vector<2x8x8xf32>, vector<2x8x8xf32> -> vector<2x8x8xf32>
    "tpu.trace_stop"() : () -> ()
    %cst_167 = arith.constant 0.353553385 : f32
    %428 = vector.broadcast %cst_167 : f32 to vector<2x8x8xf32>
    %429 = arith.mulf %427, %428 : vector<2x8x8xf32>
    %cst_168 = arith.constant 0.000000e+00 : f32
    %430 = vector.broadcast %cst_168 : f32 to vector<2x8x8xf32>
    %431 = arith.cmpf oeq, %2, %430 : vector<2x8x8xf32>
    %cst_169 = arith.constant -1.000000e+09 : f32
    %432 = vector.broadcast %cst_169 : f32 to vector<2x8x8xf32>
    %433 = arith.select %431, %432, %429 : vector<2x8x8xi1>, vector<2x8x8xf32>
    %cst_170 = arith.constant dense<0xFF800000> : vector<2x8xf32>
    %434 = vector.multi_reduction <maximumf>, %433, %cst_170 [2] : vector<2x8x8xf32> to vector<2x8xf32>
    %435 = vector.shape_cast %434 : vector<2x8xf32> to vector<2x8x1xf32>
    %436 = vector.broadcast %435 : vector<2x8x1xf32> to vector<2x8x8xf32>
    %437 = arith.subf %433, %436 : vector<2x8x8xf32>
    %438 = math.exp %437 : vector<2x8x8xf32>
    %cst_171 = arith.constant dense<0.000000e+00> : vector<2x8xf32>
    %439 = vector.multi_reduction <add>, %438, %cst_171 [2] : vector<2x8x8xf32> to vector<2x8xf32>
    %440 = vector.shape_cast %439 : vector<2x8xf32> to vector<2x8x1xf32>
    %441 = tpu.reciprocal %440 {approx = true} : vector<2x8x1xf32> -> vector<2x8x1xf32>
    %442 = vector.broadcast %441 : vector<2x8x1xf32> to vector<2x8x8xf32>
    %443 = arith.mulf %438, %442 : vector<2x8x8xf32>
    "tpu.trace_start"() <{level = 10 : i32, message = "bqk,bkd->bqd"}> : () -> ()
    %cst_172 = arith.constant dense<0.000000e+00> : vector<2x8x8xf32>
    %444 = tpu.matmul %443, %426, %cst_172 {dimension_numbers = #tpu.dot_dimension_numbers<[2], [1], [1], [2], [0, 0, 0, 1, 1, 2], [0], [0]>} : vector<2x8x8xf32>, vector<2x8x8xf32>, vector<2x8x8xf32> -> vector<2x8x8xf32>
    "tpu.trace_stop"() : () -> ()
    %445 = vector.shape_cast %444 : vector<2x8x8xf32> to vector<16x8xf32>
    %446 = vector.extract_strided_slice %368 {offsets = [0, 24], sizes = [16, 8], strides = [1, 1]} : vector<16x32xf32> to vector<16x8xf32>
    %447 = vector.shape_cast %446 : vector<16x8xf32> to vector<2x8x8xf32>
    %448 = vector.extract_strided_slice %369 {offsets = [0, 24], sizes = [16, 8], strides = [1, 1]} : vector<16x32xf32> to vector<16x8xf32>
    %449 = vector.shape_cast %448 : vector<16x8xf32> to vector<2x8x8xf32>
    %450 = vector.extract_strided_slice %370 {offsets = [0, 24], sizes = [16, 8], strides = [1, 1]} : vector<16x32xf32> to vector<16x8xf32>
    %451 = vector.shape_cast %450 : vector<16x8xf32> to vector<2x8x8xf32>
    "tpu.trace_start"() <{level = 10 : i32, message = "bqd,bkd->bqk"}> : () -> ()
    %cst_173 = arith.constant dense<0.000000e+00> : vector<2x8x8xf32>
    %452 = tpu.matmul %447, %449, %cst_173 {dimension_numbers = #tpu.dot_dimension_numbers<[2], [2], [1], [1], [0, 0, 0, 1, 1, 1], [0], [0]>} : vector<2x8x8xf32>, vector<2x8x8xf32>, vector<2x8x8xf32> -> vector<2x8x8xf32>
    "tpu.trace_stop"() : () -> ()
    %cst_174 = arith.constant 0.353553385 : f32
    %453 = vector.broadcast %cst_174 : f32 to vector<2x8x8xf32>
    %454 = arith.mulf %452, %453 : vector<2x8x8xf32>
    %cst_175 = arith.constant 0.000000e+00 : f32
    %455 = vector.broadcast %cst_175 : f32 to vector<2x8x8xf32>
    %456 = arith.cmpf oeq, %2, %455 : vector<2x8x8xf32>
    %cst_176 = arith.constant -1.000000e+09 : f32
    %457 = vector.broadcast %cst_176 : f32 to vector<2x8x8xf32>
    %458 = arith.select %456, %457, %454 : vector<2x8x8xi1>, vector<2x8x8xf32>
    %cst_177 = arith.constant dense<0xFF800000> : vector<2x8xf32>
    %459 = vector.multi_reduction <maximumf>, %458, %cst_177 [2] : vector<2x8x8xf32> to vector<2x8xf32>
    %460 = vector.shape_cast %459 : vector<2x8xf32> to vector<2x8x1xf32>
    %461 = vector.broadcast %460 : vector<2x8x1xf32> to vector<2x8x8xf32>
    %462 = arith.subf %458, %461 : vector<2x8x8xf32>
    %463 = math.exp %462 : vector<2x8x8xf32>
    %cst_178 = arith.constant dense<0.000000e+00> : vector<2x8xf32>
    %464 = vector.multi_reduction <add>, %463, %cst_178 [2] : vector<2x8x8xf32> to vector<2x8xf32>
    %465 = vector.shape_cast %464 : vector<2x8xf32> to vector<2x8x1xf32>
    %466 = tpu.reciprocal %465 {approx = true} : vector<2x8x1xf32> -> vector<2x8x1xf32>
    %467 = vector.broadcast %466 : vector<2x8x1xf32> to vector<2x8x8xf32>
    %468 = arith.mulf %463, %467 : vector<2x8x8xf32>
    "tpu.trace_start"() <{level = 10 : i32, message = "bqk,bkd->bqd"}> : () -> ()
    %cst_179 = arith.constant dense<0.000000e+00> : vector<2x8x8xf32>
    %469 = tpu.matmul %468, %451, %cst_179 {dimension_numbers = #tpu.dot_dimension_numbers<[2], [1], [1], [2], [0, 0, 0, 1, 1, 2], [0], [0]>} : vector<2x8x8xf32>, vector<2x8x8xf32>, vector<2x8x8xf32> -> vector<2x8x8xf32>
    "tpu.trace_stop"() : () -> ()
    %470 = vector.shape_cast %469 : vector<2x8x8xf32> to vector<16x8xf32>
    %471 = tpu.concatenate %395, %420, %445, %470 in 1 : vector<16x8xf32>, vector<16x8xf32>, vector<16x8xf32>, vector<16x8xf32> -> vector<16x32xf32>
    %c1_180 = arith.constant 1 : index
    %c0_181 = arith.constant 0 : index
    %c0_182 = arith.constant 0 : index
    %472 = vector.load %arg8[%c1_180, %c0_181, %c0_182] : memref<2x32x32xf32, #tpu.memory_space<vmem>>, vector<1x32x32xf32>
    %473 = vector.shape_cast %472 : vector<1x32x32xf32> to vector<32x32xf32>
    %cst_183 = arith.constant dense<0.000000e+00> : vector<16x32xf32>
    %474 = tpu.matmul %471, %473, %cst_183 {dimension_numbers = #tpu.dot_dimension_numbers<[1], [0], [0], [1], [0, 0, 1, 1], [], []>} : vector<16x32xf32>, vector<32x32xf32>, vector<16x32xf32> -> vector<16x32xf32>
    %475 = arith.addf %334, %474 : vector<16x32xf32>
    %c1_184 = arith.constant 1 : index
    %c0_185 = arith.constant 0 : index
    %c0_186 = arith.constant 0 : index
    %476 = vector.load %arg9[%c1_184, %c0_185, %c0_186] : memref<2x1x32xf32, #tpu.memory_space<vmem>>, vector<1x1x32xf32>
    %477 = vector.shape_cast %476 : vector<1x1x32xf32> to vector<1x32xf32>
    %478 = vector.broadcast %477 : vector<1x32xf32> to vector<16x32xf32>
    %479 = arith.addf %475, %478 : vector<16x32xf32>
    %480 = vector.extract_strided_slice %336 {offsets = [1, 0], sizes = [1, 32], strides = [1, 1]} : vector<3x32xf32> to vector<1x32xf32>
    %481 = vector.extract_strided_slice %338 {offsets = [1, 0], sizes = [1, 32], strides = [1, 1]} : vector<3x32xf32> to vector<1x32xf32>
    %cst_187 = arith.constant dense<0.000000e+00> : vector<16xf32>
    %482 = vector.multi_reduction <add>, %479, %cst_187 [1] : vector<16x32xf32> to vector<16xf32>
    %483 = vector.shape_cast %482 : vector<16xf32> to vector<16x1xf32>
    %cst_188 = arith.constant 3.200000e+01 : f32
    %484 = vector.broadcast %cst_188 : f32 to vector<16x1xf32>
    %485 = arith.divf %483, %484 : vector<16x1xf32>
    %486 = vector.broadcast %485 : vector<16x1xf32> to vector<16x32xf32>
    %487 = arith.subf %479, %486 : vector<16x32xf32>
    %488 = arith.mulf %487, %487 : vector<16x32xf32>
    %cst_189 = arith.constant dense<0.000000e+00> : vector<16xf32>
    %489 = vector.multi_reduction <add>, %488, %cst_189 [1] : vector<16x32xf32> to vector<16xf32>
    %490 = vector.shape_cast %489 : vector<16xf32> to vector<16x1xf32>
    %cst_190 = arith.constant 0.0322580636 : f32
    %491 = vector.broadcast %cst_190 : f32 to vector<16x1xf32>
    %492 = arith.mulf %490, %491 : vector<16x1xf32>
    %493 = vector.broadcast %480 : vector<1x32xf32> to vector<16x32xf32>
    %494 = arith.mulf %493, %487 : vector<16x32xf32>
    %495 = math.sqrt %492 : vector<16x1xf32>
    %cst_191 = arith.constant 9.99999997E-7 : f32
    %496 = vector.broadcast %cst_191 : f32 to vector<16x1xf32>
    %497 = arith.addf %495, %496 : vector<16x1xf32>
    %498 = vector.broadcast %497 : vector<16x1xf32> to vector<16x32xf32>
    %499 = arith.divf %494, %498 : vector<16x32xf32>
    %500 = vector.broadcast %481 : vector<1x32xf32> to vector<16x32xf32>
    %501 = arith.addf %499, %500 : vector<16x32xf32>
    %c1_192 = arith.constant 1 : index
    %c0_193 = arith.constant 0 : index
    %c0_194 = arith.constant 0 : index
    %502 = vector.load %arg10[%c1_192, %c0_193, %c0_194] : memref<2x32x32xf32, #tpu.memory_space<vmem>>, vector<1x32x32xf32>
    %503 = vector.shape_cast %502 : vector<1x32x32xf32> to vector<32x32xf32>
    %cst_195 = arith.constant dense<0.000000e+00> : vector<16x32xf32>
    %504 = tpu.matmul %501, %503, %cst_195 {dimension_numbers = #tpu.dot_dimension_numbers<[1], [0], [0], [1], [0, 0, 1, 1], [], []>} : vector<16x32xf32>, vector<32x32xf32>, vector<16x32xf32> -> vector<16x32xf32>
    %c1_196 = arith.constant 1 : index
    %c0_197 = arith.constant 0 : index
    %c0_198 = arith.constant 0 : index
    %505 = vector.load %arg11[%c1_196, %c0_197, %c0_198] : memref<2x1x32xf32, #tpu.memory_space<vmem>>, vector<1x1x32xf32>
    %506 = vector.shape_cast %505 : vector<1x1x32xf32> to vector<1x32xf32>
    %507 = vector.broadcast %506 : vector<1x32xf32> to vector<16x32xf32>
    %508 = arith.addf %504, %507 : vector<16x32xf32>
    %c1_199 = arith.constant 1 : index
    %c0_200 = arith.constant 0 : index
    %c0_201 = arith.constant 0 : index
    %509 = vector.load %arg12[%c1_199, %c0_200, %c0_201] : memref<2x32x64xf32, #tpu.memory_space<vmem>>, vector<1x32x64xf32>
    %510 = vector.shape_cast %509 : vector<1x32x64xf32> to vector<32x64xf32>
    %cst_202 = arith.constant dense<0.000000e+00> : vector<16x64xf32>
    %511 = tpu.matmul %1, %510, %cst_202 {dimension_numbers = #tpu.dot_dimension_numbers<[1], [0], [0], [1], [0, 0, 1, 1], [], []>} : vector<16x32xf32>, vector<32x64xf32>, vector<16x64xf32> -> vector<16x64xf32>
    %c1_203 = arith.constant 1 : index
    %c0_204 = arith.constant 0 : index
    %c0_205 = arith.constant 0 : index
    %512 = vector.load %arg13[%c1_203, %c0_204, %c0_205] : memref<2x1x64xf32, #tpu.memory_space<vmem>>, vector<1x1x64xf32>
    %513 = vector.shape_cast %512 : vector<1x1x64xf32> to vector<1x64xf32>
    %514 = vector.broadcast %513 : vector<1x64xf32> to vector<16x64xf32>
    %515 = arith.addf %511, %514 : vector<16x64xf32>
    %516 = vector.extract_strided_slice %515 {offsets = [0, 0], sizes = [16, 32], strides = [1, 1]} : vector<16x64xf32> to vector<16x32xf32>
    %517 = vector.extract_strided_slice %515 {offsets = [0, 32], sizes = [16, 32], strides = [1, 1]} : vector<16x64xf32> to vector<16x32xf32>
    %518 = vector.extract_strided_slice %508 {offsets = [0, 0], sizes = [16, 8], strides = [1, 1]} : vector<16x32xf32> to vector<16x8xf32>
    %519 = vector.shape_cast %518 : vector<16x8xf32> to vector<2x8x8xf32>
    %520 = vector.extract_strided_slice %516 {offsets = [0, 0], sizes = [16, 8], strides = [1, 1]} : vector<16x32xf32> to vector<16x8xf32>
    %521 = vector.shape_cast %520 : vector<16x8xf32> to vector<2x8x8xf32>
    %522 = vector.extract_strided_slice %517 {offsets = [0, 0], sizes = [16, 8], strides = [1, 1]} : vector<16x32xf32> to vector<16x8xf32>
    %523 = vector.shape_cast %522 : vector<16x8xf32> to vector<2x8x8xf32>
    "tpu.trace_start"() <{level = 10 : i32, message = "bqd,bkd->bqk"}> : () -> ()
    %cst_206 = arith.constant dense<0.000000e+00> : vector<2x8x8xf32>
    %524 = tpu.matmul %519, %521, %cst_206 {dimension_numbers = #tpu.dot_dimension_numbers<[2], [2], [1], [1], [0, 0, 0, 1, 1, 1], [0], [0]>} : vector<2x8x8xf32>, vector<2x8x8xf32>, vector<2x8x8xf32> -> vector<2x8x8xf32>
    "tpu.trace_stop"() : () -> ()
    %cst_207 = arith.constant 0.353553385 : f32
    %525 = vector.broadcast %cst_207 : f32 to vector<2x8x8xf32>
    %526 = arith.mulf %524, %525 : vector<2x8x8xf32>
    %cst_208 = arith.constant 0.000000e+00 : f32
    %527 = vector.broadcast %cst_208 : f32 to vector<2x8x8xf32>
    %528 = arith.cmpf oeq, %3, %527 : vector<2x8x8xf32>
    %cst_209 = arith.constant -1.000000e+09 : f32
    %529 = vector.broadcast %cst_209 : f32 to vector<2x8x8xf32>
    %530 = arith.select %528, %529, %526 : vector<2x8x8xi1>, vector<2x8x8xf32>
    %cst_210 = arith.constant dense<0xFF800000> : vector<2x8xf32>
    %531 = vector.multi_reduction <maximumf>, %530, %cst_210 [2] : vector<2x8x8xf32> to vector<2x8xf32>
    %532 = vector.shape_cast %531 : vector<2x8xf32> to vector<2x8x1xf32>
    %533 = vector.broadcast %532 : vector<2x8x1xf32> to vector<2x8x8xf32>
    %534 = arith.subf %530, %533 : vector<2x8x8xf32>
    %535 = math.exp %534 : vector<2x8x8xf32>
    %cst_211 = arith.constant dense<0.000000e+00> : vector<2x8xf32>
    %536 = vector.multi_reduction <add>, %535, %cst_211 [2] : vector<2x8x8xf32> to vector<2x8xf32>
    %537 = vector.shape_cast %536 : vector<2x8xf32> to vector<2x8x1xf32>
    %538 = tpu.reciprocal %537 {approx = true} : vector<2x8x1xf32> -> vector<2x8x1xf32>
    %539 = vector.broadcast %538 : vector<2x8x1xf32> to vector<2x8x8xf32>
    %540 = arith.mulf %535, %539 : vector<2x8x8xf32>
    "tpu.trace_start"() <{level = 10 : i32, message = "bqk,bkd->bqd"}> : () -> ()
    %cst_212 = arith.constant dense<0.000000e+00> : vector<2x8x8xf32>
    %541 = tpu.matmul %540, %523, %cst_212 {dimension_numbers = #tpu.dot_dimension_numbers<[2], [1], [1], [2], [0, 0, 0, 1, 1, 2], [0], [0]>} : vector<2x8x8xf32>, vector<2x8x8xf32>, vector<2x8x8xf32> -> vector<2x8x8xf32>
    "tpu.trace_stop"() : () -> ()
    %542 = vector.shape_cast %541 : vector<2x8x8xf32> to vector<16x8xf32>
    %543 = vector.extract_strided_slice %508 {offsets = [0, 8], sizes = [16, 8], strides = [1, 1]} : vector<16x32xf32> to vector<16x8xf32>
    %544 = vector.shape_cast %543 : vector<16x8xf32> to vector<2x8x8xf32>
    %545 = vector.extract_strided_slice %516 {offsets = [0, 8], sizes = [16, 8], strides = [1, 1]} : vector<16x32xf32> to vector<16x8xf32>
    %546 = vector.shape_cast %545 : vector<16x8xf32> to vector<2x8x8xf32>
    %547 = vector.extract_strided_slice %517 {offsets = [0, 8], sizes = [16, 8], strides = [1, 1]} : vector<16x32xf32> to vector<16x8xf32>
    %548 = vector.shape_cast %547 : vector<16x8xf32> to vector<2x8x8xf32>
    "tpu.trace_start"() <{level = 10 : i32, message = "bqd,bkd->bqk"}> : () -> ()
    %cst_213 = arith.constant dense<0.000000e+00> : vector<2x8x8xf32>
    %549 = tpu.matmul %544, %546, %cst_213 {dimension_numbers = #tpu.dot_dimension_numbers<[2], [2], [1], [1], [0, 0, 0, 1, 1, 1], [0], [0]>} : vector<2x8x8xf32>, vector<2x8x8xf32>, vector<2x8x8xf32> -> vector<2x8x8xf32>
    "tpu.trace_stop"() : () -> ()
    %cst_214 = arith.constant 0.353553385 : f32
    %550 = vector.broadcast %cst_214 : f32 to vector<2x8x8xf32>
    %551 = arith.mulf %549, %550 : vector<2x8x8xf32>
    %cst_215 = arith.constant 0.000000e+00 : f32
    %552 = vector.broadcast %cst_215 : f32 to vector<2x8x8xf32>
    %553 = arith.cmpf oeq, %3, %552 : vector<2x8x8xf32>
    %cst_216 = arith.constant -1.000000e+09 : f32
    %554 = vector.broadcast %cst_216 : f32 to vector<2x8x8xf32>
    %555 = arith.select %553, %554, %551 : vector<2x8x8xi1>, vector<2x8x8xf32>
    %cst_217 = arith.constant dense<0xFF800000> : vector<2x8xf32>
    %556 = vector.multi_reduction <maximumf>, %555, %cst_217 [2] : vector<2x8x8xf32> to vector<2x8xf32>
    %557 = vector.shape_cast %556 : vector<2x8xf32> to vector<2x8x1xf32>
    %558 = vector.broadcast %557 : vector<2x8x1xf32> to vector<2x8x8xf32>
    %559 = arith.subf %555, %558 : vector<2x8x8xf32>
    %560 = math.exp %559 : vector<2x8x8xf32>
    %cst_218 = arith.constant dense<0.000000e+00> : vector<2x8xf32>
    %561 = vector.multi_reduction <add>, %560, %cst_218 [2] : vector<2x8x8xf32> to vector<2x8xf32>
    %562 = vector.shape_cast %561 : vector<2x8xf32> to vector<2x8x1xf32>
    %563 = tpu.reciprocal %562 {approx = true} : vector<2x8x1xf32> -> vector<2x8x1xf32>
    %564 = vector.broadcast %563 : vector<2x8x1xf32> to vector<2x8x8xf32>
    %565 = arith.mulf %560, %564 : vector<2x8x8xf32>
    "tpu.trace_start"() <{level = 10 : i32, message = "bqk,bkd->bqd"}> : () -> ()
    %cst_219 = arith.constant dense<0.000000e+00> : vector<2x8x8xf32>
    %566 = tpu.matmul %565, %548, %cst_219 {dimension_numbers = #tpu.dot_dimension_numbers<[2], [1], [1], [2], [0, 0, 0, 1, 1, 2], [0], [0]>} : vector<2x8x8xf32>, vector<2x8x8xf32>, vector<2x8x8xf32> -> vector<2x8x8xf32>
    "tpu.trace_stop"() : () -> ()
    %567 = vector.shape_cast %566 : vector<2x8x8xf32> to vector<16x8xf32>
    %568 = vector.extract_strided_slice %508 {offsets = [0, 16], sizes = [16, 8], strides = [1, 1]} : vector<16x32xf32> to vector<16x8xf32>
    %569 = vector.shape_cast %568 : vector<16x8xf32> to vector<2x8x8xf32>
    %570 = vector.extract_strided_slice %516 {offsets = [0, 16], sizes = [16, 8], strides = [1, 1]} : vector<16x32xf32> to vector<16x8xf32>
    %571 = vector.shape_cast %570 : vector<16x8xf32> to vector<2x8x8xf32>
    %572 = vector.extract_strided_slice %517 {offsets = [0, 16], sizes = [16, 8], strides = [1, 1]} : vector<16x32xf32> to vector<16x8xf32>
    %573 = vector.shape_cast %572 : vector<16x8xf32> to vector<2x8x8xf32>
    "tpu.trace_start"() <{level = 10 : i32, message = "bqd,bkd->bqk"}> : () -> ()
    %cst_220 = arith.constant dense<0.000000e+00> : vector<2x8x8xf32>
    %574 = tpu.matmul %569, %571, %cst_220 {dimension_numbers = #tpu.dot_dimension_numbers<[2], [2], [1], [1], [0, 0, 0, 1, 1, 1], [0], [0]>} : vector<2x8x8xf32>, vector<2x8x8xf32>, vector<2x8x8xf32> -> vector<2x8x8xf32>
    "tpu.trace_stop"() : () -> ()
    %cst_221 = arith.constant 0.353553385 : f32
    %575 = vector.broadcast %cst_221 : f32 to vector<2x8x8xf32>
    %576 = arith.mulf %574, %575 : vector<2x8x8xf32>
    %cst_222 = arith.constant 0.000000e+00 : f32
    %577 = vector.broadcast %cst_222 : f32 to vector<2x8x8xf32>
    %578 = arith.cmpf oeq, %3, %577 : vector<2x8x8xf32>
    %cst_223 = arith.constant -1.000000e+09 : f32
    %579 = vector.broadcast %cst_223 : f32 to vector<2x8x8xf32>
    %580 = arith.select %578, %579, %576 : vector<2x8x8xi1>, vector<2x8x8xf32>
    %cst_224 = arith.constant dense<0xFF800000> : vector<2x8xf32>
    %581 = vector.multi_reduction <maximumf>, %580, %cst_224 [2] : vector<2x8x8xf32> to vector<2x8xf32>
    %582 = vector.shape_cast %581 : vector<2x8xf32> to vector<2x8x1xf32>
    %583 = vector.broadcast %582 : vector<2x8x1xf32> to vector<2x8x8xf32>
    %584 = arith.subf %580, %583 : vector<2x8x8xf32>
    %585 = math.exp %584 : vector<2x8x8xf32>
    %cst_225 = arith.constant dense<0.000000e+00> : vector<2x8xf32>
    %586 = vector.multi_reduction <add>, %585, %cst_225 [2] : vector<2x8x8xf32> to vector<2x8xf32>
    %587 = vector.shape_cast %586 : vector<2x8xf32> to vector<2x8x1xf32>
    %588 = tpu.reciprocal %587 {approx = true} : vector<2x8x1xf32> -> vector<2x8x1xf32>
    %589 = vector.broadcast %588 : vector<2x8x1xf32> to vector<2x8x8xf32>
    %590 = arith.mulf %585, %589 : vector<2x8x8xf32>
    "tpu.trace_start"() <{level = 10 : i32, message = "bqk,bkd->bqd"}> : () -> ()
    %cst_226 = arith.constant dense<0.000000e+00> : vector<2x8x8xf32>
    %591 = tpu.matmul %590, %573, %cst_226 {dimension_numbers = #tpu.dot_dimension_numbers<[2], [1], [1], [2], [0, 0, 0, 1, 1, 2], [0], [0]>} : vector<2x8x8xf32>, vector<2x8x8xf32>, vector<2x8x8xf32> -> vector<2x8x8xf32>
    "tpu.trace_stop"() : () -> ()
    %592 = vector.shape_cast %591 : vector<2x8x8xf32> to vector<16x8xf32>
    %593 = vector.extract_strided_slice %508 {offsets = [0, 24], sizes = [16, 8], strides = [1, 1]} : vector<16x32xf32> to vector<16x8xf32>
    %594 = vector.shape_cast %593 : vector<16x8xf32> to vector<2x8x8xf32>
    %595 = vector.extract_strided_slice %516 {offsets = [0, 24], sizes = [16, 8], strides = [1, 1]} : vector<16x32xf32> to vector<16x8xf32>
    %596 = vector.shape_cast %595 : vector<16x8xf32> to vector<2x8x8xf32>
    %597 = vector.extract_strided_slice %517 {offsets = [0, 24], sizes = [16, 8], strides = [1, 1]} : vector<16x32xf32> to vector<16x8xf32>
    %598 = vector.shape_cast %597 : vector<16x8xf32> to vector<2x8x8xf32>
    "tpu.trace_start"() <{level = 10 : i32, message = "bqd,bkd->bqk"}> : () -> ()
    %cst_227 = arith.constant dense<0.000000e+00> : vector<2x8x8xf32>
    %599 = tpu.matmul %594, %596, %cst_227 {dimension_numbers = #tpu.dot_dimension_numbers<[2], [2], [1], [1], [0, 0, 0, 1, 1, 1], [0], [0]>} : vector<2x8x8xf32>, vector<2x8x8xf32>, vector<2x8x8xf32> -> vector<2x8x8xf32>
    "tpu.trace_stop"() : () -> ()
    %cst_228 = arith.constant 0.353553385 : f32
    %600 = vector.broadcast %cst_228 : f32 to vector<2x8x8xf32>
    %601 = arith.mulf %599, %600 : vector<2x8x8xf32>
    %cst_229 = arith.constant 0.000000e+00 : f32
    %602 = vector.broadcast %cst_229 : f32 to vector<2x8x8xf32>
    %603 = arith.cmpf oeq, %3, %602 : vector<2x8x8xf32>
    %cst_230 = arith.constant -1.000000e+09 : f32
    %604 = vector.broadcast %cst_230 : f32 to vector<2x8x8xf32>
    %605 = arith.select %603, %604, %601 : vector<2x8x8xi1>, vector<2x8x8xf32>
    %cst_231 = arith.constant dense<0xFF800000> : vector<2x8xf32>
    %606 = vector.multi_reduction <maximumf>, %605, %cst_231 [2] : vector<2x8x8xf32> to vector<2x8xf32>
    %607 = vector.shape_cast %606 : vector<2x8xf32> to vector<2x8x1xf32>
    %608 = vector.broadcast %607 : vector<2x8x1xf32> to vector<2x8x8xf32>
    %609 = arith.subf %605, %608 : vector<2x8x8xf32>
    %610 = math.exp %609 : vector<2x8x8xf32>
    %cst_232 = arith.constant dense<0.000000e+00> : vector<2x8xf32>
    %611 = vector.multi_reduction <add>, %610, %cst_232 [2] : vector<2x8x8xf32> to vector<2x8xf32>
    %612 = vector.shape_cast %611 : vector<2x8xf32> to vector<2x8x1xf32>
    %613 = tpu.reciprocal %612 {approx = true} : vector<2x8x1xf32> -> vector<2x8x1xf32>
    %614 = vector.broadcast %613 : vector<2x8x1xf32> to vector<2x8x8xf32>
    %615 = arith.mulf %610, %614 : vector<2x8x8xf32>
    "tpu.trace_start"() <{level = 10 : i32, message = "bqk,bkd->bqd"}> : () -> ()
    %cst_233 = arith.constant dense<0.000000e+00> : vector<2x8x8xf32>
    %616 = tpu.matmul %615, %598, %cst_233 {dimension_numbers = #tpu.dot_dimension_numbers<[2], [1], [1], [2], [0, 0, 0, 1, 1, 2], [0], [0]>} : vector<2x8x8xf32>, vector<2x8x8xf32>, vector<2x8x8xf32> -> vector<2x8x8xf32>
    "tpu.trace_stop"() : () -> ()
    %617 = vector.shape_cast %616 : vector<2x8x8xf32> to vector<16x8xf32>
    %618 = tpu.concatenate %542, %567, %592, %617 in 1 : vector<16x8xf32>, vector<16x8xf32>, vector<16x8xf32>, vector<16x8xf32> -> vector<16x32xf32>
    %c1_234 = arith.constant 1 : index
    %c0_235 = arith.constant 0 : index
    %c0_236 = arith.constant 0 : index
    %619 = vector.load %arg14[%c1_234, %c0_235, %c0_236] : memref<2x32x32xf32, #tpu.memory_space<vmem>>, vector<1x32x32xf32>
    %620 = vector.shape_cast %619 : vector<1x32x32xf32> to vector<32x32xf32>
    %cst_237 = arith.constant dense<0.000000e+00> : vector<16x32xf32>
    %621 = tpu.matmul %618, %620, %cst_237 {dimension_numbers = #tpu.dot_dimension_numbers<[1], [0], [0], [1], [0, 0, 1, 1], [], []>} : vector<16x32xf32>, vector<32x32xf32>, vector<16x32xf32> -> vector<16x32xf32>
    %622 = arith.addf %479, %621 : vector<16x32xf32>
    %c1_238 = arith.constant 1 : index
    %c0_239 = arith.constant 0 : index
    %c0_240 = arith.constant 0 : index
    %623 = vector.load %arg15[%c1_238, %c0_239, %c0_240] : memref<2x1x32xf32, #tpu.memory_space<vmem>>, vector<1x1x32xf32>
    %624 = vector.shape_cast %623 : vector<1x1x32xf32> to vector<1x32xf32>
    %625 = vector.broadcast %624 : vector<1x32xf32> to vector<16x32xf32>
    %626 = arith.addf %622, %625 : vector<16x32xf32>
    %627 = vector.extract_strided_slice %336 {offsets = [2, 0], sizes = [1, 32], strides = [1, 1]} : vector<3x32xf32> to vector<1x32xf32>
    %628 = vector.extract_strided_slice %338 {offsets = [2, 0], sizes = [1, 32], strides = [1, 1]} : vector<3x32xf32> to vector<1x32xf32>
    %cst_241 = arith.constant dense<0.000000e+00> : vector<16xf32>
    %629 = vector.multi_reduction <add>, %626, %cst_241 [1] : vector<16x32xf32> to vector<16xf32>
    %630 = vector.shape_cast %629 : vector<16xf32> to vector<16x1xf32>
    %cst_242 = arith.constant 3.200000e+01 : f32
    %631 = vector.broadcast %cst_242 : f32 to vector<16x1xf32>
    %632 = arith.divf %630, %631 : vector<16x1xf32>
    %633 = vector.broadcast %632 : vector<16x1xf32> to vector<16x32xf32>
    %634 = arith.subf %626, %633 : vector<16x32xf32>
    %635 = arith.mulf %634, %634 : vector<16x32xf32>
    %cst_243 = arith.constant dense<0.000000e+00> : vector<16xf32>
    %636 = vector.multi_reduction <add>, %635, %cst_243 [1] : vector<16x32xf32> to vector<16xf32>
    %637 = vector.shape_cast %636 : vector<16xf32> to vector<16x1xf32>
    %cst_244 = arith.constant 0.0322580636 : f32
    %638 = vector.broadcast %cst_244 : f32 to vector<16x1xf32>
    %639 = arith.mulf %637, %638 : vector<16x1xf32>
    %640 = vector.broadcast %627 : vector<1x32xf32> to vector<16x32xf32>
    %641 = arith.mulf %640, %634 : vector<16x32xf32>
    %642 = math.sqrt %639 : vector<16x1xf32>
    %cst_245 = arith.constant 9.99999997E-7 : f32
    %643 = vector.broadcast %cst_245 : f32 to vector<16x1xf32>
    %644 = arith.addf %642, %643 : vector<16x1xf32>
    %645 = vector.broadcast %644 : vector<16x1xf32> to vector<16x32xf32>
    %646 = arith.divf %641, %645 : vector<16x32xf32>
    %647 = vector.broadcast %628 : vector<1x32xf32> to vector<16x32xf32>
    %648 = arith.addf %646, %647 : vector<16x32xf32>
    %c1_246 = arith.constant 1 : index
    %c0_247 = arith.constant 0 : index
    %c0_248 = arith.constant 0 : index
    %649 = vector.load %arg16[%c1_246, %c0_247, %c0_248] : memref<2x32x64xf32, #tpu.memory_space<vmem>>, vector<1x32x64xf32>
    %650 = vector.shape_cast %649 : vector<1x32x64xf32> to vector<32x64xf32>
    %cst_249 = arith.constant dense<0.000000e+00> : vector<16x64xf32>
    %651 = tpu.matmul %648, %650, %cst_249 {dimension_numbers = #tpu.dot_dimension_numbers<[1], [0], [0], [1], [0, 0, 1, 1], [], []>} : vector<16x32xf32>, vector<32x64xf32>, vector<16x64xf32> -> vector<16x64xf32>
    %c1_250 = arith.constant 1 : index
    %c0_251 = arith.constant 0 : index
    %c0_252 = arith.constant 0 : index
    %652 = vector.load %arg17[%c1_250, %c0_251, %c0_252] : memref<2x1x64xf32, #tpu.memory_space<vmem>>, vector<1x1x64xf32>
    %653 = vector.shape_cast %652 : vector<1x1x64xf32> to vector<1x64xf32>
    %654 = vector.broadcast %653 : vector<1x64xf32> to vector<16x64xf32>
    %655 = arith.addf %651, %654 : vector<16x64xf32>
    %cst_253 = arith.constant 0.000000e+00 : f32
    %656 = vector.broadcast %cst_253 : f32 to vector<16x64xf32>
    %657 = arith.maximumf %655, %656 : vector<16x64xf32>
    %c1_254 = arith.constant 1 : index
    %c0_255 = arith.constant 0 : index
    %c0_256 = arith.constant 0 : index
    %658 = vector.load %arg18[%c1_254, %c0_255, %c0_256] : memref<2x64x32xf32, #tpu.memory_space<vmem>>, vector<1x64x32xf32>
    %659 = vector.shape_cast %658 : vector<1x64x32xf32> to vector<64x32xf32>
    %cst_257 = arith.constant dense<0.000000e+00> : vector<16x32xf32>
    %660 = tpu.matmul %657, %659, %cst_257 {dimension_numbers = #tpu.dot_dimension_numbers<[1], [0], [0], [1], [0, 0, 1, 1], [], []>} : vector<16x64xf32>, vector<64x32xf32>, vector<16x32xf32> -> vector<16x32xf32>
    %661 = arith.addf %626, %660 : vector<16x32xf32>
    %c1_258 = arith.constant 1 : index
    %c0_259 = arith.constant 0 : index
    %c0_260 = arith.constant 0 : index
    %662 = vector.load %arg19[%c1_258, %c0_259, %c0_260] : memref<2x1x32xf32, #tpu.memory_space<vmem>>, vector<1x1x32xf32>
    %663 = vector.shape_cast %662 : vector<1x1x32xf32> to vector<1x32xf32>
    %664 = vector.broadcast %663 : vector<1x32xf32> to vector<16x32xf32>
    %665 = arith.addf %661, %664 : vector<16x32xf32>
    %c0_261 = arith.constant 0 : index
    %c0_262 = arith.constant 0 : index
    %666 = vector.load %arg20[%c0_261, %c0_262] : memref<1x32xf32, #tpu.memory_space<vmem>>, vector<1x32xf32>
    %c0_263 = arith.constant 0 : index
    %c0_264 = arith.constant 0 : index
    %667 = vector.load %arg21[%c0_263, %c0_264] : memref<1x32xf32, #tpu.memory_space<vmem>>, vector<1x32xf32>
    %cst_265 = arith.constant dense<0.000000e+00> : vector<16xf32>
    %668 = vector.multi_reduction <add>, %665, %cst_265 [1] : vector<16x32xf32> to vector<16xf32>
    %669 = vector.shape_cast %668 : vector<16xf32> to vector<16x1xf32>
    %cst_266 = arith.constant 3.200000e+01 : f32
    %670 = vector.broadcast %cst_266 : f32 to vector<16x1xf32>
    %671 = arith.divf %669, %670 : vector<16x1xf32>
    %672 = vector.broadcast %671 : vector<16x1xf32> to vector<16x32xf32>
    %673 = arith.subf %665, %672 : vector<16x32xf32>
    %674 = arith.mulf %673, %673 : vector<16x32xf32>
    %cst_267 = arith.constant dense<0.000000e+00> : vector<16xf32>
    %675 = vector.multi_reduction <add>, %674, %cst_267 [1] : vector<16x32xf32> to vector<16xf32>
    %676 = vector.shape_cast %675 : vector<16xf32> to vector<16x1xf32>
    %cst_268 = arith.constant 0.0322580636 : f32
    %677 = vector.broadcast %cst_268 : f32 to vector<16x1xf32>
    %678 = arith.mulf %676, %677 : vector<16x1xf32>
    %679 = vector.broadcast %666 : vector<1x32xf32> to vector<16x32xf32>
    %680 = arith.mulf %679, %673 : vector<16x32xf32>
    %681 = math.sqrt %678 : vector<16x1xf32>
    %cst_269 = arith.constant 9.99999997E-7 : f32
    %682 = vector.broadcast %cst_269 : f32 to vector<16x1xf32>
    %683 = arith.addf %681, %682 : vector<16x1xf32>
    %684 = vector.broadcast %683 : vector<16x1xf32> to vector<16x32xf32>
    %685 = arith.divf %680, %684 : vector<16x32xf32>
    %686 = vector.broadcast %667 : vector<1x32xf32> to vector<16x32xf32>
    %687 = arith.addf %685, %686 : vector<16x32xf32>
    %c0_270 = arith.constant 0 : index
    %c0_271 = arith.constant 0 : index
    %688 = vector.load %arg22[%c0_270, %c0_271] : memref<16x32xf32, #tpu.memory_space<vmem>>, vector<16x32xf32>
    tpu.vector_store %arg22[%c0_270, %c0_271], %687 {strides = array<i32>} : memref<16x32xf32, #tpu.memory_space<vmem>>, vector<16x32xf32>,
    return
  }
}

</mosaic_0001>

<bundles_post_ra>
// kernel: decoder_forward.1
= control target key start
LH: loop header
LB: loop body
LE: loop exit
PB: predicated region body
PF: predicated region fallthrough
CT: control target
= control target key end

     0   :  { %s10105_s0 = inlined_call_operand.vmem [shape: f32[16,32], index: 0, kind: input, shape index: {}]   ;;  %s10106_s1 = inlined_call_operand.vmem [shape: f32[16,32], index: 1, kind: input, shape index: {}]   ;;  %s10107_s2 = inlined_call_operand.vmem [shape: f32[2,8,8], index: 2, kind: input, shape index: {}]   ;;  %s10108_s3 = inlined_call_operand.vmem [shape: f32[2,8,8], index: 3, kind: input, shape index: {}]   ;;  %s10109_s4 = inlined_call_operand.vmem [shape: f32[2,3,32], index: 4, kind: input, shape index: {}]   ;;  %s10110_s5 = inlined_call_operand.vmem [shape: f32[2,3,32], index: 5, kind: input, shape index: {}]   ;;  %s10111_s6 = inlined_call_operand.vmem [shape: f32[2,32,96], index: 6, kind: input, shape index: {}]   ;;  %s10112_s7 = inlined_call_operand.hbm [shape: f32[2,1,96], index: 7, kind: input, shape index: {}]   ;;  %s10113_s8 = inlined_call_operand.vmem [shape: f32[2,32,32], index: 8, kind: input, shape index: {}]   ;;  %s10114_s9 = inlined_call_operand.hbm [shape: f32[2,1,32], index: 9, kind: input, shape index: {}]   ;;  %s10115_s10 = inlined_call_operand.vmem [shape: f32[2,32,32], index: 10, kind: input, shape index: {}]   ;;  %s10116_s11 = inlined_call_operand.hbm [shape: f32[2,1,32], index: 11, kind: input, shape index: {}]   ;;  %s10117_s12 = inlined_call_operand.hbm [shape: f32[2,32,64], index: 12, kind: input, shape index: {}]   ;;  %s10118_s13 = inlined_call_operand.hbm [shape: f32[2,1,64], index: 13, kind: input, shape index: {}]   ;;  %s10119_s14 = inlined_call_operand.hbm [shape: f32[2,32,32], index: 14, kind: input, shape index: {}]   ;;  %s10120_s15 = inlined_call_operand.hbm [shape: f32[2,1,32], index: 15, kind: input, shape index: {}]   ;;  %s10121_s16 = inlined_call_operand.hbm [shape: f32[2,32,64], index: 16, kind: input, shape index: {}]   ;;  %s10122_s17 = inlined_call_operand.hbm [shape: f32[2,1,64], index: 17, kind: input, shape index: {}]   ;;  %s10123_s18 = inlined_call_operand.vmem [shape: f32[2,64,32], index: 18, kind: input, shape index: {}]   ;;  %s10124_s19 = inlined_call_operand.hbm [shape: f32[2,1,32], index: 19, kind: input, shape index: {}]   ;;  %s10125_s20 = inlined_call_operand.hbm [shape: f32[1,32], index: 20, kind: input, shape index: {}]   ;;  %s10126_s21 = inlined_call_operand.hbm [shape: f32[1,32], index: 21, kind: input, shape index: {}]   ;;  %s10127_s22 = inlined_call_operand.hbm [shape: f32[16,32], index: 22, kind: output, shape index: {}]  }
   0x1   :  { %10135 = sst [smem:[#allocation31_spill]] %s10105_s0 }
   0x2   :  { %10136 = sst [smem:[#allocation32_spill]] %s10106_s1 }
   0x3   :  { %10137 = sst [smem:[#allocation33_spill]] %s10107_s2 }
   0x4   :  { %10138 = sst [smem:[#allocation34_spill]] %s10108_s3 }
   0x5   :  { %10139 = sst [smem:[#allocation35_spill]] %s10109_s4 }
   0x6   :  { %10140 = sst [smem:[#allocation36_spill]] %s10110_s5 }
   0x7   :  { %10141 = sst [smem:[#allocation37_spill]] %s10111_s6 }
   0x8   :  { %27 = vsyncpa [#allocation3], 0 }
   0x9   :  { %28 = vsyncpa [#allocation6], 0 }
   0xa   :  { %29 = vsyncpa [#allocation9], 0 }
   0xb   :  { %30 = vsyncpa [#allocation12], 0 }
   0xc   :  { %31 = vsyncpa [#allocation15], 0 }
   0xd   :  { %32 = vsyncpa [#allocation18], 0 }
   0xe   :  { %33 = vsyncpa [#allocation21], 0 }
   0xf   :  { %34 = vsyncpa [#allocation4], 0  ;;  %s8803_s3 = smov [#allocation5]   ;;  %s8804_s29 = smov [#allocation8]  }
  0x10   :  { %s68_s28 = sshll.u32 %s8803_s3, 4  ;;  %s94_s30 = sshll.u32 %s8804_s29, 4  ;;  %s69_s28 = int_to_ptr.vmem [resolvable:$true] %s68_s28  ;;  %s95_s30 = int_to_ptr.vmem [resolvable:$true] %s94_s30 }
  0x11   :  { %s8535_s4 = scalar_lea.vmem %s69_s28, 32  ;;  %p8540_p1 = scmp.lt.s32.totalorder %s69_s28, %s69_s28 }
  0x12   :  { %p8536_p0 = scmp.ne.s32.totalorder %s69_s28, %s8535_s4  ;;  %p8541_p2 = scmp.lt.s32.totalorder %s8535_s4, %s8535_s4 }
  0x14   :  { %p8542_p3 = por %p8541_p2, %p8540_p1 }
  0x16   :  { %p8543_p4 = pnand %p8542_p3, %p8536_p0 }
  0x18   :  { %8546 = shalt.err (!%p8543_p4)
}
  0x19   :  { %s8805_s0 = smov 16   ;;  %s8806_s23 = smov 1  }
  0x1a   :  { %74 = dma.hbm_to_vmem [thread:$0]  %s10114_s9, 32, %s69_s28, [#allocation6], %s8805_s0, %s8805_s0, %s8806_s23  }
  0x1b   :  { %s8555_s24 = scalar_lea.vmem %s95_s30, 1024  ;;  %p8560_p6 = scmp.lt.s32.totalorder %s95_s30, %s95_s30 }
  0x1c   :  { %p8556_p5 = scmp.ne.s32.totalorder %s95_s30, %s8555_s24  ;;  %p8561_p7 = scmp.lt.s32.totalorder %s8555_s24, %s8555_s24 }
  0x1e   :  { %p8562_p8 = por %p8561_p7, %p8560_p6 }
  0x20   :  { %p8563_p9 = pnand %p8562_p8, %p8556_p5 }
  0x22   :  { %8566 = shalt.err (!%p8563_p9)
}
  0x23   :  { %s8807_s6 = smov 128   ;;  %s8808_s25 = smov 8  }
  0x24   :  { %100 = dma.hbm_to_vmem [thread:$0]  %s10117_s12, 1024, %s95_s30, [#allocation9], %s8807_s6, %s8807_s6, %s8808_s25  }
  0x25   :  { %s8809_s27 = smov [#allocation11]   ;;  %s8810_s29 = smov [#allocation14]  }
  0x26   :  { %s118_s3 = sshll.u32 %s8809_s27, 4  ;;  %s142_s9 = sshll.u32 %s8810_s29, 4  ;;  %s119_s3 = int_to_ptr.vmem [resolvable:$true] %s118_s3  ;;  %s143_s9 = int_to_ptr.vmem [resolvable:$true] %s142_s9 }
  0x27   :  { %s8575_s28 = scalar_lea.vmem %s119_s3, 1024  ;;  %p8580_p11 = scmp.lt.s32.totalorder %s119_s3, %s119_s3 }
  0x28   :  { %p8576_p10 = scmp.ne.s32.totalorder %s119_s3, %s8575_s28  ;;  %p8581_p12 = scmp.lt.s32.totalorder %s8575_s28, %s8575_s28 }
  0x2a   :  { %p8582_p13 = por %p8581_p12, %p8580_p11 }
  0x2c   :  { %p8583_p0 = pnand %p8582_p13, %p8576_p10 }
  0x2e   :  { %8586 = shalt.err (!%p8583_p0)
}
  0x2f   :  { %124 = dma.hbm_to_vmem [thread:$0]  %s10119_s14, 1024, %s119_s3, [#allocation12], %s8807_s6, %s8807_s6, %s8808_s25  }
  0x30   :  { %s8595_s12 = scalar_lea.vmem %s143_s9, 1024  ;;  %p8600_p2 = scmp.lt.s32.totalorder %s143_s9, %s143_s9 }
  0x31   :  { %p8596_p1 = scmp.ne.s32.totalorder %s143_s9, %s8595_s12  ;;  %p8601_p3 = scmp.lt.s32.totalorder %s8595_s12, %s8595_s12 }
  0x33   :  { %p8602_p4 = por %p8601_p3, %p8600_p2 }
  0x35   :  { %p8603_p5 = pnand %p8602_p4, %p8596_p1 }
  0x37   :  { %8606 = shalt.err (!%p8603_p5)
}
  0x38   :  { %148 = dma.hbm_to_vmem [thread:$0]  %s10121_s16, 1024, %s143_s9, [#allocation15], %s8807_s6, %s8807_s6, %s8808_s25  }
  0x39   :  { %s8811_s24 = smov [#allocation17]   ;;  %s8812_s2 = smov [#allocation2]  }
  0x3a   :  { %s168_s26 = sshll.u32 %s8811_s24, 4  ;;  %s54_s27 = sshll.u32 %s8812_s2, 4  ;;  %s169_s26 = int_to_ptr.vmem [resolvable:$true] %s168_s26  ;;  %s55_s27 = int_to_ptr.vmem [resolvable:$true] %s54_s27 }
  0x3b   :  { %s8615_s14 = scalar_lea.vmem %s169_s26, 32  ;;  %p8620_p7 = scmp.lt.s32.totalorder %s169_s26, %s169_s26 }
  0x3c   :  { %p8616_p6 = scmp.ne.s32.totalorder %s169_s26, %s8615_s14  ;;  %p8621_p8 = scmp.lt.s32.totalorder %s8615_s14, %s8615_s14 }
  0x3e   :  { %p8622_p9 = por %p8621_p8, %p8620_p7 }
  0x40   :  { %p8623_p10 = pnand %p8622_p9, %p8616_p6 }
  0x42   :  { %8626 = shalt.err (!%p8623_p10)
}
  0x43   :  { %174 = dma.hbm_to_vmem [thread:$0]  %s10124_s19, 32, %s169_s26, [#allocation18], %s8805_s0, %s8805_s0, %s8806_s23  }
  0x44   :  { %s8635_s16 = scalar_lea.vmem %s55_s27, 32  ;;  %p8640_p12 = scmp.lt.s32.totalorder %s55_s27, %s55_s27 }
  0x45   :  { %p8636_p11 = scmp.ne.s32.totalorder %s55_s27, %s8635_s16  ;;  %p8641_p13 = scmp.lt.s32.totalorder %s8635_s16, %s8635_s16 }
  0x47   :  { %p8642_p0 = por %p8641_p13, %p8640_p12 }
  0x49   :  { %p8643_p1 = pnand %p8642_p0, %p8636_p11 }
  0x4b   :  { %8646 = shalt.err (!%p8643_p1)
}
  0x4c   :  { %60 = dma.hbm_to_vmem [thread:$0]  %s10112_s7, 32, %s55_s27, [#allocation3], %s8805_s0, %s8805_s0, %s8806_s23  }
  0x4d   :  { %s8813_s4 = smov [#allocation7]   ;;  %s8814_s12 = smov [#allocation10]  }
  0x4e   :  { %s82_s1 = sshll.u32 %s8813_s4, 4  ;;  %s106_s30 = sshll.u32 %s8814_s12, 4  ;;  %s83_s1 = int_to_ptr.vmem [resolvable:$true] %s82_s1  ;;  %s107_s30 = int_to_ptr.vmem [resolvable:$true] %s106_s30 }
  0x4f   :  { %s8655_s19 = scalar_lea.vmem %s83_s1, 32  ;;  %p8660_p3 = scmp.lt.s32.totalorder %s83_s1, %s83_s1 }
  0x50   :  { %p8656_p2 = scmp.ne.s32.totalorder %s83_s1, %s8655_s19  ;;  %p8661_p4 = scmp.lt.s32.totalorder %s8655_s19, %s8655_s19 }
  0x52   :  { %p8662_p5 = por %p8661_p4, %p8660_p3 }
  0x54   :  { %p8663_p6 = pnand %p8662_p5, %p8656_p2 }
  0x56   :  { %8666 = shalt.err (!%p8663_p6)
}
  0x57   :  { %88 = dma.hbm_to_vmem [thread:$0]  %s10116_s11, 32, %s83_s1, [#allocation6], %s8805_s0, %s8805_s0, %s8806_s23  }
  0x58   :  { %s8675_s7 = scalar_lea.vmem %s107_s30, 32  ;;  %p8680_p8 = scmp.lt.s32.totalorder %s107_s30, %s107_s30 }
  0x59   :  { %p8676_p7 = scmp.ne.s32.totalorder %s107_s30, %s8675_s7  ;;  %p8681_p9 = scmp.lt.s32.totalorder %s8675_s7, %s8675_s7 }
  0x5b   :  { %p8682_p10 = por %p8681_p9, %p8680_p8 }
  0x5d   :  { %p8683_p11 = pnand %p8682_p10, %p8676_p7 }
  0x5f   :  { %8686 = shalt.err (!%p8683_p11)
}
  0x60   :  { %112 = dma.hbm_to_vmem [thread:$0]  %s10118_s13, 32, %s107_s30, [#allocation9], %s8805_s0, %s8805_s0, %s8806_s23  }
  0x61   :  { %s8815_s27 = smov [#allocation13]   ;;  %s8816_s3 = smov [#allocation16]  }
  0x62   :  { %s130_s14 = sshll.u32 %s8815_s27, 4  ;;  %s154_s29 = sshll.u32 %s8816_s3, 4  ;;  %s131_s14 = int_to_ptr.vmem [resolvable:$true] %s130_s14  ;;  %s155_s29 = int_to_ptr.vmem [resolvable:$true] %s154_s29 }
  0x63   :  { %s8695_s11 = scalar_lea.vmem %s131_s14, 32  ;;  %p8700_p13 = scmp.lt.s32.totalorder %s131_s14, %s131_s14 }
  0x64   :  { %p8696_p12 = scmp.ne.s32.totalorder %s131_s14, %s8695_s11  ;;  %p8701_p0 = scmp.lt.s32.totalorder %s8695_s11, %s8695_s11 }
  0x66   :  { %p8702_p1 = por %p8701_p0, %p8700_p13 }
  0x68   :  { %p8703_p2 = pnand %p8702_p1, %p8696_p12 }
  0x6a   :  { %8706 = shalt.err (!%p8703_p2)
}
  0x6b   :  { %136 = dma.hbm_to_vmem [thread:$0]  %s10120_s15, 32, %s131_s14, [#allocation12], %s8805_s0, %s8805_s0, %s8806_s23  }
  0x6c   :  { %s8715_s13 = scalar_lea.vmem %s155_s29, 32  ;;  %p8720_p4 = scmp.lt.s32.totalorder %s155_s29, %s155_s29 }
  0x6d   :  { %p8716_p3 = scmp.ne.s32.totalorder %s155_s29, %s8715_s13  ;;  %p8721_p5 = scmp.lt.s32.totalorder %s8715_s13, %s8715_s13 }
  0x6f   :  { %p8722_p6 = por %p8721_p5, %p8720_p4 }
  0x71   :  { %p8723_p7 = pnand %p8722_p6, %p8716_p3 }
  0x73   :  { %8726 = shalt.err (!%p8723_p7)
}
  0x74   :  { %160 = dma.hbm_to_vmem [thread:$0]  %s10122_s17, 32, %s155_s29, [#allocation15], %s8805_s0, %s8805_s0, %s8806_s23  }
  0x75   :  { %s8817_s1 = smov [#allocation19]   ;;  %s8818_s30 = smov [#allocation20]  }
  0x76   :  { %s181_s12 = sshll.u32 %s8817_s1, 4  ;;  %s191_s19 = sshll.u32 %s8818_s30, 4  ;;  %s182_s12 = int_to_ptr.vmem [resolvable:$true] %s181_s12  ;;  %s192_s19 = int_to_ptr.vmem [resolvable:$true] %s191_s19 }
  0x77   :  { %s8735_s15 = scalar_lea.vmem %s182_s12, 16  ;;  %s8739_s5 = scalar_lea.vmem %s182_s12, 32 }
  0x78   :  { %p8736_p8 = scmp.ne.s32.totalorder %s182_s12, %s8735_s15  ;;  %p8740_p9 = scmp.lt.s32.totalorder %s182_s12, %s182_s12 }
  0x79   :  { %p8741_p10 = scmp.lt.s32.totalorder %s8739_s5, %s8735_s15 }
  0x7b   :  { %p8742_p11 = por %p8741_p10, %p8740_p9 }
  0x7d   :  { %p8743_p12 = pnand %p8742_p11, %p8736_p8 }
  0x7f   :  { %8746 = shalt.err (!%p8743_p12)
}
  0x80   :  { %184 = dma.hbm_to_vmem [thread:$0]  %s10125_s20, 16, %s182_s12, [#allocation18]  }
  0x81   :  { %s8755_s26 = scalar_lea.vmem %s192_s19, 16  ;;  %s8759_s17 = scalar_lea.vmem %s192_s19, 32 }
  0x82   :  { %p8756_p13 = scmp.ne.s32.totalorder %s192_s19, %s8755_s26  ;;  %p8760_p0 = scmp.lt.s32.totalorder %s192_s19, %s192_s19 }
  0x83   :  { %p8761_p1 = scmp.lt.s32.totalorder %s8759_s17, %s8755_s26 }
  0x85   :  { %p8762_p2 = por %p8761_p1, %p8760_p0 }
  0x87   :  { %p8763_p3 = pnand %p8762_p2, %p8756_p13 }
  0x89   :  { %8766 = shalt.err (!%p8763_p3)
}
  0x8a   :  { %194 = dma.hbm_to_vmem [thread:$0]  %s10126_s21, 16, %s192_s19, [#allocation21]  }
  0x8b   :  { %8787 = dma.done.wait [#allocation3], 32  }
  0x8c   :  { %8788 = vsyncadd [#allocation3], 4294967264 }
  0x8d   :  { %8789 = dma.done.wait [#allocation6], 64  }
  0x8e   :  { %8790 = vsyncadd [#allocation6], 4294967232 }
  0x8f   :  { %8791 = dma.done.wait [#allocation9], 1056  }
  0x90   :  { %8792 = vsyncadd [#allocation9], 4294966240 }
  0x91   :  { %8793 = dma.done.wait [#allocation12], 1056  }
  0x92   :  { %8794 = vsyncadd [#allocation12], 4294966240 }
  0x93   :  { %8795 = dma.done.wait [#allocation15], 1056  }
  0x94   :  { %8796 = vsyncadd [#allocation15], 4294966240 }
  0x95   :  { %8797 = dma.done.wait [#allocation18], 48  }
  0x96   :  { %8798 = vsyncadd [#allocation18], 4294967248 }
  0x97   :  { %8799 = dma.done.wait [#allocation21], 16  }
  0x98   :  { %8800 = vsyncadd [#allocation21], 4294967280  ;;  %vm241_vm0 = vcmask 261120   ;;  %s10142_s14 = sld [smem:[#allocation31_spill]]  ;;  %v263_v25 = vlaneseq  ;;  %v8819_v49 = vmov 0.0   ;;  %vm8820_vm5 = vmmov 0  }
  0x99   :  { %s10143_s16 = sld [smem:[#allocation37_spill]]  ;;  %7837 = vmatprep.subr.mxu0 %v8819_v49  ;;  %7839 = vmatprep.mubr.msk.f32.mxu0 %vm8820_vm5, %v8819_v49  ;;  %v7434_v50 = vld [vmem:[#allocation2] ss:$0 sm:$0xff]  ;;  %s8821_s26 = smov 96   ;;  %vm390_vm6 = vcmask 64512   ;;  %vm1753_vm9 = vcmask 195584  }
  0x9a   :  { %v9045_v32 = vshrl.u32 %v263_v25, 7  ;;  %s10144_s15 = sld [smem:[#allocation35_spill]]  ;;  %s8823_s21 = smov 88   ;;  %vm1750_vm10 = vcmask 130048  }
  0x9b   :  { %s10145_s7 = sld [smem:[#allocation36_spill]]  ;;  %s8824_s3 = smov 120  }
  0x9c   :  { %v9048_v36 = vsub.s32 0, %v9045_v32  ;;  %s10146_s2 = sld [smem:[#allocation33_spill]]  ;;  %s8825_s29 = smov 56  }
  0x9d   :  { %s8826_s11 = smov 80   ;;  %s8827_s9 = smov 112  }
  0x9e   :  { %v9018_v0 = vld [vmem:[%s10142_s14] sm:$0xff]  ;;  %v9023_v1 = vld [vmem:[%s10142_s14 + $0x8] sm:$0xff]  ;;  %s8822_s14 = smov 64   ;;  %s8828_s13 = smov 48  }
  0x9f   :  { %v242_v2 = vsel %vm241_vm0, %v9018_v0, 0.0  ;;  %v245_v3 = vsel %vm241_vm0, %v9023_v1, 0.0  ;;  %v298_v14 = vld [vmem:[%s10143_s16 + $0x18] sm:$0xff]  ;;  %v297_v15 = vld [vmem:[%s10143_s16 + $0x10] sm:$0xff]  ;;  %v296_v16 = vld [vmem:[%s10143_s16 + $0x8] sm:$0xff]  ;;  %s8829_s28 = smov 72  }
  0xa0   :  { %243 = vadd.xlane.f32.xlu0 %v242_v2  ;;  %7816 = vmatprep.subr.mxu1 %v298_v14  ;;  %v295_v17 = vld [vmem:[%s10143_s16] sm:$0xff]  ;;  %s8830_s4 = smov 104   ;;  %s8831_s1 = smov 40  }
  0xa1   :  { %7817 = vmatpush3.msra.mxu1 %v298_v14  ;;  %v9053_v37 = vld [vmem:[%s10144_s15] sm:$0x7]  ;;  %s8832_s20 = smov 24   ;;  %s10147_s17 = sld [smem:[#allocation32_spill]] }
  0xa2   :  { %7818 = vmatprep.subr.mxu1 %v297_v15  ;;  %v266_v38 = vrot.slane %v9053_v37, %v9048_v36  ;;  %v9060_v39 = vld [vmem:[%s10145_s7] sm:$0x7]  ;;  %v9101_v60 = vld [vmem:[%s10146_s2 + $0x8] sm:$0xff]  ;;  %s10148_s23 = sld [smem:[#allocation34_spill]] }
  0xa3   :  { %7819 = vmatpush3.msra.mxu1 %v297_v15  ;;  %v292_v41 = vrot.slane %v9060_v39, %v9048_v36  ;;  %v9095_v57 = vld [vmem:[%s10146_s2] sm:$0xff]  ;;  %vm545_vm8 = vcmp.eq.f32.partialorder %v9101_v60, 0.0 }
  0xa4   :  { %246 = vadd.xlane.f32.xlu0 %v245_v3  ;;  %7820 = vmatprep.subr.mxu1 %v296_v16  ;;  %vm544_vm7 = vcmp.eq.f32.partialorder %v9095_v57, 0.0 }
  0xa5   :  { %7821 = vmatpush3.msra.mxu1 %v296_v16 }
  0xa6   :  { %7822 = vmatprep.subr.mxu1 %v295_v17 }
  0xa7   :  { %7823 = vmatpush3.msra.mxu1 %v295_v17 }
  0xa8   :  { %7827 = vmatprep.subr.mxu1 %v8819_v49 }
 0x129   :  { %v244_v4 = vpop.xlane.xlu0 %243 }
 0x12a   :  { %v249_v5 = vmul.f32 0.03125, %v244_v4 }
 0x12c   :  { %v251_v6 = vsub.f32 %v9018_v0, %v249_v5 }
 0x12d   :  { %v247_v7 = vpop.xlane.xlu0 %246 }
 0x12e   :  { %v250_v8 = vmul.f32 0.03125, %v247_v7  ;;  %v253_v9 = vmul.f32 %v251_v6, %v251_v6  ;;  %v267_v40 = vmul.f32 %v266_v38, %v251_v6 }
 0x130   :  { %v252_v10 = vsub.f32 %v9023_v1, %v250_v8  ;;  %v255_v11 = vsel %vm241_vm0, %v253_v9, 0.0 }
 0x131   :  { %256 = vadd.xlane.f32.xlu1 %v255_v11 }
 0x132   :  { %v254_v12 = vmul.f32 %v252_v10, %v252_v10  ;;  %v268_v44 = vmul.f32 %v266_v38, %v252_v10 }
 0x134   :  { %v258_v13 = vsel %vm241_vm0, %v254_v12, 0.0 }
 0x135   :  { %259 = vadd.xlane.f32.xlu1 %v258_v13 }
 0x1ba   :  { %v257_v18 = vpop.xlane.xlu1 %256 }
 0x1bb   :  { %v261_v19 = vmul.f32 0.032258064, %v257_v18 }
 0x1bd   :  { %8337 = vrsqrt.f32 %v261_v19  ;;  %vm271_vm1 = vcmp.eq.f32.partialorder %v261_v19, inf  ;;  %v274_v24 = vand.u32 2147483648, %v261_v19  ;;  %vm273_vm2 = vcmp.eq.f32.partialorder %v261_v19, 0.0 }
 0x1be   :  { %v260_v20 = vpop.xlane.xlu1 %259 }
 0x1bf   :  { %v262_v21 = vmul.f32 0.032258064, %v260_v20 }
 0x1c1   :  { %8339 = vrsqrt.f32 %v262_v21  ;;  %vm278_vm3 = vcmp.eq.f32.partialorder %v262_v21, inf  ;;  %v281_v31 = vand.u32 2147483648, %v262_v21  ;;  %vm280_vm4 = vcmp.eq.f32.partialorder %v262_v21, 0.0 }
 0x1ca   :  { %v8338_v22 = vpop.eup %8337 }
 0x1cb   :  { %v270_v23 = vmul.f32 %v8338_v22, %v261_v19 }
 0x1cd   :  { %v272_v26 = vsel %vm271_vm1, %v261_v19, %v270_v23 }
 0x1ce   :  { %v8340_v27 = vpop.eup %8339  ;;  %v275_v28 = vsel %vm273_vm2, %v274_v24, %v272_v26 }
 0x1cf   :  { %v277_v29 = vmul.f32 %v8340_v27, %v262_v21  ;;  %v283_v30 = vadd.f32 1e-06, %v275_v28 }
 0x1d1   :  { %v279_v33 = vsel %vm278_vm3, %v262_v21, %v277_v29  ;;  %8341 = vrcp.f32 %v283_v30 }
 0x1d2   :  { %v282_v34 = vsel %vm280_vm4, %v281_v31, %v279_v33 }
 0x1d3   :  { %v284_v35 = vadd.f32 1e-06, %v282_v34 }
 0x1d5   :  { %8343 = vrcp.f32 %v284_v35 }
 0x1de   :  { %v8342_v42 = vpop.eup %8341 }
 0x1df   :  { %v286_v43 = vmul.f32 %v8342_v42, %v267_v40 }
 0x1e1   :  { %v293_v45 = vadd.f32 %v292_v41, %v286_v43 }
 0x1e2   :  { %v8344_v46 = vpop.eup %8343 }
 0x1e3   :  { %v288_v47 = vmul.f32 %v8344_v46, %v268_v44  ;;  %7824 = vmatprep.mubr.msk.f32.mxu1 %vm241_vm0, %v293_v45 }
 0x1e5   :  { %v294_v48 = vadd.f32 %v292_v41, %v288_v47 }
 0x1e7   :  { %7825 = vmatmul.mubr.msk.f32.vlgmr.msra.gmra.mxu1 %vm241_vm0, %v294_v48 }
 0x1e8   :  { %7829 = vmatprep.mubr.msk.f32.mxu1 %vm8820_vm5, %v8819_v49 }
 0x2a7   :  { %v7826_v51 = vpop.f32.mrf.mxu1 }
 0x2a8   :  { %v9072_v52 = vadd.f32 %v7826_v51, %v7434_v50 }
 0x2a9   :  { %v378_v53 = vpop.f32.mrf.mxu1 }
 0x2aa   :  { %v9074_v54 = vadd.f32 %v7434_v50, %v378_v53  ;;  %466 = vrot.lane.b32.xlu1 %v9072_v52, %s8821_s26 }
 0x2ac   :  { %388 = vrot.lane.b32.xlu0 %v9074_v54, %s8821_s26 }
 0x31c   :  { %v467_v56 = vpop.permute.xlu1 %466 }
 0x31e   :  { %v389_v55 = vpop.permute.xlu0 %388 }
 0x31f   :  { %7828 = vmatpush3.xpose.msk.msra.mxu1 %vm390_vm6, %v389_v55 }
 0x320   :  { %7832 = vmatprep.subr.mxu1 %v8819_v49 }
 0x322   :  { %7830 = vmatmul.mubr.msk.f32.vlgmr.msra.gmra.mxu1 %vm390_vm6, %v9074_v54 }
 0x323   :  { %7833 = vmatpush3.xpose.msk.msra.mxu1 %vm390_vm6, %v467_v56  ;;  %7834 = vmatprep.mubr.msk.f32.mxu1 %vm8820_vm5, %v8819_v49 }
 0x324   :  { %7842 = vmatprep.subr.mxu1 %v8819_v49 }
 0x326   :  { %7835 = vmatmul.mubr.msk.f32.vlgmr.msra.gmra.mxu1 %vm390_vm6, %v9072_v52 }
 0x327   :  { %7844 = vmatprep.mubr.msk.f32.mxu1 %vm8820_vm5, %v8819_v49 }
 0x3e2   :  { %v461_v58 = vpop.f32.mrf.mxu1 }
 0x3e3   :  { %v542_v59 = vmul.f32 0.35355338, %v461_v58 }
 0x3e4   :  { %v7831_v61 = vpop.f32.mrf.mxu1 }
 0x3e5   :  { %v546_v62 = vsel %vm544_vm7, -1e+09, %v542_v59 }
 0x3e6   :  { %v538_v63 = vpop.f32.mrf.mxu1  ;;  %v548_v2 = vsel %vm390_vm6, %v546_v62, -inf }
 0x3e7   :  { %v543_v3 = vmul.f32 0.35355338, %v538_v63  ;;  %549 = vmax.xlane.f32.xlu1 %v548_v2 }
 0x3e8   :  { %v7836_v4 = vpop.f32.mrf.mxu1 }
 0x3e9   :  { %v547_v5 = vsel %vm545_vm8, -1e+09, %v543_v3 }
 0x3ea   :  { %v551_v6 = vsel %vm390_vm6, %v547_v5, -inf }
 0x3eb   :  { %552 = vmax.xlane.f32.xlu0 %v551_v6 }
 0x3f8   :  { %646 = vrot.lane.b32.xlu1 %v9072_v52, %s8822_s14 }
 0x3fc   :  { %724 = vrot.lane.b32.xlu1 %v9074_v54, %s8823_s21 }
 0x400   :  { %802 = vrot.lane.b32.xlu1 %v9072_v52, %s8823_s21 }
 0x470   :  { %v550_v7 = vpop.xlane.xlu1 %549 }
 0x471   :  { %v554_v8 = vsub.f32 %v546_v62, %v550_v7 }
 0x473   :  { %v556_v9 = vmul.f32 1.442695, %v554_v8 }
 0x474   :  { %v647_v10 = vpop.permute.xlu1 %646  ;;  %v553_v11 = vpop.xlane.xlu0 %552 }
 0x475   :  { %8345 = vpow2.f32 %v556_v9  ;;  %v555_v12 = vsub.f32 %v547_v5, %v553_v11  ;;  %7843 = vmatpush3.msra.mxu1 %v647_v10 }
 0x476   :  { %7852 = vmatprep.subr.mxu1 %v8819_v49 }
 0x477   :  { %v558_v13 = vmul.f32 1.442695, %v555_v12 }
 0x478   :  { %v725_v18 = vpop.permute.xlu1 %724 }
 0x479   :  { %8347 = vpow2.f32 %v558_v13 }
 0x47c   :  { %v803_v19 = vpop.permute.xlu1 %802 }
 0x482   :  { %v8346_v14 = vpop.eup %8345 }
 0x483   :  { %v560_v15 = vsel %vm390_vm6, %v8346_v14, 0.0 }
 0x484   :  { %561 = vadd.xlane.f32.xlu0 %v560_v15 }
 0x486   :  { %v8348_v16 = vpop.eup %8347 }
 0x487   :  { %v563_v17 = vsel %vm390_vm6, %v8348_v16, 0.0 }
 0x488   :  { %564 = vadd.xlane.f32.xlu1 %v563_v17 }
 0x499   :  { %800 = vrot.lane.b32.xlu1 %v9072_v52, %s8824_s3 }
 0x49a   :  { %570 = vrot.lane.b32.xlu0 %v9074_v54, %s8822_s14 }
 0x49e   :  { %722 = vrot.lane.b32.xlu0 %v9074_v54, %s8824_s3 }
 0x50d   :  { %v562_v20 = vpop.xlane.xlu0 %561 }
 0x50e   :  { %8349 = vrcp.f32 %v562_v20 }
 0x511   :  { %v565_v21 = vpop.xlane.xlu1 %564  ;;  %v571_v22 = vpop.permute.xlu0 %570 }
 0x512   :  { %8351 = vrcp.f32 %v565_v21  ;;  %7838 = vmatpush3.msra.mxu0 %v571_v22 }
 0x513   :  { %7847 = vmatprep.subr.mxu0 %v8819_v49 }
 0x515   :  { %v723_v27 = vpop.permute.xlu0 %722  ;;  %v801_v28 = vpop.permute.xlu1 %800 }
 0x51b   :  { %v8350_v23 = vpop.eup %8349 }
 0x51c   :  { %v568_v24 = vmul.f32 %v8350_v23, %v8346_v14 }
 0x51e   :  { %7840 = vmatmul.mubr.msk.f32.vlgmr.msra.gmra.mxu0 %vm390_vm6, %v568_v24 }
 0x51f   :  { %v8352_v25 = vpop.eup %8351  ;;  %7848 = vmatpush3.xpose.msk.msra.mxu0 %vm390_vm6, %v725_v18  ;;  %7849 = vmatprep.mubr.msk.f32.mxu0 %vm8820_vm5, %v8819_v49 }
 0x520   :  { %v569_v26 = vmul.f32 %v8352_v25, %v8348_v16  ;;  %7857 = vmatprep.subr.mxu0 %v8819_v49 }
 0x522   :  { %7845 = vmatmul.mubr.msk.f32.vlgmr.msra.gmra.mxu1 %vm390_vm6, %v569_v26  ;;  %7850 = vmatmul.mubr.msk.f32.vlgmr.msra.gmra.mxu0 %vm390_vm6, %v723_v27 }
 0x523   :  { %7853 = vmatpush3.xpose.msk.msra.mxu1 %vm390_vm6, %v803_v19  ;;  %7854 = vmatprep.mubr.msk.f32.mxu1 %vm8820_vm5, %v8819_v49 }
 0x524   :  { %7862 = vmatprep.subr.mxu1 %v8819_v49  ;;  %7859 = vmatprep.mubr.msk.f32.mxu0 %vm8820_vm5, %v8819_v49 }
 0x526   :  { %7855 = vmatmul.mubr.msk.f32.vlgmr.msra.gmra.mxu1 %vm390_vm6, %v801_v28 }
 0x527   :  { %7864 = vmatprep.mubr.msk.f32.mxu1 %vm8820_vm5, %v8819_v49 }
 0x5de   :  { %v9142_v29 = vpop.f32.mrf.mxu0 }
 0x5e0   :  { %v7841_v30 = vpop.f32.mrf.mxu0 }
 0x5e2   :  { %v9144_v31 = vpop.f32.mrf.mxu1  ;;  %v796_v33 = vpop.f32.mrf.mxu0 }
 0x5e3   :  { %v878_v34 = vmul.f32 0.35355338, %v796_v33 }
 0x5e4   :  { %v7846_v35 = vpop.f32.mrf.mxu1  ;;  %v7851_v38 = vpop.f32.mrf.mxu0 }
 0x5e5   :  { %v880_v40 = vsel %vm544_vm7, -1e+09, %v878_v34 }
 0x5e6   :  { %v874_v41 = vpop.f32.mrf.mxu1  ;;  %v882_v42 = vsel %vm390_vm6, %v880_v40, -inf }
 0x5e7   :  { %v879_v43 = vmul.f32 0.35355338, %v874_v41  ;;  %883 = vmax.xlane.f32.xlu0 %v882_v42 }
 0x5e8   :  { %v7856_v44 = vpop.f32.mrf.mxu1 }
 0x5e9   :  { %v881_v45 = vsel %vm545_vm8, -1e+09, %v879_v43 }
 0x5ea   :  { %v885_v46 = vsel %vm390_vm6, %v881_v45, -inf }
 0x5eb   :  { %886 = vmax.xlane.f32.xlu1 %v885_v46 }
 0x5fc   :  { %980 = vrot.lane.b32.xlu1 %v9072_v52, %s8825_s29 }
 0x5fd   :  { %904 = vrot.lane.b32.xlu0 %v9074_v54, %s8825_s29 }
 0x600   :  { %1058 = vrot.lane.b32.xlu1 %v9074_v54, %s8826_s11 }
 0x604   :  { %1136 = vrot.lane.b32.xlu1 %v9072_v52, %s8826_s11 }
 0x608   :  { %1134 = vrot.lane.b32.xlu1 %v9072_v52, %s8827_s9 }
 0x670   :  { %v884_v47 = vpop.xlane.xlu0 %883 }
 0x671   :  { %v888_v48 = vsub.f32 %v880_v40, %v884_v47 }
 0x673   :  { %v890_v50 = vmul.f32 1.442695, %v888_v48 }
 0x674   :  { %v905_v51 = vpop.permute.xlu0 %904  ;;  %v887_v53 = vpop.xlane.xlu1 %886 }
 0x675   :  { %8353 = vpow2.f32 %v890_v50  ;;  %v889_v55 = vsub.f32 %v881_v45, %v887_v53  ;;  %7858 = vmatpush3.msra.mxu0 %v905_v51 }
 0x676   :  { %7867 = vmatprep.subr.mxu0 %v8819_v49 }
 0x677   :  { %v892_v56 = vmul.f32 1.442695, %v889_v55 }
 0x678   :  { %v981_v58 = vpop.permute.xlu1 %980 }
 0x679   :  { %8355 = vpow2.f32 %v892_v56  ;;  %7863 = vmatpush3.msra.mxu1 %v981_v58 }
 0x67a   :  { %7872 = vmatprep.subr.mxu1 %v8819_v49 }
 0x67c   :  { %v1059_v4 = vpop.permute.xlu1 %1058 }
 0x680   :  { %v1137_v8 = vpop.permute.xlu1 %1136 }
 0x682   :  { %v8354_v59 = vpop.eup %8353 }
 0x683   :  { %v894_v61 = vsel %vm390_vm6, %v8354_v59, 0.0 }
 0x684   :  { %895 = vadd.xlane.f32.xlu0 %v894_v61  ;;  %v1135_v11 = vpop.permute.xlu1 %1134 }
 0x686   :  { %v8356_v62 = vpop.eup %8355 }
 0x687   :  { %v897_v63 = vsel %vm390_vm6, %v8356_v62, 0.0 }
 0x688   :  { %898 = vadd.xlane.f32.xlu0 %v897_v63 }
 0x69e   :  { %1056 = vrot.lane.b32.xlu0 %v9074_v54, %s8827_s9 }
 0x70d   :  { %v896_v2 = vpop.xlane.xlu0 %895 }
 0x70e   :  { %8357 = vrcp.f32 %v896_v2 }
 0x711   :  { %v899_v3 = vpop.xlane.xlu0 %898 }
 0x712   :  { %8359 = vrcp.f32 %v899_v3 }
 0x715   :  { %v1057_v10 = vpop.permute.xlu0 %1056 }
 0x71b   :  { %v8358_v5 = vpop.eup %8357 }
 0x71c   :  { %v902_v6 = vmul.f32 %v8358_v5, %v8354_v59 }
 0x71e   :  { %7860 = vmatmul.mubr.msk.f32.vlgmr.msra.gmra.mxu0 %vm390_vm6, %v902_v6 }
 0x71f   :  { %v8360_v7 = vpop.eup %8359  ;;  %7868 = vmatpush3.xpose.msk.msra.mxu0 %vm390_vm6, %v1059_v4  ;;  %7869 = vmatprep.mubr.msk.f32.mxu0 %vm8820_vm5, %v8819_v49 }
 0x720   :  { %v903_v9 = vmul.f32 %v8360_v7, %v8356_v62  ;;  %7877 = vmatprep.subr.mxu0 %v8819_v49 }
 0x722   :  { %7865 = vmatmul.mubr.msk.f32.vlgmr.msra.gmra.mxu1 %vm390_vm6, %v903_v9  ;;  %7870 = vmatmul.mubr.msk.f32.vlgmr.msra.gmra.mxu0 %vm390_vm6, %v1057_v10 }
 0x723   :  { %7873 = vmatpush3.xpose.msk.msra.mxu1 %vm390_vm6, %v1137_v8  ;;  %7874 = vmatprep.mubr.msk.f32.mxu1 %vm8820_vm5, %v8819_v49 }
 0x724   :  { %7882 = vmatprep.subr.mxu1 %v8819_v49  ;;  %7879 = vmatprep.mubr.msk.f32.mxu0 %vm8820_vm5, %v8819_v49 }
 0x726   :  { %7875 = vmatmul.mubr.msk.f32.vlgmr.msra.gmra.mxu1 %vm390_vm6, %v1135_v11 }
 0x727   :  { %7884 = vmatprep.mubr.msk.f32.mxu1 %vm8820_vm5, %v8819_v49 }
 0x7de   :  { %v9184_v12 = vpop.f32.mrf.mxu0 }
 0x7e0   :  { %v7861_v13 = vpop.f32.mrf.mxu0 }
 0x7e2   :  { %v9186_v14 = vpop.f32.mrf.mxu1  ;;  %v1130_v15 = vpop.f32.mrf.mxu0 }
 0x7e3   :  { %v1212_v16 = vmul.f32 0.35355338, %v1130_v15 }
 0x7e4   :  { %v7866_v17 = vpop.f32.mrf.mxu1  ;;  %v7871_v18 = vpop.f32.mrf.mxu0 }
 0x7e5   :  { %v1214_v19 = vsel %vm544_vm7, -1e+09, %v1212_v16 }
 0x7e6   :  { %v1208_v20 = vpop.f32.mrf.mxu1  ;;  %v1216_v21 = vsel %vm390_vm6, %v1214_v19, -inf }
 0x7e7   :  { %v1213_v22 = vmul.f32 0.35355338, %v1208_v20  ;;  %1217 = vmax.xlane.f32.xlu0 %v1216_v21 }
 0x7e8   :  { %v7876_v23 = vpop.f32.mrf.mxu1 }
 0x7e9   :  { %v1215_v24 = vsel %vm545_vm8, -1e+09, %v1213_v22 }
 0x7ea   :  { %v1219_v25 = vsel %vm390_vm6, %v1215_v24, -inf }
 0x7eb   :  { %1220 = vmax.xlane.f32.xlu1 %v1219_v25 }
 0x7fc   :  { %1314 = vrot.lane.b32.xlu1 %v9072_v52, %s8828_s13 }
 0x7fd   :  { %1238 = vrot.lane.b32.xlu0 %v9074_v54, %s8828_s13 }
 0x800   :  { %1392 = vrot.lane.b32.xlu1 %v9074_v54, %s8829_s28 }
 0x804   :  { %1470 = vrot.lane.b32.xlu1 %v9072_v52, %s8829_s28 }
 0x808   :  { %1468 = vrot.lane.b32.xlu1 %v9072_v52, %s8830_s4 }
 0x870   :  { %v1218_v26 = vpop.xlane.xlu0 %1217 }
 0x871   :  { %v1222_v27 = vsub.f32 %v1214_v19, %v1218_v26 }
 0x873   :  { %v1224_v28 = vmul.f32 1.442695, %v1222_v27 }
 0x874   :  { %v1239_v30 = vpop.permute.xlu0 %1238  ;;  %v1221_v33 = vpop.xlane.xlu1 %1220 }
 0x875   :  { %8361 = vpow2.f32 %v1224_v28  ;;  %v1223_v34 = vsub.f32 %v1215_v24, %v1221_v33  ;;  %7878 = vmatpush3.msra.mxu0 %v1239_v30  ;;  %v1758_v28 = vld [vmem:[%s10113_s8 + $0x10] sm:$0xff]  ;;  %v1757_v30 = vld [vmem:[%s10113_s8 + $0x8] sm:$0xff]  ;;  %v1756_v33 = vld [vmem:[%s10113_s8] sm:$0xff] }
 0x876   :  { %7887 = vmatprep.subr.mxu0 %v8819_v49 }
 0x877   :  { %v1226_v35 = vmul.f32 1.442695, %v1223_v34 }
 0x878   :  { %v1315_v38 = vpop.permute.xlu1 %1314 }
 0x879   :  { %8363 = vpow2.f32 %v1226_v35  ;;  %7883 = vmatpush3.msra.mxu1 %v1315_v38 }
 0x87a   :  { %7892 = vmatprep.subr.mxu1 %v8819_v49 }
 0x87c   :  { %v1393_v46 = vpop.permute.xlu1 %1392 }
 0x880   :  { %v1471_v51 = vpop.permute.xlu1 %1470 }
 0x882   :  { %v8362_v40 = vpop.eup %8361 }
 0x883   :  { %v1228_v41 = vsel %vm390_vm6, %v8362_v40, 0.0 }
 0x884   :  { %1229 = vadd.xlane.f32.xlu0 %v1228_v41  ;;  %v1469_v56 = vpop.permute.xlu1 %1468 }
 0x886   :  { %v8364_v42 = vpop.eup %8363 }
 0x887   :  { %v1231_v43 = vsel %vm390_vm6, %v8364_v42, 0.0 }
 0x888   :  { %1232 = vadd.xlane.f32.xlu0 %v1231_v43 }
 0x89e   :  { %1390 = vrot.lane.b32.xlu0 %v9074_v54, %s8830_s4 }
 0x90d   :  { %v1230_v44 = vpop.xlane.xlu0 %1229 }
 0x90e   :  { %8365 = vrcp.f32 %v1230_v44 }
 0x911   :  { %v1233_v45 = vpop.xlane.xlu0 %1232 }
 0x912   :  { %8367 = vrcp.f32 %v1233_v45 }
 0x915   :  { %v1391_v55 = vpop.permute.xlu0 %1390 }
 0x91b   :  { %v8366_v47 = vpop.eup %8365 }
 0x91c   :  { %v1236_v48 = vmul.f32 %v8366_v47, %v8362_v40 }
 0x91e   :  { %7880 = vmatmul.mubr.msk.f32.vlgmr.msra.gmra.mxu0 %vm390_vm6, %v1236_v48 }
 0x91f   :  { %v8368_v50 = vpop.eup %8367  ;;  %7888 = vmatpush3.xpose.msk.msra.mxu0 %vm390_vm6, %v1393_v46  ;;  %7889 = vmatprep.mubr.msk.f32.mxu0 %vm8820_vm5, %v8819_v49 }
 0x920   :  { %v1237_v53 = vmul.f32 %v8368_v50, %v8364_v42  ;;  %7897 = vmatprep.subr.mxu0 %v8819_v49 }
 0x922   :  { %7885 = vmatmul.mubr.msk.f32.vlgmr.msra.gmra.mxu1 %vm390_vm6, %v1237_v53  ;;  %7890 = vmatmul.mubr.msk.f32.vlgmr.msra.gmra.mxu0 %vm390_vm6, %v1391_v55 }
 0x923   :  { %7893 = vmatpush3.xpose.msk.msra.mxu1 %vm390_vm6, %v1471_v51  ;;  %7894 = vmatprep.mubr.msk.f32.mxu1 %vm8820_vm5, %v8819_v49 }
 0x924   :  { %7902 = vmatprep.subr.mxu1 %v8819_v49  ;;  %7899 = vmatprep.mubr.msk.f32.mxu0 %vm8820_vm5, %v8819_v49 }
 0x926   :  { %7895 = vmatmul.mubr.msk.f32.vlgmr.msra.gmra.mxu1 %vm390_vm6, %v1469_v56  ;;  %v7463_v56 = vld [vmem:[#allocation5] ss:$0 sm:$0xff] }
 0x927   :  { %7904 = vmatprep.mubr.msk.f32.mxu1 %vm8820_vm5, %v8819_v49 }
 0x9de   :  { %v1310_v58 = vpop.f32.mrf.mxu0 }
 0x9e0   :  { %v7881_v59 = vpop.f32.mrf.mxu0 }
 0x9e2   :  { %v1386_v61 = vpop.f32.mrf.mxu1  ;;  %v1464_v62 = vpop.f32.mrf.mxu0 }
 0x9e3   :  { %v1546_v63 = vmul.f32 0.35355338, %v1464_v62 }
 0x9e4   :  { %v7886_v2 = vpop.f32.mrf.mxu1  ;;  %v7891_v3 = vpop.f32.mrf.mxu0 }
 0x9e5   :  { %v1548_v4 = vsel %vm544_vm7, -1e+09, %v1546_v63 }
 0x9e6   :  { %v1542_v5 = vpop.f32.mrf.mxu1  ;;  %v1550_v6 = vsel %vm390_vm6, %v1548_v4, -inf }
 0x9e7   :  { %v1547_v7 = vmul.f32 0.35355338, %v1542_v5  ;;  %1551 = vmax.xlane.f32.xlu0 %v1550_v6 }
 0x9e8   :  { %v7896_v8 = vpop.f32.mrf.mxu1 }
 0x9e9   :  { %v1549_v9 = vsel %vm545_vm8, -1e+09, %v1547_v7 }
 0x9ea   :  { %v1553_v10 = vsel %vm390_vm6, %v1549_v9, -inf }
 0x9eb   :  { %1554 = vmax.xlane.f32.xlu1 %v1553_v10 }
 0x9fc   :  { %1648 = vrot.lane.b32.xlu1 %v9072_v52, %s8831_s1 }
 0xa00   :  { %1726 = vrot.lane.b32.xlu1 %v9184_v12, %s8808_s25 }
 0xa04   :  { %1728 = vrot.lane.b32.xlu1 %v9186_v14, %s8808_s25 }
 0xa08   :  { %1736 = vrot.lane.b32.xlu1 %v1386_v61, %s8805_s0 }
 0xa70   :  { %v1552_v11 = vpop.xlane.xlu0 %1551 }
 0xa71   :  { %v1556_v13 = vsub.f32 %v1548_v4, %v1552_v11  ;;  %v1999_v11 = vld [vmem:[#allocation8 + $0x18] sm:$0xff] }
 0xa73   :  { %v1558_v15 = vmul.f32 1.442695, %v1556_v13  ;;  %v1998_v13 = vld [vmem:[#allocation8 + $0x10] sm:$0xff] }
 0xa74   :  { %v1555_v16 = vpop.xlane.xlu1 %1554 }
 0xa75   :  { %8369 = vpow2.f32 %v1558_v15  ;;  %v1557_v17 = vsub.f32 %v1549_v9, %v1555_v16  ;;  %v1907_v15 = vld [vmem:[%s10115_s10 + $0x18] sm:$0xff]  ;;  %v1906_v16 = vld [vmem:[%s10115_s10 + $0x10] sm:$0xff] }
 0xa77   :  { %v1560_v18 = vmul.f32 1.442695, %v1557_v17  ;;  %v1997_v17 = vld [vmem:[#allocation8 + $0x8] sm:$0xff] }
 0xa78   :  { %v1649_v19 = vpop.permute.xlu1 %1648 }
 0xa79   :  { %8371 = vpow2.f32 %v1560_v18  ;;  %7903 = vmatpush3.msra.mxu1 %v1649_v19  ;;  %v233_v18 = vld [vmem:[%s10147_s17] sm:$0xff] }
 0xa7a   :  { %7918 = vmatprep.subr.mxu1 %v1907_v15  ;;  %v1996_v19 = vld [vmem:[#allocation8] sm:$0xff] }
 0xa7c   :  { %v1727_v41 = vpop.permute.xlu1 %1726 }
 0xa7d   :  { %v1748_v44 = vsel %vm390_vm6, %v9142_v29, %v1727_v41  ;;  %v9317_v41 = vsub.s32 1, %v9045_v32 }
 0xa80   :  { %v1729_v42 = vpop.permute.xlu1 %1728 }
 0xa81   :  { %v1749_v50 = vsel %vm390_vm6, %v9144_v31, %v1729_v42  ;;  %v1875_v42 = vrot.slane %v9053_v37, %v9317_v41  ;;  %v7467_v37 = vld [vmem:[#allocation10] ss:$0 sm:$0xff] }
 0xa82   :  { %v8370_v20 = vpop.eup %8369 }
 0xa83   :  { %v1562_v52 = vsel %vm390_vm6, %v8370_v20, 0.0 }
 0xa84   :  { %1563 = vadd.xlane.f32.xlu0 %v1562_v52  ;;  %v1737_v45 = vpop.permute.xlu1 %1736  ;;  %v234_v52 = vld [vmem:[%s10147_s17 + $0x8] sm:$0xff] }
 0xa85   :  { %v1752_v51 = vsel %vm1750_vm10, %v1749_v50, %v1737_v45 }
 0xa86   :  { %v8372_v12 = vpop.eup %8371 }
 0xa87   :  { %v1565_v21 = vsel %vm390_vm6, %v8372_v12, 0.0 }
 0xa88   :  { %1566 = vadd.xlane.f32.xlu0 %v1565_v21 }
 0xa9e   :  { %1572 = vrot.lane.b32.xlu0 %v9074_v54, %s8831_s1  ;;  %v1759_v54 = vld [vmem:[%s10113_s8 + $0x18] sm:$0xff] }
 0xaa2   :  { %1734 = vrot.lane.b32.xlu0 %v1310_v58, %s8805_s0 }
 0xb0d   :  { %v1564_v14 = vpop.xlane.xlu0 %1563 }
 0xb0e   :  { %8373 = vrcp.f32 %v1564_v14 }
 0xb11   :  { %v1567_v22 = vpop.xlane.xlu0 %1566 }
 0xb12   :  { %8375 = vrcp.f32 %v1567_v22 }
 0xb15   :  { %v1573_v23 = vpop.permute.xlu0 %1572 }
 0xb16   :  { %7898 = vmatpush3.msra.mxu0 %v1573_v23 }
 0xb17   :  { %7907 = vmatprep.subr.mxu0 %v1759_v54 }
 0xb19   :  { %v1735_v43 = vpop.permute.xlu0 %1734 }
 0xb1a   :  { %v1751_v46 = vsel %vm1750_vm10, %v1748_v44, %v1735_v43  ;;  %v1901_v43 = vrot.slane %v9060_v39, %v9317_v41 }
 0xb1b   :  { %v8374_v24 = vpop.eup %8373 }
 0xb1c   :  { %v1570_v25 = vmul.f32 %v8374_v24, %v8370_v20  ;;  %v1905_v20 = vld [vmem:[%s10115_s10 + $0x8] sm:$0xff] }
 0xb1e   :  { %7900 = vmatmul.mubr.msk.f32.vlgmr.msra.gmra.mxu0 %vm390_vm6, %v1570_v25 }
 0xb1f   :  { %v8376_v26 = vpop.eup %8375  ;;  %7908 = vmatpush3.msra.mxu0 %v1759_v54 }
 0xb20   :  { %v1571_v27 = vmul.f32 %v8376_v26, %v8372_v12  ;;  %7909 = vmatprep.subr.mxu0 %v1758_v28  ;;  %v1904_v12 = vld [vmem:[%s10115_s10] sm:$0xff] }
 0xb21   :  { %7910 = vmatpush3.msra.mxu0 %v1758_v28 }
 0xb22   :  { %7905 = vmatmul.mubr.msk.f32.vlgmr.msra.gmra.mxu1 %vm390_vm6, %v1571_v27  ;;  %7911 = vmatprep.subr.mxu0 %v1757_v30 }
 0xb23   :  { %7912 = vmatpush3.msra.mxu0 %v1757_v30  ;;  %7919 = vmatpush3.msra.mxu1 %v1907_v15 }
 0xb24   :  { %7913 = vmatprep.subr.mxu0 %v1756_v33  ;;  %7920 = vmatprep.subr.mxu1 %v1906_v16 }
 0xb25   :  { %7914 = vmatpush3.msra.mxu0 %v1756_v33  ;;  %7921 = vmatpush3.msra.mxu1 %v1906_v16 }
 0xb26   :  { %7929 = vmatprep.subr.mxu0 %v1999_v11  ;;  %7922 = vmatprep.subr.mxu1 %v1905_v20 }
 0xb27   :  { %7923 = vmatpush3.msra.mxu1 %v1905_v20 }
 0xb28   :  { %7924 = vmatprep.subr.mxu1 %v1904_v12 }
 0xb29   :  { %7925 = vmatpush3.msra.mxu1 %v1904_v12 }
 0xb2a   :  { %7940 = vmatprep.subr.mxu1 %v8819_v49 }
 0xbde   :  { %v1644_v34 = vpop.f32.mrf.mxu0 }
 0xbdf   :  { %1742 = vrot.lane.b32.xlu0 %v1644_v34, %s8832_s20 }
 0xbe0   :  { %v7901_v35 = vpop.f32.mrf.mxu0 }
 0xbe2   :  { %v1720_v38 = vpop.f32.mrf.mxu1 }
 0xbe3   :  { %1744 = vrot.lane.b32.xlu1 %v1720_v38, %s8832_s20 }
 0xbe4   :  { %v7906_v40 = vpop.f32.mrf.mxu1 }
 0xc51   :  { %v1743_v47 = vpop.permute.xlu0 %1742 }
 0xc52   :  { %v1754_v48 = vsel %vm1753_vm9, %v1751_v46, %v1743_v47 }
 0xc53   :  { %7915 = vmatprep.mubr.msk.f32.mxu0 %vm241_vm0, %v1754_v48 }
 0xc55   :  { %v1745_v53 = vpop.permute.xlu1 %1744 }
 0xc56   :  { %v1755_v55 = vsel %vm1753_vm9, %v1752_v51, %v1745_v53 }
 0xc57   :  { %7916 = vmatmul.mubr.msk.f32.vlgmr.msra.gmra.mxu0 %vm241_vm0, %v1755_v55 }
 0xc58   :  { %7930 = vmatpush3.msra.mxu0 %v1999_v11  ;;  %7937 = vmatprep.mubr.msk.f32.mxu0 %vm241_vm0, %v233_v18 }
 0xc59   :  { %7931 = vmatprep.subr.mxu0 %v1998_v13 }
 0xc5a   :  { %7932 = vmatpush3.msra.mxu0 %v1998_v13 }
 0xc5b   :  { %7933 = vmatprep.subr.mxu0 %v1997_v17 }
 0xc5c   :  { %7934 = vmatpush3.msra.mxu0 %v1997_v17 }
 0xc5d   :  { %7935 = vmatprep.subr.mxu0 %v1996_v19 }
 0xc5e   :  { %7936 = vmatpush3.msra.mxu0 %v1996_v19 }
 0xc5f   :  { %7938 = vmatmul.mubr.msk.f32.vlgmr.msra.gmra.mxu0 %vm241_vm0, %v234_v52  ;;  %7950 = vmatprep.subr.mxu0 %v8819_v49 }
 0xc60   :  { %7952 = vmatprep.mubr.msk.f32.mxu0 %vm8820_vm5, %v8819_v49 }
 0xd17   :  { %v7917_v29 = vpop.f32.mrf.mxu0 }
 0xd18   :  { %v1842_v58 = vadd.f32 %v7917_v29, %v9023_v1 }
 0xd19   :  { %v1832_v59 = vpop.f32.mrf.mxu0 }
 0xd1a   :  { %v9271_v61 = vadd.f32 %v7463_v56, %v1842_v58  ;;  %v1841_v62 = vadd.f32 %v1832_v59, %v9018_v0  ;;  %v7464_v59 = vld [vmem:[#allocation7] ss:$0 sm:$0xff] }
 0xd1c   :  { %v9274_v63 = vadd.f32 %v7463_v56, %v1841_v62  ;;  %v1855_v31 = vsel %vm241_vm0, %v9271_v61, 0.0 }
 0xd1d   :  { %1856 = vadd.xlane.f32.xlu1 %v1855_v31 }
 0xd1e   :  { %v1852_v2 = vsel %vm241_vm0, %v9274_v63, 0.0 }
 0xd1f   :  { %1853 = vadd.xlane.f32.xlu0 %v1852_v2  ;;  %v7939_v55 = vpop.f32.mrf.mxu0 }
 0xd20   :  { %v9329_v39 = vadd.f32 %v7939_v55, %v7467_v37 }
 0xd21   :  { %v2079_v29 = vpop.f32.mrf.mxu0 }
 0xd22   :  { %v9331_v56 = vadd.f32 %v7467_v37, %v2079_v29 }
 0xda6   :  { %v1857_v3 = vpop.xlane.xlu1 %1856 }
 0xda7   :  { %v1859_v4 = vmul.f32 0.03125, %v1857_v3  ;;  %v9354_v3 = vld [vmem:[%s10148_s23] sm:$0xff] }
 0xda8   :  { %v1854_v5 = vpop.xlane.xlu0 %1853  ;;  %vm2242_vm15 = vcmp.eq.f32.partialorder %v9354_v3, 0.0 }
 0xda9   :  { %v1858_v6 = vmul.f32 0.03125, %v1854_v5  ;;  %v9281_v1 = vsub.f32 %v9271_v61, %v1859_v4 }
 0xdab   :  { %v9284_v7 = vsub.f32 %v9274_v63, %v1858_v6  ;;  %v1863_v9 = vmul.f32 %v9281_v1, %v9281_v1  ;;  %v1877_v47 = vmul.f32 %v1875_v42, %v9281_v1  ;;  %v9360_v6 = vld [vmem:[%s10148_s23 + $0x8] sm:$0xff] }
 0xdac   :  { %vm2243_vm1 = vcmp.eq.f32.partialorder %v9360_v6, 0.0 }
 0xdad   :  { %v1862_v0 = vmul.f32 %v9284_v7, %v9284_v7  ;;  %v1867_v10 = vsel %vm241_vm0, %v1863_v9, 0.0  ;;  %v1876_v44 = vmul.f32 %v1875_v42, %v9284_v7 }
 0xdaf   :  { %v1864_v8 = vsel %vm241_vm0, %v1862_v0, 0.0 }
 0xdb0   :  { %1865 = vadd.xlane.f32.xlu0 %v1864_v8 }
 0xdb4   :  { %1868 = vadd.xlane.f32.xlu0 %v1867_v10 }
 0xe39   :  { %v1866_v21 = vpop.xlane.xlu0 %1865 }
 0xe3a   :  { %v1870_v14 = vmul.f32 0.032258064, %v1866_v21 }
 0xe3c   :  { %8377 = vrsqrt.f32 %v1870_v14  ;;  %vm1880_vm11 = vcmp.eq.f32.partialorder %v1870_v14, inf  ;;  %v1883_v26 = vand.u32 2147483648, %v1870_v14  ;;  %vm1882_vm12 = vcmp.eq.f32.partialorder %v1870_v14, 0.0 }
 0xe3d   :  { %v1869_v22 = vpop.xlane.xlu0 %1868 }
 0xe3e   :  { %v1871_v23 = vmul.f32 0.032258064, %v1869_v22 }
 0xe40   :  { %8379 = vrsqrt.f32 %v1871_v23  ;;  %vm1887_vm13 = vcmp.eq.f32.partialorder %v1871_v23, inf  ;;  %v1890_v34 = vand.u32 2147483648, %v1871_v23  ;;  %vm1889_vm14 = vcmp.eq.f32.partialorder %v1871_v23, 0.0 }
 0xe49   :  { %v8378_v24 = vpop.eup %8377 }
 0xe4a   :  { %v1879_v25 = vmul.f32 %v8378_v24, %v1870_v14 }
 0xe4c   :  { %v1881_v27 = vsel %vm1880_vm11, %v1870_v14, %v1879_v25 }
 0xe4d   :  { %v8380_v54 = vpop.eup %8379  ;;  %v1884_v28 = vsel %vm1882_vm12, %v1883_v26, %v1881_v27  ;;  %vm3702_vm12 = vcmask 523264  }
 0xe4e   :  { %v1892_v30 = vadd.f32 1e-06, %v1884_v28  ;;  %v1886_v33 = vmul.f32 %v8380_v54, %v1871_v23 }
 0xe50   :  { %8381 = vrcp.f32 %v1892_v30  ;;  %v1888_v35 = vsel %vm1887_vm13, %v1871_v23, %v1886_v33 }
 0xe51   :  { %v1891_v38 = vsel %vm1889_vm14, %v1890_v34, %v1888_v35 }
 0xe52   :  { %v1893_v40 = vadd.f32 1e-06, %v1891_v38 }
 0xe54   :  { %8383 = vrcp.f32 %v1893_v40 }
 0xe5d   :  { %v8382_v45 = vpop.eup %8381 }
 0xe5e   :  { %v1895_v46 = vmul.f32 %v8382_v45, %v1876_v44 }
 0xe60   :  { %v1902_v48 = vadd.f32 %v1901_v43, %v1895_v46 }
 0xe61   :  { %v8384_v50 = vpop.eup %8383 }
 0xe62   :  { %7926 = vmatprep.mubr.msk.f32.mxu1 %vm241_vm0, %v1902_v48  ;;  %v1897_v51 = vmul.f32 %v8384_v50, %v1877_v47 }
 0xe64   :  { %v1903_v53 = vadd.f32 %v1901_v43, %v1897_v51 }
 0xe66   :  { %7927 = vmatmul.mubr.msk.f32.vlgmr.msra.gmra.mxu1 %vm241_vm0, %v1903_v53 }
 0xe67   :  { %7942 = vmatprep.mubr.msk.f32.mxu1 %vm8820_vm5, %v8819_v49  ;;  %7941 = vmatpush3.xpose.msk.msra.mxu1 %vm390_vm6, %v9331_v56 }
 0xe68   :  { %7945 = vmatprep.subr.mxu1 %v8819_v49 }
 0xf26   :  { %v7928_v58 = vpop.f32.mrf.mxu1 }
 0xf27   :  { %v9344_v2 = vadd.f32 %v7928_v58, %v7464_v59 }
 0xf28   :  { %v1987_v62 = vpop.f32.mrf.mxu1 }
 0xf29   :  { %v9336_v31 = vadd.f32 %v7464_v59, %v1987_v62 }
 0xf2b   :  { %7943 = vmatmul.mubr.msk.f32.vlgmr.msra.gmra.mxu1 %vm390_vm6, %v9336_v31 }
 0xf2c   :  { %7946 = vmatpush3.xpose.msk.msra.mxu1 %vm390_vm6, %v9329_v39  ;;  %7947 = vmatprep.mubr.msk.f32.mxu1 %vm8820_vm5, %v8819_v49 }
 0xf2d   :  { %7955 = vmatprep.subr.mxu1 %v8819_v49 }
 0xf2f   :  { %7948 = vmatmul.mubr.msk.f32.vlgmr.msra.gmra.mxu1 %vm390_vm6, %v9344_v2 }
 0xf30   :  { %7957 = vmatprep.mubr.msk.f32.mxu1 %vm8820_vm5, %v8819_v49 }
 0xfeb   :  { %v2160_v4 = vpop.f32.mrf.mxu1 }
 0xfec   :  { %v2240_v5 = vmul.f32 0.35355338, %v2160_v4 }
 0xfed   :  { %v7944_v1 = vpop.f32.mrf.mxu1 }
 0xfee   :  { %v2244_v7 = vsel %vm2242_vm15, -1e+09, %v2240_v5 }
 0xfef   :  { %v2236_v0 = vpop.f32.mrf.mxu1  ;;  %v2246_v8 = vsel %vm390_vm6, %v2244_v7, -inf }
 0xff0   :  { %v2241_v9 = vmul.f32 0.35355338, %v2236_v0  ;;  %2247 = vmax.xlane.f32.xlu0 %v2246_v8 }
 0xff1   :  { %v7949_v10 = vpop.f32.mrf.mxu1 }
 0xff2   :  { %v2245_v11 = vsel %vm2243_vm1, -1e+09, %v2241_v9 }
 0xff3   :  { %v2249_v13 = vsel %vm390_vm6, %v2245_v11, -inf }
 0xff4   :  { %2250 = vmax.xlane.f32.xlu1 %v2249_v13 }
0x1005   :  { %2344 = vrot.lane.b32.xlu1 %v9329_v39, %s8821_s26 }
0x1009   :  { %2422 = vrot.lane.b32.xlu1 %v9331_v56, %s8824_s3 }
0x100d   :  { %2500 = vrot.lane.b32.xlu1 %v9329_v39, %s8824_s3 }
0x1079   :  { %v2248_v15 = vpop.xlane.xlu0 %2247 }
0x107a   :  { %v2252_v16 = vsub.f32 %v2244_v7, %v2248_v15 }
0x107c   :  { %v2254_v17 = vmul.f32 1.442695, %v2252_v16 }
0x107d   :  { %v2251_v18 = vpop.xlane.xlu1 %2250 }
0x107e   :  { %8385 = vpow2.f32 %v2254_v17  ;;  %v2253_v19 = vsub.f32 %v2245_v11, %v2251_v18 }
0x1080   :  { %v2256_v20 = vmul.f32 1.442695, %v2253_v19 }
0x1081   :  { %v2345_v52 = vpop.permute.xlu1 %2344 }
0x1082   :  { %8387 = vpow2.f32 %v2256_v20  ;;  %7956 = vmatpush3.msra.mxu1 %v2345_v52 }
0x1083   :  { %7965 = vmatprep.subr.mxu1 %v8819_v49 }
0x1085   :  { %v2423_v23 = vpop.permute.xlu1 %2422 }
0x1089   :  { %v2501_v24 = vpop.permute.xlu1 %2500 }
0x108b   :  { %v8386_v12 = vpop.eup %8385 }
0x108c   :  { %v2258_v21 = vsel %vm390_vm6, %v8386_v12, 0.0 }
0x108d   :  { %2259 = vadd.xlane.f32.xlu0 %v2258_v21 }
0x108f   :  { %v8388_v14 = vpop.eup %8387 }
0x1090   :  { %v2261_v22 = vsel %vm390_vm6, %v8388_v14, 0.0 }
0x1091   :  { %2262 = vadd.xlane.f32.xlu1 %v2261_v22 }
0x10a2   :  { %2498 = vrot.lane.b32.xlu1 %v9344_v2, %s8824_s3 }
0x10a3   :  { %2268 = vrot.lane.b32.xlu0 %v9331_v56, %s8821_s26 }
0x10a7   :  { %2420 = vrot.lane.b32.xlu0 %v9336_v31, %s8824_s3 }
0x1116   :  { %v2260_v25 = vpop.xlane.xlu0 %2259 }
0x1117   :  { %8389 = vrcp.f32 %v2260_v25 }
0x111a   :  { %v2269_v26 = vpop.permute.xlu0 %2268  ;;  %v2263_v27 = vpop.xlane.xlu1 %2262 }
0x111b   :  { %8391 = vrcp.f32 %v2263_v27  ;;  %7951 = vmatpush3.msra.mxu0 %v2269_v26 }
0x111c   :  { %7960 = vmatprep.subr.mxu0 %v8819_v49 }
0x111e   :  { %v2421_v34 = vpop.permute.xlu0 %2420  ;;  %v2499_v35 = vpop.permute.xlu1 %2498 }
0x1124   :  { %v8390_v54 = vpop.eup %8389 }
0x1125   :  { %v2266_v28 = vmul.f32 %v8390_v54, %v8386_v12 }
0x1127   :  { %7953 = vmatmul.mubr.msk.f32.vlgmr.msra.gmra.mxu0 %vm390_vm6, %v2266_v28 }
0x1128   :  { %v8392_v30 = vpop.eup %8391  ;;  %7961 = vmatpush3.xpose.msk.msra.mxu0 %vm390_vm6, %v2423_v23  ;;  %7962 = vmatprep.mubr.msk.f32.mxu0 %vm8820_vm5, %v8819_v49 }
0x1129   :  { %v2267_v33 = vmul.f32 %v8392_v30, %v8388_v14  ;;  %7970 = vmatprep.subr.mxu0 %v8819_v49 }
0x112b   :  { %7958 = vmatmul.mubr.msk.f32.vlgmr.msra.gmra.mxu1 %vm390_vm6, %v2267_v33  ;;  %7963 = vmatmul.mubr.msk.f32.vlgmr.msra.gmra.mxu0 %vm390_vm6, %v2421_v34 }
0x112c   :  { %7966 = vmatpush3.xpose.msk.msra.mxu1 %vm390_vm6, %v2501_v24  ;;  %7967 = vmatprep.mubr.msk.f32.mxu1 %vm8820_vm5, %v8819_v49 }
0x112d   :  { %7975 = vmatprep.subr.mxu1 %v8819_v49  ;;  %7972 = vmatprep.mubr.msk.f32.mxu0 %vm8820_vm5, %v8819_v49 }
0x112f   :  { %7968 = vmatmul.mubr.msk.f32.vlgmr.msra.gmra.mxu1 %vm390_vm6, %v2499_v35 }
0x1130   :  { %7977 = vmatprep.mubr.msk.f32.mxu1 %vm8820_vm5, %v8819_v49 }
0x11e7   :  { %v9401_v38 = vpop.f32.mrf.mxu0 }
0x11e9   :  { %v7954_v40 = vpop.f32.mrf.mxu0 }
0x11eb   :  { %v9403_v42 = vpop.f32.mrf.mxu1  ;;  %v2494_v43 = vpop.f32.mrf.mxu0 }
0x11ec   :  { %v2576_v44 = vmul.f32 0.35355338, %v2494_v43 }
0x11ed   :  { %v7959_v45 = vpop.f32.mrf.mxu1  ;;  %v7964_v46 = vpop.f32.mrf.mxu0 }
0x11ee   :  { %v2578_v47 = vsel %vm2242_vm15, -1e+09, %v2576_v44 }
0x11ef   :  { %v2572_v48 = vpop.f32.mrf.mxu1  ;;  %v2580_v50 = vsel %vm390_vm6, %v2578_v47, -inf }
0x11f0   :  { %v2577_v51 = vmul.f32 0.35355338, %v2572_v48  ;;  %2581 = vmax.xlane.f32.xlu0 %v2580_v50 }
0x11f1   :  { %v7969_v53 = vpop.f32.mrf.mxu1 }
0x11f2   :  { %v2579_v37 = vsel %vm2243_vm1, -1e+09, %v2577_v51 }
0x11f3   :  { %v2583_v55 = vsel %vm390_vm6, %v2579_v37, -inf }
0x11f4   :  { %2584 = vmax.xlane.f32.xlu1 %v2583_v55 }
0x1205   :  { %2678 = vrot.lane.b32.xlu1 %v9329_v39, %s8823_s21 }
0x1206   :  { %2602 = vrot.lane.b32.xlu0 %v9331_v56, %s8823_s21 }
0x1209   :  { %2756 = vrot.lane.b32.xlu1 %v9331_v56, %s8827_s9 }
0x120d   :  { %2834 = vrot.lane.b32.xlu1 %v9329_v39, %s8827_s9 }
0x1211   :  { %2832 = vrot.lane.b32.xlu1 %v9344_v2, %s8827_s9 }
0x1279   :  { %v2582_v29 = vpop.xlane.xlu0 %2581 }
0x127a   :  { %v2586_v58 = vsub.f32 %v2578_v47, %v2582_v29 }
0x127c   :  { %v2588_v59 = vmul.f32 1.442695, %v2586_v58 }
0x127d   :  { %v2603_v62 = vpop.permute.xlu0 %2602  ;;  %v2585_v4 = vpop.xlane.xlu1 %2584 }
0x127e   :  { %8393 = vpow2.f32 %v2588_v59  ;;  %v2587_v5 = vsub.f32 %v2579_v37, %v2585_v4  ;;  %7971 = vmatpush3.msra.mxu0 %v2603_v62 }
0x127f   :  { %7980 = vmatprep.subr.mxu0 %v8819_v49 }
0x1280   :  { %v2590_v1 = vmul.f32 1.442695, %v2587_v5 }
0x1281   :  { %v2679_v7 = vpop.permute.xlu1 %2678 }
0x1282   :  { %8395 = vpow2.f32 %v2590_v1  ;;  %7976 = vmatpush3.msra.mxu1 %v2679_v7 }
0x1283   :  { %7985 = vmatprep.subr.mxu1 %v8819_v49 }
0x1285   :  { %v2757_v15 = vpop.permute.xlu1 %2756 }
0x1289   :  { %v2835_v19 = vpop.permute.xlu1 %2834 }
0x128b   :  { %v8394_v0 = vpop.eup %8393 }
0x128c   :  { %v2592_v8 = vsel %vm390_vm6, %v8394_v0, 0.0 }
0x128d   :  { %2593 = vadd.xlane.f32.xlu0 %v2592_v8  ;;  %v2833_v12 = vpop.permute.xlu1 %2832 }
0x128f   :  { %v8396_v9 = vpop.eup %8395 }
0x1290   :  { %v2595_v10 = vsel %vm390_vm6, %v8396_v9, 0.0 }
0x1291   :  { %2596 = vadd.xlane.f32.xlu0 %v2595_v10 }
0x12a7   :  { %2754 = vrot.lane.b32.xlu0 %v9336_v31, %s8827_s9 }
0x1316   :  { %v2594_v11 = vpop.xlane.xlu0 %2593 }
0x1317   :  { %8397 = vrcp.f32 %v2594_v11 }
0x131a   :  { %v2597_v13 = vpop.xlane.xlu0 %2596 }
0x131b   :  { %8399 = vrcp.f32 %v2597_v13 }
0x131e   :  { %v2755_v52 = vpop.permute.xlu0 %2754 }
0x1324   :  { %v8398_v16 = vpop.eup %8397 }
0x1325   :  { %v2600_v17 = vmul.f32 %v8398_v16, %v8394_v0 }
0x1327   :  { %7973 = vmatmul.mubr.msk.f32.vlgmr.msra.gmra.mxu0 %vm390_vm6, %v2600_v17 }
0x1328   :  { %v8400_v18 = vpop.eup %8399  ;;  %7981 = vmatpush3.xpose.msk.msra.mxu0 %vm390_vm6, %v2757_v15  ;;  %7982 = vmatprep.mubr.msk.f32.mxu0 %vm8820_vm5, %v8819_v49 }
0x1329   :  { %v2601_v20 = vmul.f32 %v8400_v18, %v8396_v9  ;;  %7990 = vmatprep.subr.mxu0 %v8819_v49 }
0x132b   :  { %7978 = vmatmul.mubr.msk.f32.vlgmr.msra.gmra.mxu1 %vm390_vm6, %v2601_v20  ;;  %7983 = vmatmul.mubr.msk.f32.vlgmr.msra.gmra.mxu0 %vm390_vm6, %v2755_v52 }
0x132c   :  { %7986 = vmatpush3.xpose.msk.msra.mxu1 %vm390_vm6, %v2835_v19  ;;  %7987 = vmatprep.mubr.msk.f32.mxu1 %vm8820_vm5, %v8819_v49 }
0x132d   :  { %7995 = vmatprep.subr.mxu1 %v8819_v49  ;;  %7992 = vmatprep.mubr.msk.f32.mxu0 %vm8820_vm5, %v8819_v49 }
0x132f   :  { %7988 = vmatmul.mubr.msk.f32.vlgmr.msra.gmra.mxu1 %vm390_vm6, %v2833_v12 }
0x1330   :  { %7997 = vmatprep.mubr.msk.f32.mxu1 %vm8820_vm5, %v8819_v49 }
0x13e7   :  { %v9443_v21 = vpop.f32.mrf.mxu0 }
0x13e9   :  { %v7974_v14 = vpop.f32.mrf.mxu0 }
0x13eb   :  { %v9445_v22 = vpop.f32.mrf.mxu1  ;;  %v2828_v23 = vpop.f32.mrf.mxu0 }
0x13ec   :  { %v2910_v24 = vmul.f32 0.35355338, %v2828_v23 }
0x13ed   :  { %v7979_v25 = vpop.f32.mrf.mxu1  ;;  %v7984_v26 = vpop.f32.mrf.mxu0 }
0x13ee   :  { %v2912_v27 = vsel %vm2242_vm15, -1e+09, %v2910_v24 }
0x13ef   :  { %v2906_v54 = vpop.f32.mrf.mxu1  ;;  %v2914_v28 = vsel %vm390_vm6, %v2912_v27, -inf }
0x13f0   :  { %v2911_v30 = vmul.f32 0.35355338, %v2906_v54  ;;  %2915 = vmax.xlane.f32.xlu0 %v2914_v28 }
0x13f1   :  { %v7989_v33 = vpop.f32.mrf.mxu1 }
0x13f2   :  { %v2913_v34 = vsel %vm2243_vm1, -1e+09, %v2911_v30 }
0x13f3   :  { %v2917_v35 = vsel %vm390_vm6, %v2913_v34, -inf }
0x13f4   :  { %2918 = vmax.xlane.f32.xlu1 %v2917_v35 }
0x1405   :  { %3012 = vrot.lane.b32.xlu1 %v9329_v39, %s8826_s11 }
0x1406   :  { %2936 = vrot.lane.b32.xlu0 %v9331_v56, %s8826_s11 }
0x1409   :  { %3090 = vrot.lane.b32.xlu1 %v9331_v56, %s8830_s4 }
0x140d   :  { %3168 = vrot.lane.b32.xlu1 %v9329_v39, %s8830_s4 }
0x1411   :  { %3166 = vrot.lane.b32.xlu1 %v9344_v2, %s8830_s4 }
0x1479   :  { %v2916_v40 = vpop.xlane.xlu0 %2915 }
0x147a   :  { %v2920_v43 = vsub.f32 %v2912_v27, %v2916_v40 }
0x147c   :  { %v2922_v44 = vmul.f32 1.442695, %v2920_v43 }
0x147d   :  { %v2937_v45 = vpop.permute.xlu0 %2936  ;;  %v2919_v46 = vpop.xlane.xlu1 %2918 }
0x147e   :  { %8401 = vpow2.f32 %v2922_v44  ;;  %v2921_v47 = vsub.f32 %v2913_v34, %v2919_v46  ;;  %7991 = vmatpush3.msra.mxu0 %v2937_v45  ;;  %v3455_v45 = vld [vmem:[#allocation11 + $0x18] sm:$0xff]  ;;  %v3454_v46 = vld [vmem:[#allocation11 + $0x10] sm:$0xff] }
0x147f   :  { %8000 = vmatprep.subr.mxu0 %v8819_v49 }
0x1480   :  { %v2924_v48 = vmul.f32 1.442695, %v2921_v47  ;;  %v3452_v47 = vld [vmem:[#allocation11] sm:$0xff] }
0x1481   :  { %v3013_v50 = vpop.permute.xlu1 %3012 }
0x1482   :  { %8403 = vpow2.f32 %v2924_v48  ;;  %7996 = vmatpush3.msra.mxu1 %v3013_v50 }
0x1483   :  { %8005 = vmatprep.subr.mxu1 %v8819_v49 }
0x1485   :  { %v3091_v58 = vpop.permute.xlu1 %3090 }
0x1489   :  { %v3169_v5 = vpop.permute.xlu1 %3168 }
0x148b   :  { %v8402_v51 = vpop.eup %8401 }
0x148c   :  { %v2926_v53 = vsel %vm390_vm6, %v8402_v51, 0.0 }
0x148d   :  { %2927 = vadd.xlane.f32.xlu0 %v2926_v53  ;;  %v3167_v7 = vpop.permute.xlu1 %3166 }
0x148f   :  { %v8404_v2 = vpop.eup %8403 }
0x1490   :  { %v2929_v37 = vsel %vm390_vm6, %v8404_v2, 0.0 }
0x1491   :  { %2930 = vadd.xlane.f32.xlu0 %v2929_v37 }
0x14a7   :  { %3088 = vrot.lane.b32.xlu0 %v9336_v31, %s8830_s4 }
0x1516   :  { %v2928_v55 = vpop.xlane.xlu0 %2927 }
0x1517   :  { %8405 = vrcp.f32 %v2928_v55 }
0x151a   :  { %v2931_v29 = vpop.xlane.xlu0 %2930 }
0x151b   :  { %8407 = vrcp.f32 %v2931_v29 }
0x151e   :  { %v3089_v31 = vpop.permute.xlu0 %3088 }
0x1524   :  { %v8406_v59 = vpop.eup %8405 }
0x1525   :  { %v2934_v62 = vmul.f32 %v8406_v59, %v8402_v51 }
0x1527   :  { %7993 = vmatmul.mubr.msk.f32.vlgmr.msra.gmra.mxu0 %vm390_vm6, %v2934_v62 }
0x1528   :  { %v8408_v4 = vpop.eup %8407  ;;  %8001 = vmatpush3.xpose.msk.msra.mxu0 %vm390_vm6, %v3091_v58  ;;  %8002 = vmatprep.mubr.msk.f32.mxu0 %vm8820_vm5, %v8819_v49 }
0x1529   :  { %v2935_v1 = vmul.f32 %v8408_v4, %v8404_v2  ;;  %8010 = vmatprep.subr.mxu0 %v8819_v49 }
0x152b   :  { %7998 = vmatmul.mubr.msk.f32.vlgmr.msra.gmra.mxu1 %vm390_vm6, %v2935_v1  ;;  %8003 = vmatmul.mubr.msk.f32.vlgmr.msra.gmra.mxu0 %vm390_vm6, %v3089_v31 }
0x152c   :  { %8006 = vmatpush3.xpose.msk.msra.mxu1 %vm390_vm6, %v3169_v5  ;;  %8007 = vmatprep.mubr.msk.f32.mxu1 %vm8820_vm5, %v8819_v49 }
0x152d   :  { %8015 = vmatprep.subr.mxu1 %v8819_v49  ;;  %8012 = vmatprep.mubr.msk.f32.mxu0 %vm8820_vm5, %v8819_v49 }
0x152f   :  { %8008 = vmatmul.mubr.msk.f32.vlgmr.msra.gmra.mxu1 %vm390_vm6, %v3167_v7 }
0x1530   :  { %8017 = vmatprep.mubr.msk.f32.mxu1 %vm8820_vm5, %v8819_v49 }
0x15e7   :  { %v3008_v0 = vpop.f32.mrf.mxu0 }
0x15e9   :  { %v7994_v8 = vpop.f32.mrf.mxu0 }
0x15eb   :  { %v3084_v9 = vpop.f32.mrf.mxu1  ;;  %v3162_v10 = vpop.f32.mrf.mxu0 }
0x15ec   :  { %v3244_v11 = vmul.f32 0.35355338, %v3162_v10 }
0x15ed   :  { %v7999_v13 = vpop.f32.mrf.mxu1  ;;  %v8004_v15 = vpop.f32.mrf.mxu0 }
0x15ee   :  { %v3246_v16 = vsel %vm2242_vm15, -1e+09, %v3244_v11 }
0x15ef   :  { %v3240_v17 = vpop.f32.mrf.mxu1  ;;  %v3248_v18 = vsel %vm390_vm6, %v3246_v16, -inf }
0x15f0   :  { %v3245_v19 = vmul.f32 0.35355338, %v3240_v17  ;;  %3249 = vmax.xlane.f32.xlu0 %v3248_v18 }
0x15f1   :  { %v8009_v20 = vpop.f32.mrf.mxu1 }
0x15f2   :  { %v3247_v52 = vsel %vm2243_vm1, -1e+09, %v3245_v19 }
0x15f3   :  { %v3251_v12 = vsel %vm390_vm6, %v3247_v52, -inf }
0x15f4   :  { %3252 = vmax.xlane.f32.xlu1 %v3251_v12 }
0x1605   :  { %3346 = vrot.lane.b32.xlu1 %v9329_v39, %s8829_s28 }
0x1609   :  { %3424 = vrot.lane.b32.xlu1 %v9443_v21, %s8808_s25 }
0x160d   :  { %3426 = vrot.lane.b32.xlu1 %v9445_v22, %s8808_s25 }
0x1611   :  { %3434 = vrot.lane.b32.xlu1 %v3084_v9, %s8805_s0 }
0x1679   :  { %v3250_v14 = vpop.xlane.xlu0 %3249 }
0x167a   :  { %v3254_v23 = vsub.f32 %v3246_v16, %v3250_v14 }
0x167c   :  { %v3256_v24 = vmul.f32 1.442695, %v3254_v23  ;;  %v3603_v23 = vld [vmem:[#allocation14 + $0x18] sm:$0xff] }
0x167d   :  { %v3253_v25 = vpop.xlane.xlu1 %3252 }
0x167e   :  { %8409 = vpow2.f32 %v3256_v24  ;;  %v3255_v26 = vsub.f32 %v3247_v52, %v3253_v25  ;;  %v3602_v24 = vld [vmem:[#allocation14 + $0x10] sm:$0xff]  ;;  %v3601_v25 = vld [vmem:[#allocation14 + $0x8] sm:$0xff] }
0x1680   :  { %v3258_v27 = vmul.f32 1.442695, %v3255_v26  ;;  %v3600_v26 = vld [vmem:[#allocation14] sm:$0xff] }
0x1681   :  { %v3347_v54 = vpop.permute.xlu1 %3346 }
0x1682   :  { %8411 = vpow2.f32 %v3258_v27  ;;  %8016 = vmatpush3.msra.mxu1 %v3347_v54  ;;  %v3701_v27 = vld [vmem:[%s10123_s18 + $0x38] sm:$0xff]  ;;  %v3700_v54 = vld [vmem:[%s10123_s18 + $0x30] sm:$0xff] }
0x1683   :  { %8031 = vmatprep.subr.mxu1 %v3603_v23 }
0x1685   :  { %v3425_v2 = vpop.permute.xlu1 %3424 }
0x1686   :  { %v3446_v29 = vsel %vm390_vm6, %v9401_v38, %v3425_v2  ;;  %v7496_v38 = vld [vmem:[#allocation13] ss:$0 sm:$0xff]  ;;  %v8521_v2 = vld [vmem:[%s10144_s15] sm:$0x7] }
0x1689   :  { %v3427_v37 = vpop.permute.xlu1 %3426 }
0x168a   :  { %v3447_v5 = vsel %vm390_vm6, %v9403_v42, %v3427_v37 }
0x168b   :  { %v8410_v28 = vpop.eup %8409 }
0x168c   :  { %v3260_v39 = vsel %vm390_vm6, %v8410_v28, 0.0 }
0x168d   :  { %3261 = vadd.xlane.f32.xlu0 %v3260_v39  ;;  %v3435_v58 = vpop.permute.xlu1 %3434  ;;  %v3698_v39 = vld [vmem:[%s10123_s18 + $0x20] sm:$0xff] }
0x168e   :  { %v3449_v1 = vsel %vm1750_vm10, %v3447_v5, %v3435_v58 }
0x168f   :  { %v8412_v21 = vpop.eup %8411 }
0x1690   :  { %v3263_v30 = vsel %vm390_vm6, %v8412_v21, 0.0 }
0x1691   :  { %3264 = vadd.xlane.f32.xlu0 %v3263_v30 }
0x16a7   :  { %3270 = vrot.lane.b32.xlu0 %v9331_v56, %s8829_s28  ;;  %v3453_v56 = vld [vmem:[#allocation11 + $0x8] sm:$0xff] }
0x16ab   :  { %3432 = vrot.lane.b32.xlu0 %v3008_v0, %s8805_s0 }
0x1716   :  { %v3262_v22 = vpop.xlane.xlu0 %3261 }
0x1717   :  { %8413 = vrcp.f32 %v3262_v22 }
0x171a   :  { %v3265_v33 = vpop.xlane.xlu0 %3264 }
0x171b   :  { %8415 = vrcp.f32 %v3265_v33 }
0x171e   :  { %v3271_v34 = vpop.permute.xlu0 %3270 }
0x171f   :  { %8011 = vmatpush3.msra.mxu0 %v3271_v34 }
0x1720   :  { %8020 = vmatprep.subr.mxu0 %v3455_v45 }
0x1722   :  { %v3433_v55 = vpop.permute.xlu0 %3432 }
0x1723   :  { %v3448_v59 = vsel %vm1750_vm10, %v3446_v29, %v3433_v55  ;;  %v8522_v55 = vld [vmem:[%s10145_s7] sm:$0x7] }
0x1724   :  { %v8414_v35 = vpop.eup %8413 }
0x1725   :  { %v3268_v40 = vmul.f32 %v8414_v35, %v8410_v28  ;;  %v3699_v28 = vld [vmem:[%s10123_s18 + $0x28] sm:$0xff] }
0x1727   :  { %8013 = vmatmul.mubr.msk.f32.vlgmr.msra.gmra.mxu0 %vm390_vm6, %v3268_v40 }
0x1728   :  { %v8416_v43 = vpop.eup %8415  ;;  %8021 = vmatpush3.msra.mxu0 %v3455_v45 }
0x1729   :  { %v3269_v44 = vmul.f32 %v8416_v43, %v8412_v21  ;;  %8022 = vmatprep.subr.mxu0 %v3454_v46 }
0x172a   :  { %8023 = vmatpush3.msra.mxu0 %v3454_v46 }
0x172b   :  { %8018 = vmatmul.mubr.msk.f32.vlgmr.msra.gmra.mxu1 %vm390_vm6, %v3269_v44  ;;  %8024 = vmatprep.subr.mxu0 %v3453_v56 }
0x172c   :  { %8025 = vmatpush3.msra.mxu0 %v3453_v56  ;;  %8032 = vmatpush3.msra.mxu1 %v3603_v23 }
0x172d   :  { %8026 = vmatprep.subr.mxu0 %v3452_v47  ;;  %8033 = vmatprep.subr.mxu1 %v3602_v24 }
0x172e   :  { %8027 = vmatpush3.msra.mxu0 %v3452_v47  ;;  %8034 = vmatpush3.msra.mxu1 %v3602_v24 }
0x172f   :  { %8035 = vmatprep.subr.mxu1 %v3601_v25  ;;  %8042 = vmatprep.subr.mxu0 %v3701_v27 }
0x1730   :  { %8036 = vmatpush3.msra.mxu1 %v3601_v25 }
0x1731   :  { %8037 = vmatprep.subr.mxu1 %v3600_v26 }
0x1732   :  { %8038 = vmatpush3.msra.mxu1 %v3600_v26 }
0x17e7   :  { %v3342_v48 = vpop.f32.mrf.mxu0 }
0x17e8   :  { %3440 = vrot.lane.b32.xlu0 %v3342_v48, %s8832_s20 }
0x17e9   :  { %v8014_v50 = vpop.f32.mrf.mxu0 }
0x17eb   :  { %v3418_v51 = vpop.f32.mrf.mxu1 }
0x17ec   :  { %3442 = vrot.lane.b32.xlu1 %v3418_v51, %s8832_s20 }
0x17ed   :  { %v8019_v53 = vpop.f32.mrf.mxu1 }
0x17ee   :  { %v9548_v53 = vsub.s32 2, %v9045_v32 }
0x17f0   :  { %v3571_v37 = vrot.slane %v8521_v2, %v9548_v53  ;;  %v3597_v29 = vrot.slane %v8522_v55, %v9548_v53 }
0x185a   :  { %v3441_v62 = vpop.permute.xlu0 %3440 }
0x185b   :  { %v3450_v4 = vsel %vm1753_vm9, %v3448_v59, %v3441_v62 }
0x185c   :  { %8028 = vmatprep.mubr.msk.f32.mxu0 %vm241_vm0, %v3450_v4 }
0x185e   :  { %v3443_v31 = vpop.permute.xlu1 %3442 }
0x185f   :  { %v3451_v7 = vsel %vm1753_vm9, %v3449_v1, %v3443_v31 }
0x1860   :  { %8029 = vmatmul.mubr.msk.f32.vlgmr.msra.gmra.mxu0 %vm241_vm0, %v3451_v7  ;;  %v3697_v7 = vld [vmem:[%s10123_s18 + $0x18] sm:$0xff] }
0x1861   :  { %8043 = vmatpush3.msra.mxu0 %v3701_v27 }
0x1862   :  { %8044 = vmatprep.subr.mxu0 %v3700_v54 }
0x1863   :  { %8045 = vmatpush3.msra.mxu0 %v3700_v54 }
0x1864   :  { %8046 = vmatprep.subr.mxu0 %v3699_v28 }
0x1865   :  { %8047 = vmatpush3.msra.mxu0 %v3699_v28 }
0x1866   :  { %8048 = vmatprep.subr.mxu0 %v3698_v39 }
0x1867   :  { %8049 = vmatpush3.msra.mxu0 %v3698_v39 }
0x1868   :  { %8050 = vmatprep.subr.mxu0 %v3697_v7 }
0x1869   :  { %8051 = vmatpush3.msra.mxu0 %v3697_v7 }
0x1920   :  { %v8030_v0 = vpop.f32.mrf.mxu0 }
0x1921   :  { %v3538_v8 = vadd.f32 %v8030_v0, %v9271_v61  ;;  %v3696_v0 = vld [vmem:[%s10123_s18 + $0x10] sm:$0xff] }
0x1922   :  { %v3528_v9 = vpop.f32.mrf.mxu0  ;;  %8052 = vmatprep.subr.mxu0 %v3696_v0 }
0x1923   :  { %v9518_v10 = vadd.f32 %v7496_v38, %v3538_v8  ;;  %v3537_v11 = vadd.f32 %v3528_v9, %v9274_v63  ;;  %8053 = vmatpush3.msra.mxu0 %v3696_v0  ;;  %v3694_v8 = vld [vmem:[%s10123_s18] sm:$0xff]  ;;  %v7497_v9 = vld [vmem:[#allocation16] ss:$0 sm:$0xff] }
0x1925   :  { %v9521_v13 = vadd.f32 %v7496_v38, %v3537_v11  ;;  %v3551_v42 = vsel %vm241_vm0, %v9518_v10, 0.0  ;;  %v3695_v38 = vld [vmem:[%s10123_s18 + $0x8] sm:$0xff] }
0x1926   :  { %3552 = vadd.xlane.f32.xlu1 %v3551_v42  ;;  %8054 = vmatprep.subr.mxu0 %v3695_v38 }
0x1927   :  { %v3548_v15 = vsel %vm241_vm0, %v9521_v13, 0.0  ;;  %8055 = vmatpush3.msra.mxu0 %v3695_v38 }
0x1928   :  { %3549 = vadd.xlane.f32.xlu0 %v3548_v15  ;;  %8056 = vmatprep.subr.mxu0 %v3694_v8 }
0x1929   :  { %8057 = vmatpush3.msra.mxu0 %v3694_v8 }
0x192a   :  { %8082 = vmatprep.subr.mxu0 %v8819_v49 }
0x19af   :  { %v3553_v16 = vpop.xlane.xlu1 %3552 }
0x19b0   :  { %v3555_v17 = vmul.f32 0.03125, %v3553_v16 }
0x19b1   :  { %v3550_v18 = vpop.xlane.xlu0 %3549 }
0x19b2   :  { %v3554_v19 = vmul.f32 0.03125, %v3550_v18  ;;  %v9528_v61 = vsub.f32 %v9518_v10, %v3555_v17 }
0x19b4   :  { %v3556_v20 = vsub.f32 %v9521_v13, %v3554_v19  ;;  %v3559_v12 = vmul.f32 %v9528_v61, %v9528_v61  ;;  %v3573_v4 = vmul.f32 %v3571_v37, %v9528_v61  ;;  %v7502_v61 = vld [vmem:[#allocation17] ss:$0 sm:$0xff] }
0x19b6   :  { %v3558_v63 = vmul.f32 %v3556_v20, %v3556_v20  ;;  %v3563_v14 = vsel %vm241_vm0, %v3559_v12, 0.0  ;;  %v3572_v58 = vmul.f32 %v3571_v37, %v3556_v20 }
0x19b8   :  { %v3560_v52 = vsel %vm241_vm0, %v3558_v63, 0.0 }
0x19b9   :  { %3561 = vadd.xlane.f32.xlu0 %v3560_v52 }
0x19bd   :  { %3564 = vadd.xlane.f32.xlu0 %v3563_v14 }
0x1a42   :  { %v3562_v21 = vpop.xlane.xlu0 %3561 }
0x1a43   :  { %v3566_v30 = vmul.f32 0.032258064, %v3562_v21 }
0x1a45   :  { %8417 = vrsqrt.f32 %v3566_v30  ;;  %vm3576_vm2 = vcmp.eq.f32.partialorder %v3566_v30, inf  ;;  %v3579_v40 = vand.u32 2147483648, %v3566_v30  ;;  %vm3578_vm3 = vcmp.eq.f32.partialorder %v3566_v30, 0.0 }
0x1a46   :  { %v3565_v22 = vpop.xlane.xlu0 %3564 }
0x1a47   :  { %v3567_v33 = vmul.f32 0.032258064, %v3565_v22  ;;  %v7508_v22 = vld [vmem:[%s10143_s16 + $0x38] sm:$0xff] }
0x1a48   :  { %8061 = vmatprep.subr.mxu1 %v7508_v22 }
0x1a49   :  { %8419 = vrsqrt.f32 %v3567_v33  ;;  %vm3583_vm4 = vcmp.eq.f32.partialorder %v3567_v33, inf  ;;  %v3586_v47 = vand.u32 2147483648, %v3567_v33  ;;  %vm3585_vm11 = vcmp.eq.f32.partialorder %v3567_v33, 0.0 }
0x1a52   :  { %v8418_v34 = vpop.eup %8417 }
0x1a53   :  { %v3575_v35 = vmul.f32 %v8418_v34, %v3566_v30  ;;  %v7506_v34 = vld [vmem:[%s10143_s16 + $0x28] sm:$0xff] }
0x1a55   :  { %v3577_v43 = vsel %vm3576_vm2, %v3566_v30, %v3575_v35  ;;  %v7505_v35 = vld [vmem:[%s10143_s16 + $0x20] sm:$0xff] }
0x1a56   :  { %v8420_v44 = vpop.eup %8419  ;;  %v3580_v45 = vsel %vm3578_vm3, %v3579_v40, %v3577_v43 }
0x1a57   :  { %v3588_v46 = vadd.f32 1e-06, %v3580_v45  ;;  %v3582_v56 = vmul.f32 %v8420_v44, %v3567_v33 }
0x1a59   :  { %8421 = vrcp.f32 %v3588_v46  ;;  %v3584_v48 = vsel %vm3583_vm4, %v3567_v33, %v3582_v56  ;;  %v7507_v33 = vld [vmem:[%s10143_s16 + $0x30] sm:$0xff] }
0x1a5a   :  { %v3587_v50 = vsel %vm3585_vm11, %v3586_v47, %v3584_v48 }
0x1a5b   :  { %v3589_v51 = vadd.f32 1e-06, %v3587_v50 }
0x1a5d   :  { %8423 = vrcp.f32 %v3589_v51 }
0x1a66   :  { %v8422_v59 = vpop.eup %8421 }
0x1a67   :  { %v3591_v62 = vmul.f32 %v8422_v59, %v3572_v58 }
0x1a69   :  { %v3598_v5 = vadd.f32 %v3597_v29, %v3591_v62  ;;  %v9608_v62 = vld [vmem:[%s10144_s15 + $0x4] sm:$0x7] }
0x1a6a   :  { %v8424_v32 = vpop.eup %8423 }
0x1a6b   :  { %8039 = vmatprep.mubr.msk.f32.mxu1 %vm241_vm0, %v3598_v5  ;;  %v3593_v1 = vmul.f32 %v8424_v32, %v3573_v4  ;;  %v3822_v4 = vrot.slane %v9608_v62, %v9048_v36  ;;  %v9615_v32 = vld [vmem:[%s10145_s7 + $0x4] sm:$0x7] }
0x1a6c   :  { %v3848_v38 = vrot.slane %v9615_v32, %v9048_v36 }
0x1a6d   :  { %v3599_v31 = vadd.f32 %v3597_v29, %v3593_v1 }
0x1a6f   :  { %8040 = vmatmul.mubr.msk.f32.vlgmr.msra.gmra.mxu1 %vm241_vm0, %v3599_v31 }
0x1a70   :  { %8062 = vmatpush3.msra.mxu1 %v7508_v22 }
0x1a71   :  { %8063 = vmatprep.subr.mxu1 %v7507_v33 }
0x1a72   :  { %8064 = vmatpush3.msra.mxu1 %v7507_v33 }
0x1a73   :  { %8065 = vmatprep.subr.mxu1 %v7506_v34 }
0x1a74   :  { %8066 = vmatpush3.msra.mxu1 %v7506_v34 }
0x1a75   :  { %8067 = vmatprep.subr.mxu1 %v7505_v35 }
0x1a76   :  { %8068 = vmatpush3.msra.mxu1 %v7505_v35 }
0x1a77   :  { %8072 = vmatprep.subr.mxu1 %v8819_v49 }
0x1b2f   :  { %v8041_v11 = vpop.f32.mrf.mxu1 }
0x1b30   :  { %v3689_v42 = vadd.f32 %v8041_v11, %v7497_v9 }
0x1b31   :  { %v3683_v15 = vpop.f32.mrf.mxu1 }
0x1b32   :  { %v3684_v16 = vadd.f32 %v7497_v9, %v3683_v15  ;;  %v3693_v18 = vmax.f32 %v3689_v42, 0.0  ;;  %v7509_v42 = vld [vmem:[#allocation2 + $0x1] ss:$0 sm:$0xff] }
0x1b34   :  { %v3692_v17 = vmax.f32 %v3684_v16, 0.0 }
0x1b36   :  { %8058 = vmatprep.mubr.msk.f32.mxu0 %vm3702_vm12, %v3692_v17 }
0x1b37   :  { %8059 = vmatmul.mubr.msk.f32.vlgmr.msra.gmra.mxu0 %vm3702_vm12, %v3693_v18 }
0x1b38   :  { %8084 = vmatprep.mubr.msk.f32.mxu0 %vm8820_vm5, %v8819_v49 }
0x1bf7   :  { %v8060_v19 = vpop.f32.mrf.mxu0 }
0x1bf8   :  { %v3785_v20 = vadd.f32 %v8060_v19, %v9518_v10 }
0x1bf9   :  { %v3775_v63 = vpop.f32.mrf.mxu0 }
0x1bfa   :  { %v9579_v52 = vadd.f32 %v7502_v61, %v3785_v20  ;;  %v3784_v12 = vadd.f32 %v3775_v63, %v9521_v13 }
0x1bfc   :  { %v9582_v14 = vadd.f32 %v7502_v61, %v3784_v12  ;;  %v3802_v23 = vsel %vm241_vm0, %v9579_v52, 0.0 }
0x1bfd   :  { %3803 = vadd.xlane.f32.xlu1 %v3802_v23 }
0x1bfe   :  { %v3799_v24 = vsel %vm241_vm0, %v9582_v14, 0.0 }
0x1bff   :  { %3800 = vadd.xlane.f32.xlu0 %v3799_v24 }
0x1c86   :  { %v3804_v25 = vpop.xlane.xlu1 %3803 }
0x1c87   :  { %v3806_v26 = vmul.f32 0.03125, %v3804_v25 }
0x1c88   :  { %v3801_v27 = vpop.xlane.xlu0 %3800 }
0x1c89   :  { %v3808_v10 = vsub.f32 %v9579_v52, %v3806_v26  ;;  %v3805_v54 = vmul.f32 0.03125, %v3801_v27 }
0x1c8b   :  { %v3807_v28 = vsub.f32 %v9582_v14, %v3805_v54  ;;  %v3810_v39 = vmul.f32 %v3808_v10, %v3808_v10  ;;  %v3824_v1 = vmul.f32 %v3822_v4, %v3808_v10 }
0x1c8d   :  { %v3814_v13 = vsel %vm241_vm0, %v3810_v39, 0.0  ;;  %v3809_v21 = vmul.f32 %v3807_v28, %v3807_v28  ;;  %v3823_v31 = vmul.f32 %v3822_v4, %v3807_v28 }
0x1c8e   :  { %3815 = vadd.xlane.f32.xlu1 %v3814_v13 }
0x1c8f   :  { %v3811_v30 = vsel %vm241_vm0, %v3809_v21, 0.0 }
0x1c90   :  { %3812 = vadd.xlane.f32.xlu0 %v3811_v30 }
0x1d17   :  { %v3816_v40 = vpop.xlane.xlu1 %3815 }
0x1d18   :  { %v3818_v43 = vmul.f32 0.032258064, %v3816_v40 }
0x1d19   :  { %v3813_v44 = vpop.xlane.xlu0 %3812 }
0x1d1a   :  { %8425 = vrsqrt.f32 %v3818_v43  ;;  %v3817_v45 = vmul.f32 0.032258064, %v3813_v44  ;;  %vm3834_vm13 = vcmp.eq.f32.partialorder %v3818_v43, inf  ;;  %v3837_v47 = vand.u32 2147483648, %v3818_v43 }
0x1d1b   :  { %vm3836_vm14 = vcmp.eq.f32.partialorder %v3818_v43, 0.0 }
0x1d1c   :  { %8427 = vrsqrt.f32 %v3817_v45  ;;  %vm3827_vm2 = vcmp.eq.f32.partialorder %v3817_v45, inf  ;;  %v3830_v55 = vand.u32 2147483648, %v3817_v45  ;;  %vm3829_vm3 = vcmp.eq.f32.partialorder %v3817_v45, 0.0 }
0x1d27   :  { %v8426_v46 = vpop.eup %8425 }
0x1d28   :  { %v3833_v56 = vmul.f32 %v8426_v46, %v3818_v43 }
0x1d29   :  { %v8428_v48 = vpop.eup %8427 }
0x1d2a   :  { %v3835_v50 = vsel %vm3834_vm13, %v3818_v43, %v3833_v56  ;;  %v3826_v2 = vmul.f32 %v8428_v48, %v3817_v45 }
0x1d2b   :  { %v3838_v51 = vsel %vm3836_vm14, %v3837_v47, %v3835_v50 }
0x1d2c   :  { %v3840_v37 = vadd.f32 1e-06, %v3838_v51  ;;  %v3828_v29 = vsel %vm3827_vm2, %v3817_v45, %v3826_v2 }
0x1d2d   :  { %v3831_v58 = vsel %vm3829_vm3, %v3830_v55, %v3828_v29 }
0x1d2e   :  { %8429 = vrcp.f32 %v3840_v37  ;;  %v3839_v59 = vadd.f32 1e-06, %v3831_v58 }
0x1d30   :  { %8431 = vrcp.f32 %v3839_v59 }
0x1d3b   :  { %v8430_v5 = vpop.eup %8429 }
0x1d3c   :  { %v3844_v0 = vmul.f32 %v8430_v5, %v3824_v1 }
0x1d3d   :  { %v8432_v7 = vpop.eup %8431 }
0x1d3e   :  { %v3842_v8 = vmul.f32 %v8432_v7, %v3823_v31  ;;  %v3850_v11 = vadd.f32 %v3848_v38, %v3844_v0 }
0x1d40   :  { %v3849_v9 = vadd.f32 %v3848_v38, %v3842_v8 }
0x1d42   :  { %8069 = vmatprep.mubr.msk.f32.mxu1 %vm241_vm0, %v3849_v9 }
0x1d43   :  { %8070 = vmatmul.mubr.msk.f32.vlgmr.msra.gmra.mxu1 %vm241_vm0, %v3850_v11 }
0x1d44   :  { %8074 = vmatprep.mubr.msk.f32.mxu1 %vm8820_vm5, %v8819_v49 }
0x1e03   :  { %v8071_v15 = vpop.f32.mrf.mxu1 }
0x1e04   :  { %v9623_v16 = vadd.f32 %v8071_v15, %v7509_v42 }
0x1e05   :  { %v3936_v17 = vpop.f32.mrf.mxu1 }
0x1e06   :  { %v9625_v18 = vadd.f32 %v7509_v42, %v3936_v17  ;;  %4023 = vrot.lane.b32.xlu1 %v9623_v16, %s8821_s26 }
0x1e08   :  { %3946 = vrot.lane.b32.xlu0 %v9625_v18, %s8821_s26 }
0x1e78   :  { %v4024_v19 = vpop.permute.xlu1 %4023 }
0x1e7a   :  { %v3947_v36 = vpop.permute.xlu0 %3946 }
0x1e7b   :  { %8073 = vmatpush3.xpose.msk.msra.mxu1 %vm390_vm6, %v3947_v36 }
0x1e7c   :  { %8077 = vmatprep.subr.mxu1 %v8819_v49 }
0x1e7e   :  { %8075 = vmatmul.mubr.msk.f32.vlgmr.msra.gmra.mxu1 %vm390_vm6, %v9625_v18 }
0x1e7f   :  { %8078 = vmatpush3.xpose.msk.msra.mxu1 %vm390_vm6, %v4024_v19  ;;  %8079 = vmatprep.mubr.msk.f32.mxu1 %vm8820_vm5, %v8819_v49 }
0x1e80   :  { %8087 = vmatprep.subr.mxu1 %v8819_v49 }
0x1e82   :  { %8080 = vmatmul.mubr.msk.f32.vlgmr.msra.gmra.mxu1 %vm390_vm6, %v9623_v16 }
0x1e83   :  { %8089 = vmatprep.mubr.msk.f32.mxu1 %vm8820_vm5, %v8819_v49 }
0x1f3e   :  { %v4018_v61 = vpop.f32.mrf.mxu1 }
0x1f3f   :  { %v4099_v20 = vmul.f32 0.35355338, %v4018_v61 }
0x1f40   :  { %v8076_v63 = vpop.f32.mrf.mxu1 }
0x1f41   :  { %v4101_v12 = vsel %vm544_vm7, -1e+09, %v4099_v20 }
0x1f42   :  { %v4095_v23 = vpop.f32.mrf.mxu1  ;;  %v4103_v24 = vsel %vm390_vm6, %v4101_v12, -inf }
0x1f43   :  { %v4100_v25 = vmul.f32 0.35355338, %v4095_v23  ;;  %4104 = vmax.xlane.f32.xlu1 %v4103_v24 }
0x1f44   :  { %v8081_v26 = vpop.f32.mrf.mxu1 }
0x1f45   :  { %v4102_v27 = vsel %vm545_vm8, -1e+09, %v4100_v25 }
0x1f46   :  { %v4106_v10 = vsel %vm390_vm6, %v4102_v27, -inf }
0x1f47   :  { %4107 = vmax.xlane.f32.xlu0 %v4106_v10 }
0x1f54   :  { %4201 = vrot.lane.b32.xlu1 %v9623_v16, %s8822_s14 }
0x1f58   :  { %4279 = vrot.lane.b32.xlu1 %v9625_v18, %s8823_s21 }
0x1f5c   :  { %4357 = vrot.lane.b32.xlu1 %v9623_v16, %s8823_s21 }
0x1fcc   :  { %v4105_v54 = vpop.xlane.xlu1 %4104 }
0x1fcd   :  { %v4109_v28 = vsub.f32 %v4101_v12, %v4105_v54 }
0x1fcf   :  { %v4111_v39 = vmul.f32 1.442695, %v4109_v28 }
0x1fd0   :  { %v4202_v13 = vpop.permute.xlu1 %4201  ;;  %v4108_v21 = vpop.xlane.xlu0 %4107 }
0x1fd1   :  { %8433 = vpow2.f32 %v4111_v39  ;;  %v4110_v30 = vsub.f32 %v4102_v27, %v4108_v21  ;;  %8088 = vmatpush3.msra.mxu1 %v4202_v13 }
0x1fd2   :  { %8097 = vmatprep.subr.mxu1 %v8819_v49 }
0x1fd3   :  { %v4113_v22 = vmul.f32 1.442695, %v4110_v30 }
0x1fd4   :  { %v4280_v43 = vpop.permute.xlu1 %4279 }
0x1fd5   :  { %8435 = vpow2.f32 %v4113_v22 }
0x1fd8   :  { %v4358_v44 = vpop.permute.xlu1 %4357 }
0x1fde   :  { %v8434_v33 = vpop.eup %8433 }
0x1fdf   :  { %v4115_v34 = vsel %vm390_vm6, %v8434_v33, 0.0 }
0x1fe0   :  { %4116 = vadd.xlane.f32.xlu0 %v4115_v34 }
0x1fe2   :  { %v8436_v35 = vpop.eup %8435 }
0x1fe3   :  { %v4118_v40 = vsel %vm390_vm6, %v8436_v35, 0.0 }
0x1fe4   :  { %4119 = vadd.xlane.f32.xlu1 %v4118_v40 }
0x1ff5   :  { %4355 = vrot.lane.b32.xlu1 %v9623_v16, %s8824_s3 }
0x1ff6   :  { %4125 = vrot.lane.b32.xlu0 %v9625_v18, %s8822_s14 }
0x1ffa   :  { %4277 = vrot.lane.b32.xlu0 %v9625_v18, %s8824_s3 }
0x2069   :  { %v4117_v45 = vpop.xlane.xlu0 %4116 }
0x206a   :  { %8437 = vrcp.f32 %v4117_v45 }
0x206d   :  { %v4120_v46 = vpop.xlane.xlu1 %4119  ;;  %v4126_v56 = vpop.permute.xlu0 %4125 }
0x206e   :  { %8439 = vrcp.f32 %v4120_v46  ;;  %8083 = vmatpush3.msra.mxu0 %v4126_v56 }
0x206f   :  { %8092 = vmatprep.subr.mxu0 %v8819_v49 }
0x2071   :  { %v4278_v2 = vpop.permute.xlu0 %4277  ;;  %v4356_v37 = vpop.permute.xlu1 %4355 }
0x2077   :  { %v8438_v47 = vpop.eup %8437 }
0x2078   :  { %v4123_v48 = vmul.f32 %v8438_v47, %v8434_v33 }
0x207a   :  { %8085 = vmatmul.mubr.msk.f32.vlgmr.msra.gmra.mxu0 %vm390_vm6, %v4123_v48 }
0x207b   :  { %v8440_v50 = vpop.eup %8439  ;;  %8093 = vmatpush3.xpose.msk.msra.mxu0 %vm390_vm6, %v4280_v43  ;;  %8094 = vmatprep.mubr.msk.f32.mxu0 %vm8820_vm5, %v8819_v49 }
0x207c   :  { %v4124_v51 = vmul.f32 %v8440_v50, %v8436_v35  ;;  %8102 = vmatprep.subr.mxu0 %v8819_v49 }
0x207e   :  { %8090 = vmatmul.mubr.msk.f32.vlgmr.msra.gmra.mxu1 %vm390_vm6, %v4124_v51  ;;  %8095 = vmatmul.mubr.msk.f32.vlgmr.msra.gmra.mxu0 %vm390_vm6, %v4278_v2 }
0x207f   :  { %8098 = vmatpush3.xpose.msk.msra.mxu1 %vm390_vm6, %v4358_v44  ;;  %8099 = vmatprep.mubr.msk.f32.mxu1 %vm8820_vm5, %v8819_v49 }
0x2080   :  { %8107 = vmatprep.subr.mxu1 %v8819_v49  ;;  %8104 = vmatprep.mubr.msk.f32.mxu0 %vm8820_vm5, %v8819_v49 }
0x2082   :  { %8100 = vmatmul.mubr.msk.f32.vlgmr.msra.gmra.mxu1 %vm390_vm6, %v4356_v37 }
0x2083   :  { %8109 = vmatprep.mubr.msk.f32.mxu1 %vm8820_vm5, %v8819_v49 }
0x213a   :  { %v9681_v55 = vpop.f32.mrf.mxu0 }
0x213c   :  { %v8086_v29 = vpop.f32.mrf.mxu0 }
0x213e   :  { %v9683_v58 = vpop.f32.mrf.mxu1  ;;  %v4351_v59 = vpop.f32.mrf.mxu0 }
0x213f   :  { %v4433_v4 = vmul.f32 0.35355338, %v4351_v59 }
0x2140   :  { %v8091_v5 = vpop.f32.mrf.mxu1  ;;  %v8096_v1 = vpop.f32.mrf.mxu0 }
0x2141   :  { %v4435_v31 = vsel %vm544_vm7, -1e+09, %v4433_v4 }
0x2142   :  { %v4429_v7 = vpop.f32.mrf.mxu1  ;;  %v4437_v0 = vsel %vm390_vm6, %v4435_v31, -inf }
0x2143   :  { %v4434_v38 = vmul.f32 0.35355338, %v4429_v7  ;;  %4438 = vmax.xlane.f32.xlu0 %v4437_v0 }
0x2144   :  { %v8101_v8 = vpop.f32.mrf.mxu1 }
0x2145   :  { %v4436_v9 = vsel %vm545_vm8, -1e+09, %v4434_v38 }
0x2146   :  { %v4440_v11 = vsel %vm390_vm6, %v4436_v9, -inf }
0x2147   :  { %4441 = vmax.xlane.f32.xlu1 %v4440_v11 }
0x2158   :  { %4535 = vrot.lane.b32.xlu1 %v9623_v16, %s8825_s29 }
0x2159   :  { %4459 = vrot.lane.b32.xlu0 %v9625_v18, %s8825_s29 }
0x215c   :  { %4613 = vrot.lane.b32.xlu1 %v9625_v18, %s8826_s11 }
0x2160   :  { %4691 = vrot.lane.b32.xlu1 %v9623_v16, %s8826_s11 }
0x2164   :  { %4689 = vrot.lane.b32.xlu1 %v9623_v16, %s8827_s9 }
0x21cc   :  { %v4439_v42 = vpop.xlane.xlu0 %4438 }
0x21cd   :  { %v4443_v15 = vsub.f32 %v4435_v31, %v4439_v42 }
0x21cf   :  { %v4445_v17 = vmul.f32 1.442695, %v4443_v15 }
0x21d0   :  { %v4460_v36 = vpop.permute.xlu0 %4459  ;;  %v4442_v19 = vpop.xlane.xlu1 %4441 }
0x21d1   :  { %8441 = vpow2.f32 %v4445_v17  ;;  %v4444_v61 = vsub.f32 %v4436_v9, %v4442_v19  ;;  %8103 = vmatpush3.msra.mxu0 %v4460_v36 }
0x21d2   :  { %8112 = vmatprep.subr.mxu0 %v8819_v49 }
0x21d3   :  { %v4447_v20 = vmul.f32 1.442695, %v4444_v61 }
0x21d4   :  { %v4536_v63 = vpop.permute.xlu1 %4535 }
0x21d5   :  { %8443 = vpow2.f32 %v4447_v20  ;;  %8108 = vmatpush3.msra.mxu1 %v4536_v63 }
0x21d6   :  { %8117 = vmatprep.subr.mxu1 %v8819_v49 }
0x21d8   :  { %v4614_v10 = vpop.permute.xlu1 %4613 }
0x21dc   :  { %v4692_v13 = vpop.permute.xlu1 %4691 }
0x21de   :  { %v8442_v12 = vpop.eup %8441 }
0x21df   :  { %v4449_v23 = vsel %vm390_vm6, %v8442_v12, 0.0 }
0x21e0   :  { %4450 = vadd.xlane.f32.xlu0 %v4449_v23  ;;  %v4690_v22 = vpop.permute.xlu1 %4689 }
0x21e2   :  { %v8444_v24 = vpop.eup %8443 }
0x21e3   :  { %v4452_v25 = vsel %vm390_vm6, %v8444_v24, 0.0 }
0x21e4   :  { %4453 = vadd.xlane.f32.xlu0 %v4452_v25 }
0x21fa   :  { %4611 = vrot.lane.b32.xlu0 %v9625_v18, %s8827_s9 }
0x2269   :  { %v4451_v26 = vpop.xlane.xlu0 %4450 }
0x226a   :  { %8445 = vrcp.f32 %v4451_v26 }
0x226d   :  { %v4454_v27 = vpop.xlane.xlu0 %4453 }
0x226e   :  { %8447 = vrcp.f32 %v4454_v27 }
0x2271   :  { %v4612_v30 = vpop.permute.xlu0 %4611 }
0x2277   :  { %v8446_v54 = vpop.eup %8445 }
0x2278   :  { %v4457_v28 = vmul.f32 %v8446_v54, %v8442_v12 }
0x227a   :  { %8105 = vmatmul.mubr.msk.f32.vlgmr.msra.gmra.mxu0 %vm390_vm6, %v4457_v28 }
0x227b   :  { %v8448_v39 = vpop.eup %8447  ;;  %8113 = vmatpush3.xpose.msk.msra.mxu0 %vm390_vm6, %v4614_v10  ;;  %8114 = vmatprep.mubr.msk.f32.mxu0 %vm8820_vm5, %v8819_v49 }
0x227c   :  { %v4458_v21 = vmul.f32 %v8448_v39, %v8444_v24  ;;  %8122 = vmatprep.subr.mxu0 %v8819_v49 }
0x227e   :  { %8110 = vmatmul.mubr.msk.f32.vlgmr.msra.gmra.mxu1 %vm390_vm6, %v4458_v21  ;;  %8115 = vmatmul.mubr.msk.f32.vlgmr.msra.gmra.mxu0 %vm390_vm6, %v4612_v30 }
0x227f   :  { %8118 = vmatpush3.xpose.msk.msra.mxu1 %vm390_vm6, %v4692_v13  ;;  %8119 = vmatprep.mubr.msk.f32.mxu1 %vm8820_vm5, %v8819_v49 }
0x2280   :  { %8127 = vmatprep.subr.mxu1 %v8819_v49  ;;  %8124 = vmatprep.mubr.msk.f32.mxu0 %vm8820_vm5, %v8819_v49 }
0x2282   :  { %8120 = vmatmul.mubr.msk.f32.vlgmr.msra.gmra.mxu1 %vm390_vm6, %v4690_v22 }
0x2283   :  { %8129 = vmatprep.mubr.msk.f32.mxu1 %vm8820_vm5, %v8819_v49 }
0x233a   :  { %v9723_v33 = vpop.f32.mrf.mxu0 }
0x233c   :  { %v8106_v34 = vpop.f32.mrf.mxu0 }
0x233e   :  { %v9725_v35 = vpop.f32.mrf.mxu1  ;;  %v4685_v40 = vpop.f32.mrf.mxu0 }
0x233f   :  { %v4767_v43 = vmul.f32 0.35355338, %v4685_v40 }
0x2340   :  { %v8111_v44 = vpop.f32.mrf.mxu1  ;;  %v8116_v45 = vpop.f32.mrf.mxu0 }
0x2341   :  { %v4769_v46 = vsel %vm544_vm7, -1e+09, %v4767_v43 }
0x2342   :  { %v4763_v56 = vpop.f32.mrf.mxu1  ;;  %v4771_v47 = vsel %vm390_vm6, %v4769_v46, -inf }
0x2343   :  { %v4768_v48 = vmul.f32 0.35355338, %v4763_v56  ;;  %4772 = vmax.xlane.f32.xlu0 %v4771_v47 }
0x2344   :  { %v8121_v50 = vpop.f32.mrf.mxu1 }
0x2345   :  { %v4770_v51 = vsel %vm545_vm8, -1e+09, %v4768_v48 }
0x2346   :  { %v4774_v2 = vsel %vm390_vm6, %v4770_v51, -inf }
0x2347   :  { %4775 = vmax.xlane.f32.xlu1 %v4774_v2 }
0x2358   :  { %4869 = vrot.lane.b32.xlu1 %v9623_v16, %s8828_s13 }
0x2359   :  { %4793 = vrot.lane.b32.xlu0 %v9625_v18, %s8828_s13 }
0x235c   :  { %4947 = vrot.lane.b32.xlu1 %v9625_v18, %s8829_s28 }
0x2360   :  { %5025 = vrot.lane.b32.xlu1 %v9623_v16, %s8829_s28 }
0x2364   :  { %5023 = vrot.lane.b32.xlu1 %v9623_v16, %s8830_s4 }
0x23cc   :  { %v4773_v37 = vpop.xlane.xlu0 %4772 }
0x23cd   :  { %v4777_v29 = vsub.f32 %v4769_v46, %v4773_v37 }
0x23cf   :  { %v4779_v59 = vmul.f32 1.442695, %v4777_v29 }
0x23d0   :  { %v4794_v4 = vpop.permute.xlu0 %4793  ;;  %v4776_v5 = vpop.xlane.xlu1 %4775 }
0x23d1   :  { %8449 = vpow2.f32 %v4779_v59  ;;  %v4778_v1 = vsub.f32 %v4770_v51, %v4776_v5  ;;  %8123 = vmatpush3.msra.mxu0 %v4794_v4  ;;  %v7538_v59 = vld [vmem:[%s10113_s8 + $0x30] sm:$0xff]  ;;  %v7537_v4 = vld [vmem:[%s10113_s8 + $0x28] sm:$0xff]  ;;  %v7536_v5 = vld [vmem:[%s10113_s8 + $0x20] sm:$0xff] }
0x23d2   :  { %8132 = vmatprep.subr.mxu0 %v8819_v49 }
0x23d3   :  { %v4781_v31 = vmul.f32 1.442695, %v4778_v1 }
0x23d4   :  { %v4870_v7 = vpop.permute.xlu1 %4869 }
0x23d5   :  { %8451 = vpow2.f32 %v4781_v31  ;;  %8128 = vmatpush3.msra.mxu1 %v4870_v7 }
0x23d6   :  { %8137 = vmatprep.subr.mxu1 %v8819_v49 }
0x23d8   :  { %v4948_v15 = vpop.permute.xlu1 %4947 }
0x23dc   :  { %v5026_v61 = vpop.permute.xlu1 %5025 }
0x23de   :  { %v8450_v0 = vpop.eup %8449 }
0x23df   :  { %v4783_v38 = vsel %vm390_vm6, %v8450_v0, 0.0 }
0x23e0   :  { %4784 = vadd.xlane.f32.xlu0 %v4783_v38  ;;  %v5024_v12 = vpop.permute.xlu1 %5023 }
0x23e2   :  { %v8452_v8 = vpop.eup %8451 }
0x23e3   :  { %v4786_v9 = vsel %vm390_vm6, %v8452_v8, 0.0 }
0x23e4   :  { %4787 = vadd.xlane.f32.xlu0 %v4786_v9 }
0x23fa   :  { %4945 = vrot.lane.b32.xlu0 %v9625_v18, %s8830_s4 }
0x2469   :  { %v4785_v11 = vpop.xlane.xlu0 %4784 }
0x246a   :  { %8453 = vrcp.f32 %v4785_v11 }
0x246d   :  { %v4788_v42 = vpop.xlane.xlu0 %4787 }
0x246e   :  { %8455 = vrcp.f32 %v4788_v42 }
0x2471   :  { %v4946_v63 = vpop.permute.xlu0 %4945 }
0x2477   :  { %v8454_v17 = vpop.eup %8453 }
0x2478   :  { %v4791_v36 = vmul.f32 %v8454_v17, %v8450_v0 }
0x247a   :  { %8125 = vmatmul.mubr.msk.f32.vlgmr.msra.gmra.mxu0 %vm390_vm6, %v4791_v36 }
0x247b   :  { %v8456_v19 = vpop.eup %8455  ;;  %8133 = vmatpush3.xpose.msk.msra.mxu0 %vm390_vm6, %v4948_v15  ;;  %8134 = vmatprep.mubr.msk.f32.mxu0 %vm8820_vm5, %v8819_v49 }
0x247c   :  { %v4792_v20 = vmul.f32 %v8456_v19, %v8452_v8  ;;  %8142 = vmatprep.subr.mxu0 %v8819_v49 }
0x247e   :  { %8130 = vmatmul.mubr.msk.f32.vlgmr.msra.gmra.mxu1 %vm390_vm6, %v4792_v20  ;;  %8135 = vmatmul.mubr.msk.f32.vlgmr.msra.gmra.mxu0 %vm390_vm6, %v4946_v63 }
0x247f   :  { %8138 = vmatpush3.xpose.msk.msra.mxu1 %vm390_vm6, %v5026_v61  ;;  %8139 = vmatprep.mubr.msk.f32.mxu1 %vm8820_vm5, %v8819_v49 }
0x2480   :  { %8147 = vmatprep.subr.mxu1 %v8819_v49  ;;  %8144 = vmatprep.mubr.msk.f32.mxu0 %vm8820_vm5, %v8819_v49 }
0x2482   :  { %8140 = vmatmul.mubr.msk.f32.vlgmr.msra.gmra.mxu1 %vm390_vm6, %v5024_v12 }
0x2483   :  { %8149 = vmatprep.mubr.msk.f32.mxu1 %vm8820_vm5, %v8819_v49 }
0x253a   :  { %v4865_v23 = vpop.f32.mrf.mxu0 }
0x253c   :  { %v8126_v24 = vpop.f32.mrf.mxu0 }
0x253e   :  { %v4941_v25 = vpop.f32.mrf.mxu1  ;;  %v5019_v26 = vpop.f32.mrf.mxu0 }
0x253f   :  { %v5101_v27 = vmul.f32 0.35355338, %v5019_v26 }
0x2540   :  { %v8131_v10 = vpop.f32.mrf.mxu1  ;;  %v8136_v54 = vpop.f32.mrf.mxu0 }
0x2541   :  { %v5103_v28 = vsel %vm544_vm7, -1e+09, %v5101_v27 }
0x2542   :  { %v5097_v39 = vpop.f32.mrf.mxu1  ;;  %v5105_v13 = vsel %vm390_vm6, %v5103_v28, -inf }
0x2543   :  { %v5102_v21 = vmul.f32 0.35355338, %v5097_v39  ;;  %5106 = vmax.xlane.f32.xlu0 %v5105_v13 }
0x2544   :  { %v8141_v30 = vpop.f32.mrf.mxu1 }
0x2545   :  { %v5104_v22 = vsel %vm545_vm8, -1e+09, %v5102_v21 }
0x2546   :  { %v5108_v34 = vsel %vm390_vm6, %v5104_v22, -inf }
0x2547   :  { %5109 = vmax.xlane.f32.xlu1 %v5108_v34 }
0x2558   :  { %5203 = vrot.lane.b32.xlu1 %v9623_v16, %s8831_s1 }
0x255c   :  { %5281 = vrot.lane.b32.xlu1 %v9723_v33, %s8808_s25 }
0x2560   :  { %5283 = vrot.lane.b32.xlu1 %v9725_v35, %s8808_s25 }
0x2564   :  { %5291 = vrot.lane.b32.xlu1 %v4941_v25, %s8805_s0 }
0x25cc   :  { %v5107_v57 = vpop.xlane.xlu0 %5106 }
0x25cd   :  { %v5111_v40 = vsub.f32 %v5103_v28, %v5107_v57 }
0x25cf   :  { %v5113_v43 = vmul.f32 1.442695, %v5111_v40  ;;  %v5557_v40 = vld [vmem:[#allocation8 + $0x38] sm:$0xff] }
0x25d0   :  { %v5110_v44 = vpop.xlane.xlu1 %5109 }
0x25d1   :  { %8457 = vpow2.f32 %v5113_v43  ;;  %v5112_v60 = vsub.f32 %v5104_v22, %v5110_v44  ;;  %v5556_v43 = vld [vmem:[#allocation8 + $0x30] sm:$0xff] }
0x25d2   :  { %v7546_v44 = vld [vmem:[%s10115_s10 + $0x38] sm:$0xff] }
0x25d3   :  { %v5115_v45 = vmul.f32 1.442695, %v5112_v60  ;;  %v7545_v60 = vld [vmem:[%s10115_s10 + $0x30] sm:$0xff] }
0x25d4   :  { %v5204_v46 = vpop.permute.xlu1 %5203 }
0x25d5   :  { %8459 = vpow2.f32 %v5115_v45  ;;  %8148 = vmatpush3.msra.mxu1 %v5204_v46  ;;  %v5555_v45 = vld [vmem:[#allocation8 + $0x28] sm:$0xff] }
0x25d6   :  { %8163 = vmatprep.subr.mxu1 %v7546_v44  ;;  %v7544_v46 = vld [vmem:[%s10115_s10 + $0x28] sm:$0xff] }
0x25d8   :  { %v5282_v38 = vpop.permute.xlu1 %5281 }
0x25d9   :  { %v5303_v11 = vsel %vm390_vm6, %v9681_v55, %v5282_v38  ;;  %v8523_v55 = vld [vmem:[%s10147_s17] sm:$0xff]  ;;  %v5430_v38 = vrot.slane %v9608_v62, %v9317_v41 }
0x25da   :  { %v7550_v62 = vld [vmem:[#allocation10 + $0x1] ss:$0 sm:$0xff] }
0x25dc   :  { %v5284_v8 = vpop.permute.xlu1 %5283 }
0x25dd   :  { %v5304_v19 = vsel %vm390_vm6, %v9683_v58, %v5284_v8 }
0x25de   :  { %v8458_v56 = vpop.eup %8457 }
0x25df   :  { %v5117_v16 = vsel %vm390_vm6, %v8458_v56, 0.0 }
0x25e0   :  { %5118 = vadd.xlane.f32.xlu0 %v5117_v16  ;;  %v5292_v42 = vpop.permute.xlu1 %5291  ;;  %v8524_v16 = vld [vmem:[%s10147_s17 + $0x8] sm:$0xff] }
0x25e1   :  { %v5306_v61 = vsel %vm1750_vm10, %v5304_v19, %v5292_v42 }
0x25e2   :  { %v8460_v33 = vpop.eup %8459 }
0x25e3   :  { %v5120_v47 = vsel %vm390_vm6, %v8460_v33, 0.0 }
0x25e4   :  { %5121 = vadd.xlane.f32.xlu0 %v5120_v47 }
0x25fa   :  { %5127 = vrot.lane.b32.xlu0 %v9625_v18, %s8831_s1  ;;  %v7539_v18 = vld [vmem:[%s10113_s8 + $0x38] sm:$0xff] }
0x25fe   :  { %5289 = vrot.lane.b32.xlu0 %v4865_v23, %s8805_s0  ;;  %v7542_v23 = vld [vmem:[#allocation5 + $0x1] ss:$0 sm:$0xff] }
0x2669   :  { %v5119_v35 = vpop.xlane.xlu0 %5118 }
0x266a   :  { %8461 = vrcp.f32 %v5119_v35 }
0x266d   :  { %v5122_v48 = vpop.xlane.xlu0 %5121 }
0x266e   :  { %8463 = vrcp.f32 %v5122_v48 }
0x2671   :  { %v5128_v50 = vpop.permute.xlu0 %5127 }
0x2672   :  { %8143 = vmatpush3.msra.mxu0 %v5128_v50 }
0x2673   :  { %8152 = vmatprep.subr.mxu0 %v7539_v18 }
0x2675   :  { %v5290_v9 = vpop.permute.xlu0 %5289 }
0x2676   :  { %v5305_v15 = vsel %vm1750_vm10, %v5303_v11, %v5290_v9  ;;  %v5456_v9 = vrot.slane %v9615_v32, %v9317_v41 }
0x2677   :  { %v8462_v51 = vpop.eup %8461 }
0x2678   :  { %v5125_v2 = vmul.f32 %v8462_v51, %v8458_v56  ;;  %v5554_v56 = vld [vmem:[#allocation8 + $0x20] sm:$0xff] }
0x267a   :  { %8145 = vmatmul.mubr.msk.f32.vlgmr.msra.gmra.mxu0 %vm390_vm6, %v5125_v2 }
0x267b   :  { %v8464_v37 = vpop.eup %8463  ;;  %8153 = vmatpush3.msra.mxu0 %v7539_v18 }
0x267c   :  { %v5126_v29 = vmul.f32 %v8464_v37, %v8460_v33  ;;  %8154 = vmatprep.subr.mxu0 %v7538_v59  ;;  %v7543_v33 = vld [vmem:[%s10115_s10 + $0x20] sm:$0xff] }
0x267d   :  { %8155 = vmatpush3.msra.mxu0 %v7538_v59 }
0x267e   :  { %8150 = vmatmul.mubr.msk.f32.vlgmr.msra.gmra.mxu1 %vm390_vm6, %v5126_v29  ;;  %8156 = vmatprep.subr.mxu0 %v7537_v4 }
0x267f   :  { %8157 = vmatpush3.msra.mxu0 %v7537_v4  ;;  %8164 = vmatpush3.msra.mxu1 %v7546_v44 }
0x2680   :  { %8158 = vmatprep.subr.mxu0 %v7536_v5  ;;  %8165 = vmatprep.subr.mxu1 %v7545_v60 }
0x2681   :  { %8159 = vmatpush3.msra.mxu0 %v7536_v5  ;;  %8166 = vmatpush3.msra.mxu1 %v7545_v60 }
0x2682   :  { %8174 = vmatprep.subr.mxu0 %v5557_v40  ;;  %8167 = vmatprep.subr.mxu1 %v7544_v46 }
0x2683   :  { %8168 = vmatpush3.msra.mxu1 %v7544_v46 }
0x2684   :  { %8169 = vmatprep.subr.mxu1 %v7543_v33 }
0x2685   :  { %8170 = vmatpush3.msra.mxu1 %v7543_v33 }
0x2686   :  { %8185 = vmatprep.subr.mxu1 %v8819_v49 }
0x273a   :  { %v5199_v1 = vpop.f32.mrf.mxu0 }
0x273b   :  { %5297 = vrot.lane.b32.xlu0 %v5199_v1, %s8832_s20 }
0x273c   :  { %v8146_v31 = vpop.f32.mrf.mxu0 }
0x273e   :  { %v5275_v7 = vpop.f32.mrf.mxu1 }
0x273f   :  { %5299 = vrot.lane.b32.xlu1 %v5275_v7, %s8832_s20 }
0x2740   :  { %v8151_v0 = vpop.f32.mrf.mxu1 }
0x27ad   :  { %v5298_v17 = vpop.permute.xlu0 %5297 }
0x27ae   :  { %v5307_v36 = vsel %vm1753_vm9, %v5305_v15, %v5298_v17 }
0x27af   :  { %8160 = vmatprep.mubr.msk.f32.mxu0 %vm241_vm0, %v5307_v36 }
0x27b1   :  { %v5300_v20 = vpop.permute.xlu1 %5299 }
0x27b2   :  { %v5308_v63 = vsel %vm1753_vm9, %v5306_v61, %v5300_v20 }
0x27b3   :  { %8161 = vmatmul.mubr.msk.f32.vlgmr.msra.gmra.mxu0 %vm241_vm0, %v5308_v63 }
0x27b4   :  { %8182 = vmatprep.mubr.msk.f32.mxu0 %vm241_vm0, %v8523_v55  ;;  %8175 = vmatpush3.msra.mxu0 %v5557_v40 }
0x27b5   :  { %8176 = vmatprep.subr.mxu0 %v5556_v43 }
0x27b6   :  { %8177 = vmatpush3.msra.mxu0 %v5556_v43 }
0x27b7   :  { %8178 = vmatprep.subr.mxu0 %v5555_v45 }
0x27b8   :  { %8179 = vmatpush3.msra.mxu0 %v5555_v45 }
0x27b9   :  { %8180 = vmatprep.subr.mxu0 %v5554_v56 }
0x27ba   :  { %8181 = vmatpush3.msra.mxu0 %v5554_v56 }
0x27bb   :  { %8183 = vmatmul.mubr.msk.f32.vlgmr.msra.gmra.mxu0 %vm241_vm0, %v8524_v16  ;;  %8195 = vmatprep.subr.mxu0 %v8819_v49 }
0x27bc   :  { %8197 = vmatprep.mubr.msk.f32.mxu0 %vm8820_vm5, %v8819_v49 }
0x2873   :  { %v8162_v12 = vpop.f32.mrf.mxu0 }
0x2874   :  { %v5396_v24 = vadd.f32 %v8162_v12, %v9579_v52  ;;  %v7547_v12 = vld [vmem:[#allocation7 + $0x1] ss:$0 sm:$0xff] }
0x2875   :  { %v5386_v25 = vpop.f32.mrf.mxu0 }
0x2876   :  { %v9814_v26 = vadd.f32 %v7542_v23, %v5396_v24  ;;  %v5395_v58 = vadd.f32 %v5386_v25, %v9582_v14 }
0x2878   :  { %v9817_v27 = vadd.f32 %v7542_v23, %v5395_v58  ;;  %v5410_v10 = vsel %vm241_vm0, %v9814_v26, 0.0 }
0x2879   :  { %5411 = vadd.xlane.f32.xlu1 %v5410_v10 }
0x287a   :  { %v5407_v54 = vsel %vm241_vm0, %v9817_v27, 0.0 }
0x287b   :  { %5408 = vadd.xlane.f32.xlu0 %v5407_v54  ;;  %v8184_v20 = vpop.f32.mrf.mxu0 }
0x287c   :  { %v9860_v63 = vadd.f32 %v8184_v20, %v7550_v62 }
0x287d   :  { %v5632_v41 = vpop.f32.mrf.mxu0 }
0x287e   :  { %v9862_v32 = vadd.f32 %v7550_v62, %v5632_v41 }
0x2902   :  { %v5412_v28 = vpop.xlane.xlu1 %5411 }
0x2903   :  { %v5414_v39 = vmul.f32 0.03125, %v5412_v28 }
0x2904   :  { %v5409_v13 = vpop.xlane.xlu0 %5408 }
0x2905   :  { %v5413_v21 = vmul.f32 0.03125, %v5409_v13  ;;  %v9824_v52 = vsub.f32 %v9814_v26, %v5414_v39 }
0x2907   :  { %v5415_v30 = vsub.f32 %v9817_v27, %v5413_v21  ;;  %v5418_v34 = vmul.f32 %v9824_v52, %v9824_v52  ;;  %v5432_v15 = vmul.f32 %v5430_v38, %v9824_v52 }
0x2909   :  { %v5417_v14 = vmul.f32 %v5415_v30, %v5415_v30  ;;  %v5422_v57 = vsel %vm241_vm0, %v5418_v34, 0.0  ;;  %v5431_v8 = vmul.f32 %v5430_v38, %v5415_v30 }
0x290b   :  { %v5419_v22 = vsel %vm241_vm0, %v5417_v14, 0.0 }
0x290c   :  { %5420 = vadd.xlane.f32.xlu0 %v5419_v22 }
0x2910   :  { %5423 = vadd.xlane.f32.xlu0 %v5422_v57 }
0x2995   :  { %v5421_v47 = vpop.xlane.xlu0 %5420 }
0x2996   :  { %v5425_v35 = vmul.f32 0.032258064, %v5421_v47 }
0x2998   :  { %8465 = vrsqrt.f32 %v5425_v35  ;;  %vm5435_vm7 = vcmp.eq.f32.partialorder %v5425_v35, inf  ;;  %v5438_v37 = vand.u32 2147483648, %v5425_v35  ;;  %vm5437_vm8 = vcmp.eq.f32.partialorder %v5425_v35, 0.0 }
0x2999   :  { %v5424_v48 = vpop.xlane.xlu0 %5423 }
0x299a   :  { %v5426_v50 = vmul.f32 0.032258064, %v5424_v48 }
0x299c   :  { %8467 = vrsqrt.f32 %v5426_v50  ;;  %vm5442_vm4 = vcmp.eq.f32.partialorder %v5426_v50, inf  ;;  %v5445_v1 = vand.u32 2147483648, %v5426_v50  ;;  %vm5444_vm11 = vcmp.eq.f32.partialorder %v5426_v50, 0.0 }
0x29a5   :  { %v8466_v51 = vpop.eup %8465 }
0x29a6   :  { %v5434_v2 = vmul.f32 %v8466_v51, %v5425_v35 }
0x29a8   :  { %v5436_v29 = vsel %vm5435_vm7, %v5425_v35, %v5434_v2 }
0x29a9   :  { %v8468_v18 = vpop.eup %8467  ;;  %v5439_v59 = vsel %vm5437_vm8, %v5438_v37, %v5436_v29 }
0x29aa   :  { %v5447_v4 = vadd.f32 1e-06, %v5439_v59  ;;  %v5441_v5 = vmul.f32 %v8468_v18, %v5426_v50 }
0x29ac   :  { %8469 = vrcp.f32 %v5447_v4  ;;  %v5443_v31 = vsel %vm5442_vm4, %v5426_v50, %v5441_v5 }
0x29ad   :  { %v5446_v7 = vsel %vm5444_vm11, %v5445_v1, %v5443_v31 }
0x29ae   :  { %v5448_v0 = vadd.f32 1e-06, %v5446_v7 }
0x29b0   :  { %8471 = vrcp.f32 %v5448_v0 }
0x29b9   :  { %v8470_v11 = vpop.eup %8469 }
0x29ba   :  { %v5450_v42 = vmul.f32 %v8470_v11, %v5431_v8 }
0x29bc   :  { %v5457_v17 = vadd.f32 %v5456_v9, %v5450_v42 }
0x29bd   :  { %v8472_v36 = vpop.eup %8471 }
0x29be   :  { %v5452_v19 = vmul.f32 %v8472_v36, %v5432_v15  ;;  %8171 = vmatprep.mubr.msk.f32.mxu1 %vm241_vm0, %v5457_v17 }
0x29c0   :  { %v5458_v61 = vadd.f32 %v5456_v9, %v5452_v19 }
0x29c2   :  { %8172 = vmatmul.mubr.msk.f32.vlgmr.msra.gmra.mxu1 %vm241_vm0, %v5458_v61 }
0x29c3   :  { %8187 = vmatprep.mubr.msk.f32.mxu1 %vm8820_vm5, %v8819_v49  ;;  %8186 = vmatpush3.xpose.msk.msra.mxu1 %vm390_vm6, %v9862_v32 }
0x29c4   :  { %8190 = vmatprep.subr.mxu1 %v8819_v49 }
0x2a82   :  { %v8173_v55 = vpop.f32.mrf.mxu1 }
0x2a83   :  { %v9875_v25 = vadd.f32 %v8173_v55, %v7547_v12 }
0x2a84   :  { %v5544_v23 = vpop.f32.mrf.mxu1 }
0x2a85   :  { %v9867_v24 = vadd.f32 %v7547_v12, %v5544_v23 }
0x2a87   :  { %8188 = vmatmul.mubr.msk.f32.vlgmr.msra.gmra.mxu1 %vm390_vm6, %v9867_v24 }
0x2a88   :  { %8191 = vmatpush3.xpose.msk.msra.mxu1 %vm390_vm6, %v9860_v63  ;;  %8192 = vmatprep.mubr.msk.f32.mxu1 %vm8820_vm5, %v8819_v49 }
0x2a89   :  { %8200 = vmatprep.subr.mxu1 %v8819_v49 }
0x2a8b   :  { %8193 = vmatmul.mubr.msk.f32.vlgmr.msra.gmra.mxu1 %vm390_vm6, %v9875_v25 }
0x2a8c   :  { %8202 = vmatprep.mubr.msk.f32.mxu1 %vm8820_vm5, %v8819_v49 }
0x2b47   :  { %v5713_v58 = vpop.f32.mrf.mxu1 }
0x2b48   :  { %v5793_v10 = vmul.f32 0.35355338, %v5713_v58 }
0x2b49   :  { %v8189_v54 = vpop.f32.mrf.mxu1 }
0x2b4a   :  { %v5795_v28 = vsel %vm2242_vm15, -1e+09, %v5793_v10 }
0x2b4b   :  { %v5789_v39 = vpop.f32.mrf.mxu1  ;;  %v5797_v13 = vsel %vm390_vm6, %v5795_v28, -inf }
0x2b4c   :  { %v5794_v21 = vmul.f32 0.35355338, %v5789_v39  ;;  %5798 = vmax.xlane.f32.xlu0 %v5797_v13 }
0x2b4d   :  { %v8194_v52 = vpop.f32.mrf.mxu1 }
0x2b4e   :  { %v5796_v30 = vsel %vm2243_vm1, -1e+09, %v5794_v21 }
0x2b4f   :  { %v5800_v14 = vsel %vm390_vm6, %v5796_v30, -inf }
0x2b50   :  { %5801 = vmax.xlane.f32.xlu1 %v5800_v14 }
0x2b61   :  { %5895 = vrot.lane.b32.xlu1 %v9860_v63, %s8821_s26 }
0x2b65   :  { %5973 = vrot.lane.b32.xlu1 %v9862_v32, %s8824_s3 }
0x2b69   :  { %6051 = vrot.lane.b32.xlu1 %v9860_v63, %s8824_s3 }
0x2bd5   :  { %v5799_v22 = vpop.xlane.xlu0 %5798 }
0x2bd6   :  { %v5803_v34 = vsub.f32 %v5795_v28, %v5799_v22 }
0x2bd8   :  { %v5805_v57 = vmul.f32 1.442695, %v5803_v34 }
0x2bd9   :  { %v5802_v40 = vpop.xlane.xlu1 %5801 }
0x2bda   :  { %8473 = vpow2.f32 %v5805_v57  ;;  %v5804_v43 = vsub.f32 %v5796_v30, %v5802_v40 }
0x2bdc   :  { %v5807_v44 = vmul.f32 1.442695, %v5804_v43 }
0x2bdd   :  { %v5896_v60 = vpop.permute.xlu1 %5895 }
0x2bde   :  { %8475 = vpow2.f32 %v5807_v44  ;;  %8201 = vmatpush3.msra.mxu1 %v5896_v60 }
0x2bdf   :  { %8210 = vmatprep.subr.mxu1 %v8819_v49 }
0x2be1   :  { %v5974_v33 = vpop.permute.xlu1 %5973 }
0x2be5   :  { %v6052_v47 = vpop.permute.xlu1 %6051 }
0x2be7   :  { %v8474_v45 = vpop.eup %8473 }
0x2be8   :  { %v5809_v46 = vsel %vm390_vm6, %v8474_v45, 0.0 }
0x2be9   :  { %5810 = vadd.xlane.f32.xlu0 %v5809_v46 }
0x2beb   :  { %v8476_v56 = vpop.eup %8475 }
0x2bec   :  { %v5812_v16 = vsel %vm390_vm6, %v8476_v56, 0.0 }
0x2bed   :  { %5813 = vadd.xlane.f32.xlu1 %v5812_v16 }
0x2bfe   :  { %6049 = vrot.lane.b32.xlu1 %v9875_v25, %s8824_s3 }
0x2bff   :  { %5819 = vrot.lane.b32.xlu0 %v9862_v32, %s8821_s26 }
0x2c03   :  { %5971 = vrot.lane.b32.xlu0 %v9867_v24, %s8824_s3 }
0x2c72   :  { %v5811_v35 = vpop.xlane.xlu0 %5810 }
0x2c73   :  { %8477 = vrcp.f32 %v5811_v35 }
0x2c76   :  { %v5820_v48 = vpop.permute.xlu0 %5819  ;;  %v5814_v50 = vpop.xlane.xlu1 %5813 }
0x2c77   :  { %8479 = vrcp.f32 %v5814_v50  ;;  %8196 = vmatpush3.msra.mxu0 %v5820_v48 }
0x2c78   :  { %8205 = vmatprep.subr.mxu0 %v8819_v49 }
0x2c7a   :  { %v5972_v18 = vpop.permute.xlu0 %5971  ;;  %v6050_v59 = vpop.permute.xlu1 %6049 }
0x2c80   :  { %v8478_v51 = vpop.eup %8477 }
0x2c81   :  { %v5817_v2 = vmul.f32 %v8478_v51, %v8474_v45 }
0x2c83   :  { %8198 = vmatmul.mubr.msk.f32.vlgmr.msra.gmra.mxu0 %vm390_vm6, %v5817_v2 }
0x2c84   :  { %v8480_v37 = vpop.eup %8479  ;;  %8206 = vmatpush3.xpose.msk.msra.mxu0 %vm390_vm6, %v5974_v33  ;;  %8207 = vmatprep.mubr.msk.f32.mxu0 %vm8820_vm5, %v8819_v49 }
0x2c85   :  { %v5818_v29 = vmul.f32 %v8480_v37, %v8476_v56  ;;  %8215 = vmatprep.subr.mxu0 %v8819_v49 }
0x2c87   :  { %8203 = vmatmul.mubr.msk.f32.vlgmr.msra.gmra.mxu1 %vm390_vm6, %v5818_v29  ;;  %8208 = vmatmul.mubr.msk.f32.vlgmr.msra.gmra.mxu0 %vm390_vm6, %v5972_v18 }
0x2c88   :  { %8211 = vmatpush3.xpose.msk.msra.mxu1 %vm390_vm6, %v6052_v47  ;;  %8212 = vmatprep.mubr.msk.f32.mxu1 %vm8820_vm5, %v8819_v49 }
0x2c89   :  { %8220 = vmatprep.subr.mxu1 %v8819_v49  ;;  %8217 = vmatprep.mubr.msk.f32.mxu0 %vm8820_vm5, %v8819_v49 }
0x2c8b   :  { %8213 = vmatmul.mubr.msk.f32.vlgmr.msra.gmra.mxu1 %vm390_vm6, %v6050_v59 }
0x2c8c   :  { %8222 = vmatprep.mubr.msk.f32.mxu1 %vm8820_vm5, %v8819_v49 }
0x2d43   :  { %v9920_v4 = vpop.f32.mrf.mxu0 }
0x2d45   :  { %v8199_v5 = vpop.f32.mrf.mxu0 }
0x2d47   :  { %v9922_v1 = vpop.f32.mrf.mxu1  ;;  %v6045_v31 = vpop.f32.mrf.mxu0 }
0x2d48   :  { %v6127_v7 = vmul.f32 0.35355338, %v6045_v31 }
0x2d49   :  { %v8204_v0 = vpop.f32.mrf.mxu1  ;;  %v8209_v38 = vpop.f32.mrf.mxu0 }
0x2d4a   :  { %v6129_v8 = vsel %vm2242_vm15, -1e+09, %v6127_v7 }
0x2d4b   :  { %v6123_v9 = vpop.f32.mrf.mxu1  ;;  %v6131_v11 = vsel %vm390_vm6, %v6129_v8, -inf }
0x2d4c   :  { %v6128_v42 = vmul.f32 0.35355338, %v6123_v9  ;;  %6132 = vmax.xlane.f32.xlu0 %v6131_v11 }
0x2d4d   :  { %v8214_v15 = vpop.f32.mrf.mxu1 }
0x2d4e   :  { %v6130_v17 = vsel %vm2243_vm1, -1e+09, %v6128_v42 }
0x2d4f   :  { %v6134_v36 = vsel %vm390_vm6, %v6130_v17, -inf }
0x2d50   :  { %6135 = vmax.xlane.f32.xlu1 %v6134_v36 }
0x2d61   :  { %6229 = vrot.lane.b32.xlu1 %v9860_v63, %s8823_s21 }
0x2d62   :  { %6153 = vrot.lane.b32.xlu0 %v9862_v32, %s8823_s21 }
0x2d65   :  { %6307 = vrot.lane.b32.xlu1 %v9862_v32, %s8827_s9 }
0x2d69   :  { %6385 = vrot.lane.b32.xlu1 %v9860_v63, %s8827_s9 }
0x2d6d   :  { %6383 = vrot.lane.b32.xlu1 %v9875_v25, %s8827_s9 }
0x2dd5   :  { %v6133_v19 = vpop.xlane.xlu0 %6132 }
0x2dd6   :  { %v6137_v61 = vsub.f32 %v6129_v8, %v6133_v19 }
0x2dd8   :  { %v6139_v62 = vmul.f32 1.442695, %v6137_v61 }
0x2dd9   :  { %v6154_v20 = vpop.permute.xlu0 %6153  ;;  %v6136_v41 = vpop.xlane.xlu1 %6135 }
0x2dda   :  { %8481 = vpow2.f32 %v6139_v62  ;;  %v6138_v55 = vsub.f32 %v6130_v17, %v6136_v41  ;;  %8216 = vmatpush3.msra.mxu0 %v6154_v20 }
0x2ddb   :  { %8225 = vmatprep.subr.mxu0 %v8819_v49 }
0x2ddc   :  { %v6141_v12 = vmul.f32 1.442695, %v6138_v55 }
0x2ddd   :  { %v6230_v23 = vpop.permute.xlu1 %6229 }
0x2dde   :  { %8483 = vpow2.f32 %v6141_v12  ;;  %8221 = vmatpush3.msra.mxu1 %v6230_v23 }
0x2ddf   :  { %8230 = vmatprep.subr.mxu1 %v8819_v49 }
0x2de1   :  { %v6308_v21 = vpop.permute.xlu1 %6307 }
0x2de5   :  { %v6386_v22 = vpop.permute.xlu1 %6385 }
0x2de7   :  { %v8482_v58 = vpop.eup %8481 }
0x2de8   :  { %v6143_v10 = vsel %vm390_vm6, %v8482_v58, 0.0 }
0x2de9   :  { %6144 = vadd.xlane.f32.xlu0 %v6143_v10  ;;  %v6384_v40 = vpop.permute.xlu1 %6383 }
0x2deb   :  { %v8484_v54 = vpop.eup %8483 }
0x2dec   :  { %v6146_v28 = vsel %vm390_vm6, %v8484_v54, 0.0 }
0x2ded   :  { %6147 = vadd.xlane.f32.xlu0 %v6146_v28 }
0x2e03   :  { %6305 = vrot.lane.b32.xlu0 %v9867_v24, %s8827_s9 }
0x2e72   :  { %v6145_v39 = vpop.xlane.xlu0 %6144 }
0x2e73   :  { %8485 = vrcp.f32 %v6145_v39 }
0x2e76   :  { %v6148_v13 = vpop.xlane.xlu0 %6147 }
0x2e77   :  { %8487 = vrcp.f32 %v6148_v13 }
0x2e7a   :  { %v6306_v57 = vpop.permute.xlu0 %6305 }
0x2e80   :  { %v8486_v52 = vpop.eup %8485 }
0x2e81   :  { %v6151_v30 = vmul.f32 %v8486_v52, %v8482_v58 }
0x2e83   :  { %8218 = vmatmul.mubr.msk.f32.vlgmr.msra.gmra.mxu0 %vm390_vm6, %v6151_v30 }
0x2e84   :  { %v8488_v14 = vpop.eup %8487  ;;  %8226 = vmatpush3.xpose.msk.msra.mxu0 %vm390_vm6, %v6308_v21  ;;  %8227 = vmatprep.mubr.msk.f32.mxu0 %vm8820_vm5, %v8819_v49 }
0x2e85   :  { %v6152_v34 = vmul.f32 %v8488_v14, %v8484_v54  ;;  %8235 = vmatprep.subr.mxu0 %v8819_v49 }
0x2e87   :  { %8223 = vmatmul.mubr.msk.f32.vlgmr.msra.gmra.mxu1 %vm390_vm6, %v6152_v34  ;;  %8228 = vmatmul.mubr.msk.f32.vlgmr.msra.gmra.mxu0 %vm390_vm6, %v6306_v57 }
0x2e88   :  { %8231 = vmatpush3.xpose.msk.msra.mxu1 %vm390_vm6, %v6386_v22  ;;  %8232 = vmatprep.mubr.msk.f32.mxu1 %vm8820_vm5, %v8819_v49 }
0x2e89   :  { %8240 = vmatprep.subr.mxu1 %v8819_v49  ;;  %8237 = vmatprep.mubr.msk.f32.mxu0 %vm8820_vm5, %v8819_v49 }
0x2e8b   :  { %8233 = vmatmul.mubr.msk.f32.vlgmr.msra.gmra.mxu1 %vm390_vm6, %v6384_v40 }
0x2e8c   :  { %8242 = vmatprep.mubr.msk.f32.mxu1 %vm8820_vm5, %v8819_v49 }
0x2f43   :  { %v9962_v43 = vpop.f32.mrf.mxu0 }
0x2f45   :  { %v8219_v44 = vpop.f32.mrf.mxu0 }
0x2f47   :  { %v9964_v60 = vpop.f32.mrf.mxu1  ;;  %v6379_v45 = vpop.f32.mrf.mxu0 }
0x2f48   :  { %v6461_v46 = vmul.f32 0.35355338, %v6379_v45 }
0x2f49   :  { %v8224_v56 = vpop.f32.mrf.mxu1  ;;  %v8229_v16 = vpop.f32.mrf.mxu0 }
0x2f4a   :  { %v6463_v33 = vsel %vm2242_vm15, -1e+09, %v6461_v46 }
0x2f4b   :  { %v6457_v47 = vpop.f32.mrf.mxu1  ;;  %v6465_v35 = vsel %vm390_vm6, %v6463_v33, -inf }
0x2f4c   :  { %v6462_v48 = vmul.f32 0.35355338, %v6457_v47  ;;  %6466 = vmax.xlane.f32.xlu0 %v6465_v35 }
0x2f4d   :  { %v8234_v50 = vpop.f32.mrf.mxu1 }
0x2f4e   :  { %v6464_v51 = vsel %vm2243_vm1, -1e+09, %v6462_v48  ;;  %v7007_v48 = vld [vmem:[#allocation11 + $0x38] sm:$0xff]  ;;  %v7006_v50 = vld [vmem:[#allocation11 + $0x30] sm:$0xff] }
0x2f4f   :  { %v6468_v2 = vsel %vm390_vm6, %v6464_v51, -inf }
0x2f50   :  { %6469 = vmax.xlane.f32.xlu1 %v6468_v2 }
0x2f61   :  { %6563 = vrot.lane.b32.xlu1 %v9860_v63, %s8826_s11 }
0x2f62   :  { %6487 = vrot.lane.b32.xlu0 %v9862_v32, %s8826_s11 }
0x2f65   :  { %6641 = vrot.lane.b32.xlu1 %v9862_v32, %s8830_s4 }
0x2f69   :  { %6719 = vrot.lane.b32.xlu1 %v9860_v63, %s8830_s4 }
0x2f6d   :  { %6717 = vrot.lane.b32.xlu1 %v9875_v25, %s8830_s4 }
0x2fd5   :  { %v6467_v37 = vpop.xlane.xlu0 %6466 }
0x2fd6   :  { %v6471_v29 = vsub.f32 %v6463_v33, %v6467_v37 }
0x2fd8   :  { %v6473_v18 = vmul.f32 1.442695, %v6471_v29 }
0x2fd9   :  { %v6488_v59 = vpop.permute.xlu0 %6487  ;;  %v6470_v5 = vpop.xlane.xlu1 %6469 }
0x2fda   :  { %8489 = vpow2.f32 %v6473_v18  ;;  %v6472_v31 = vsub.f32 %v6464_v51, %v6470_v5  ;;  %8236 = vmatpush3.msra.mxu0 %v6488_v59  ;;  %v7004_v51 = vld [vmem:[#allocation11 + $0x20] sm:$0xff] }
0x2fdb   :  { %8245 = vmatprep.subr.mxu0 %v8819_v49 }
0x2fdc   :  { %v6475_v7 = vmul.f32 1.442695, %v6472_v31 }
0x2fdd   :  { %v6564_v0 = vpop.permute.xlu1 %6563 }
0x2fde   :  { %8491 = vpow2.f32 %v6475_v7  ;;  %8241 = vmatpush3.msra.mxu1 %v6564_v0 }
0x2fdf   :  { %8250 = vmatprep.subr.mxu1 %v8819_v49 }
0x2fe1   :  { %v6642_v15 = vpop.permute.xlu1 %6641 }
0x2fe5   :  { %v6720_v61 = vpop.permute.xlu1 %6719 }
0x2fe7   :  { %v8490_v38 = vpop.eup %8489 }
0x2fe8   :  { %v6477_v8 = vsel %vm390_vm6, %v8490_v38, 0.0 }
0x2fe9   :  { %6478 = vadd.xlane.f32.xlu0 %v6477_v8  ;;  %v6718_v20 = vpop.permute.xlu1 %6717 }
0x2feb   :  { %v8492_v25 = vpop.eup %8491 }
0x2fec   :  { %v6480_v9 = vsel %vm390_vm6, %v8492_v25, 0.0 }
0x2fed   :  { %6481 = vadd.xlane.f32.xlu0 %v6480_v9 }
0x3003   :  { %6639 = vrot.lane.b32.xlu0 %v9867_v24, %s8830_s4 }
0x3072   :  { %v6479_v11 = vpop.xlane.xlu0 %6478 }
0x3073   :  { %8493 = vrcp.f32 %v6479_v11 }
0x3076   :  { %v6482_v42 = vpop.xlane.xlu0 %6481 }
0x3077   :  { %8495 = vrcp.f32 %v6482_v42 }
0x307a   :  { %v6640_v24 = vpop.permute.xlu0 %6639 }
0x3080   :  { %v8494_v17 = vpop.eup %8493 }
0x3081   :  { %v6485_v36 = vmul.f32 %v8494_v17, %v8490_v38 }
0x3083   :  { %8238 = vmatmul.mubr.msk.f32.vlgmr.msra.gmra.mxu0 %vm390_vm6, %v6485_v36 }
0x3084   :  { %v8496_v19 = vpop.eup %8495  ;;  %8246 = vmatpush3.xpose.msk.msra.mxu0 %vm390_vm6, %v6642_v15  ;;  %8247 = vmatprep.mubr.msk.f32.mxu0 %vm8820_vm5, %v8819_v49 }
0x3085   :  { %v6486_v62 = vmul.f32 %v8496_v19, %v8492_v25  ;;  %8255 = vmatprep.subr.mxu0 %v8819_v49 }
0x3087   :  { %8243 = vmatmul.mubr.msk.f32.vlgmr.msra.gmra.mxu1 %vm390_vm6, %v6486_v62  ;;  %8248 = vmatmul.mubr.msk.f32.vlgmr.msra.gmra.mxu0 %vm390_vm6, %v6640_v24 }
0x3088   :  { %8251 = vmatpush3.xpose.msk.msra.mxu1 %vm390_vm6, %v6720_v61  ;;  %8252 = vmatprep.mubr.msk.f32.mxu1 %vm8820_vm5, %v8819_v49 }
0x3089   :  { %8260 = vmatprep.subr.mxu1 %v8819_v49  ;;  %8257 = vmatprep.mubr.msk.f32.mxu0 %vm8820_vm5, %v8819_v49 }
0x308b   :  { %8253 = vmatmul.mubr.msk.f32.vlgmr.msra.gmra.mxu1 %vm390_vm6, %v6718_v20 }
0x308c   :  { %8262 = vmatprep.mubr.msk.f32.mxu1 %vm8820_vm5, %v8819_v49 }
0x3143   :  { %v6559_v41 = vpop.f32.mrf.mxu0 }
0x3145   :  { %v8239_v55 = vpop.f32.mrf.mxu0 }
0x3147   :  { %v6635_v12 = vpop.f32.mrf.mxu1  ;;  %v6713_v23 = vpop.f32.mrf.mxu0 }
0x3148   :  { %v6795_v58 = vmul.f32 0.35355338, %v6713_v23 }
0x3149   :  { %v8244_v10 = vpop.f32.mrf.mxu1  ;;  %v8249_v54 = vpop.f32.mrf.mxu0 }
0x314a   :  { %v6797_v28 = vsel %vm2242_vm15, -1e+09, %v6795_v58 }
0x314b   :  { %v6791_v39 = vpop.f32.mrf.mxu1  ;;  %v6799_v13 = vsel %vm390_vm6, %v6797_v28, -inf }
0x314c   :  { %v6796_v21 = vmul.f32 0.35355338, %v6791_v39  ;;  %6800 = vmax.xlane.f32.xlu0 %v6799_v13  ;;  %v7157_v39 = vld [vmem:[#allocation14 + $0x38] sm:$0xff]  ;;  %v7156_v13 = vld [vmem:[#allocation14 + $0x30] sm:$0xff] }
0x314d   :  { %v8254_v52 = vpop.f32.mrf.mxu1 }
0x314e   :  { %v6798_v30 = vsel %vm2243_vm1, -1e+09, %v6796_v21  ;;  %v7155_v21 = vld [vmem:[#allocation14 + $0x28] sm:$0xff]  ;;  %v7154_v52 = vld [vmem:[#allocation14 + $0x20] sm:$0xff] }
0x314f   :  { %v6802_v49 = vsel %vm390_vm6, %v6798_v30, -inf }
0x3150   :  { %6803 = vmax.xlane.f32.xlu1 %v6802_v49  ;;  %v7589_v49 = vld [vmem:[%s10123_s18 + $0x70] sm:$0xff] }
0x3161   :  { %6897 = vrot.lane.b32.xlu1 %v9860_v63, %s8829_s28 }
0x3165   :  { %6975 = vrot.lane.b32.xlu1 %v9962_v43, %s8808_s25 }
0x3169   :  { %6977 = vrot.lane.b32.xlu1 %v9964_v60, %s8808_s25 }
0x316d   :  { %6985 = vrot.lane.b32.xlu1 %v6635_v12, %s8805_s0 }
0x31d5   :  { %v6801_v3 = vpop.xlane.xlu0 %6800 }
0x31d6   :  { %v6805_v14 = vsub.f32 %v6797_v28, %v6801_v3  ;;  %v7588_v3 = vld [vmem:[%s10123_s18 + $0x68] sm:$0xff] }
0x31d8   :  { %v6807_v22 = vmul.f32 1.442695, %v6805_v14  ;;  %v7587_v14 = vld [vmem:[%s10123_s18 + $0x60] sm:$0xff] }
0x31d9   :  { %v6804_v34 = vpop.xlane.xlu1 %6803 }
0x31da   :  { %8497 = vpow2.f32 %v6807_v22  ;;  %v6806_v6 = vsub.f32 %v6798_v30, %v6804_v34  ;;  %v7590_v30 = vld [vmem:[%s10123_s18 + $0x78] sm:$0xff] }
0x31dc   :  { %v6809_v57 = vmul.f32 1.442695, %v6806_v6 }
0x31dd   :  { %v6898_v40 = vpop.permute.xlu1 %6897 }
0x31de   :  { %8499 = vpow2.f32 %v6809_v57  ;;  %8261 = vmatpush3.msra.mxu1 %v6898_v40 }
0x31df   :  { %8276 = vmatprep.subr.mxu1 %v7157_v39 }
0x31e1   :  { %v6976_v59 = vpop.permute.xlu1 %6975 }
0x31e2   :  { %v6997_v7 = vsel %vm390_vm6, %v9920_v4, %v6976_v59  ;;  %v7579_v4 = vld [vmem:[#allocation13 + $0x1] ss:$0 sm:$0xff] }
0x31e5   :  { %v6978_v5 = vpop.permute.xlu1 %6977 }
0x31e6   :  { %v6998_v9 = vsel %vm390_vm6, %v9922_v1, %v6978_v5 }
0x31e7   :  { %v8498_v44 = vpop.eup %8497 }
0x31e8   :  { %v6811_v63 = vsel %vm390_vm6, %v8498_v44, 0.0 }
0x31e9   :  { %6812 = vadd.xlane.f32.xlu0 %v6811_v63  ;;  %v6986_v0 = vpop.permute.xlu1 %6985 }
0x31ea   :  { %v7000_v11 = vsel %vm1750_vm10, %v6998_v9, %v6986_v0  ;;  %v7586_v0 = vld [vmem:[%s10123_s18 + $0x58] sm:$0xff] }
0x31eb   :  { %v8500_v43 = vpop.eup %8499 }
0x31ec   :  { %v6814_v45 = vsel %vm390_vm6, %v8500_v43, 0.0 }
0x31ed   :  { %6815 = vadd.xlane.f32.xlu0 %v6814_v45 }
0x3203   :  { %6821 = vrot.lane.b32.xlu0 %v9862_v32, %s8829_s28  ;;  %v7005_v32 = vld [vmem:[#allocation11 + $0x28] sm:$0xff] }
0x3207   :  { %6983 = vrot.lane.b32.xlu0 %v6559_v41, %s8805_s0 }
0x3272   :  { %v6813_v60 = vpop.xlane.xlu0 %6812 }
0x3273   :  { %8501 = vrcp.f32 %v6813_v60 }
0x3276   :  { %v6816_v46 = vpop.xlane.xlu0 %6815 }
0x3277   :  { %8503 = vrcp.f32 %v6816_v46 }
0x327a   :  { %v6822_v56 = vpop.permute.xlu0 %6821 }
0x327b   :  { %8256 = vmatpush3.msra.mxu0 %v6822_v56 }
0x327c   :  { %8265 = vmatprep.subr.mxu0 %v7007_v48 }
0x327e   :  { %v6984_v31 = vpop.permute.xlu0 %6983 }
0x327f   :  { %v6999_v38 = vsel %vm1750_vm10, %v6997_v7, %v6984_v31 }
0x3280   :  { %v8502_v16 = vpop.eup %8501 }
0x3281   :  { %v6819_v33 = vmul.f32 %v8502_v16, %v8498_v44 }
0x3283   :  { %8258 = vmatmul.mubr.msk.f32.vlgmr.msra.gmra.mxu0 %vm390_vm6, %v6819_v33 }
0x3284   :  { %v8504_v47 = vpop.eup %8503  ;;  %8266 = vmatpush3.msra.mxu0 %v7007_v48  ;;  %v8525_v48 = vld [vmem:[%s10144_s15 + $0x4] sm:$0x7] }
0x3285   :  { %v6820_v35 = vmul.f32 %v8504_v47, %v8500_v43  ;;  %8267 = vmatprep.subr.mxu0 %v7006_v50 }
0x3286   :  { %8268 = vmatpush3.msra.mxu0 %v7006_v50  ;;  %v7124_v50 = vrot.slane %v8525_v48, %v9548_v53 }
0x3287   :  { %8263 = vmatmul.mubr.msk.f32.vlgmr.msra.gmra.mxu1 %vm390_vm6, %v6820_v35  ;;  %8269 = vmatprep.subr.mxu0 %v7005_v32 }
0x3288   :  { %8270 = vmatpush3.msra.mxu0 %v7005_v32  ;;  %8277 = vmatpush3.msra.mxu1 %v7157_v39 }
0x3289   :  { %8271 = vmatprep.subr.mxu0 %v7004_v51  ;;  %8278 = vmatprep.subr.mxu1 %v7156_v13 }
0x328a   :  { %8272 = vmatpush3.msra.mxu0 %v7004_v51  ;;  %8279 = vmatpush3.msra.mxu1 %v7156_v13  ;;  %v8526_v51 = vld [vmem:[%s10145_s7 + $0x4] sm:$0x7] }
0x328b   :  { %8280 = vmatprep.subr.mxu1 %v7155_v21  ;;  %8287 = vmatprep.subr.mxu0 %v7590_v30 }
0x328c   :  { %8281 = vmatpush3.msra.mxu1 %v7155_v21 }
0x328d   :  { %8282 = vmatprep.subr.mxu1 %v7154_v52 }
0x328e   :  { %8283 = vmatpush3.msra.mxu1 %v7154_v52 }
0x3343   :  { %v6893_v2 = vpop.f32.mrf.mxu0 }
0x3344   :  { %6991 = vrot.lane.b32.xlu0 %v6893_v2, %s8832_s20  ;;  %v7150_v2 = vrot.slane %v8526_v51, %v9548_v53  ;;  %v7585_v53 = vld [vmem:[%s10123_s18 + $0x50] sm:$0xff] }
0x3345   :  { %v8259_v37 = vpop.f32.mrf.mxu0 }
0x3347   :  { %v6969_v29 = vpop.f32.mrf.mxu1 }
0x3348   :  { %6993 = vrot.lane.b32.xlu1 %v6969_v29, %s8832_s20 }
0x3349   :  { %v8264_v18 = vpop.f32.mrf.mxu1 }
0x33b6   :  { %v6992_v8 = vpop.permute.xlu0 %6991 }
0x33b7   :  { %v7001_v25 = vsel %vm1753_vm9, %v6999_v38, %v6992_v8  ;;  %v7584_v38 = vld [vmem:[%s10123_s18 + $0x48] sm:$0xff]  ;;  %v7583_v8 = vld [vmem:[%s10123_s18 + $0x40] sm:$0xff]  ;;  %s8833_s18 = smov [#allocation22]  }
0x33b8   :  { %8273 = vmatprep.mubr.msk.f32.mxu0 %vm241_vm0, %v7001_v25  ;;  %v7580_v25 = vld [vmem:[#allocation16 + $0x1] ss:$0 sm:$0xff]  ;;  %s7416_s2 = sshll.u32 %s8833_s18, 4  ;;  %s7417_s2 = int_to_ptr.vmem [resolvable:$true] %s7416_s2 }
0x33b9   :  { %s8767_s14 = scalar_lea.vmem %s7417_s2, 256  ;;  %p8772_p5 = scmp.lt.s32.totalorder %s7417_s2, %s7417_s2 }
0x33ba   :  { %v6994_v42 = vpop.permute.xlu1 %6993  ;;  %p8768_p4 = scmp.ne.s32.totalorder %s7417_s2, %s8767_s14  ;;  %p8773_p6 = scmp.lt.s32.totalorder %s8767_s14, %s8767_s14 }
0x33bb   :  { %v7002_v15 = vsel %vm1753_vm9, %v7000_v11, %v6994_v42 }
0x33bc   :  { %8274 = vmatmul.mubr.msk.f32.vlgmr.msra.gmra.mxu0 %vm241_vm0, %v7002_v15  ;;  %p8774_p7 = por %p8773_p6, %p8772_p5 }
0x33bd   :  { %8288 = vmatpush3.msra.mxu0 %v7590_v30 }
0x33be   :  { %8289 = vmatprep.subr.mxu0 %v7589_v49  ;;  %p8775_p8 = pnand %p8774_p7, %p8768_p4 }
0x33bf   :  { %8290 = vmatpush3.msra.mxu0 %v7589_v49 }
0x33c0   :  { %8291 = vmatprep.subr.mxu0 %v7588_v3 }
0x33c1   :  { %8292 = vmatpush3.msra.mxu0 %v7588_v3 }
0x33c2   :  { %8293 = vmatprep.subr.mxu0 %v7587_v14 }
0x33c3   :  { %8294 = vmatpush3.msra.mxu0 %v7587_v14 }
0x33c4   :  { %8295 = vmatprep.subr.mxu0 %v7586_v0 }
0x33c5   :  { %8296 = vmatpush3.msra.mxu0 %v7586_v0 }
0x33c6   :  { %8297 = vmatprep.subr.mxu0 %v7585_v53 }
0x33c7   :  { %8298 = vmatpush3.msra.mxu0 %v7585_v53 }
0x33c8   :  { %8299 = vmatprep.subr.mxu0 %v7584_v38 }
0x33c9   :  { %8300 = vmatpush3.msra.mxu0 %v7584_v38 }
0x33ca   :  { %8301 = vmatprep.subr.mxu0 %v7583_v8 }
0x33cb   :  { %8302 = vmatpush3.msra.mxu0 %v7583_v8 }
0x347c   :  { %v8275_v17 = vpop.f32.mrf.mxu0 }
0x347d   :  { %v7090_v36 = vadd.f32 %v8275_v17, %v9814_v26 }
0x347e   :  { %v7080_v19 = vpop.f32.mrf.mxu0 }
0x347f   :  { %v10037_v61 = vadd.f32 %v7579_v4, %v7090_v36  ;;  %v7089_v62 = vadd.f32 %v7080_v19, %v9817_v27  ;;  %v7593_v19 = vld [vmem:[#allocation17 + $0x1] ss:$0 sm:$0xff] }
0x3481   :  { %v10040_v24 = vadd.f32 %v7579_v4, %v7089_v62  ;;  %v7104_v1 = vsel %vm241_vm0, %v10037_v61, 0.0 }
0x3482   :  { %7105 = vadd.xlane.f32.xlu1 %v7104_v1 }
0x3483   :  { %v7101_v20 = vsel %vm241_vm0, %v10040_v24, 0.0 }
0x3484   :  { %7102 = vadd.xlane.f32.xlu0 %v7101_v20 }
0x350b   :  { %v7106_v41 = vpop.xlane.xlu1 %7105 }
0x350c   :  { %v7108_v55 = vmul.f32 0.03125, %v7106_v41 }
0x350d   :  { %v7103_v12 = vpop.xlane.xlu0 %7102 }
0x350e   :  { %v7107_v23 = vmul.f32 0.03125, %v7103_v12  ;;  %v10047_v26 = vsub.f32 %v10037_v61, %v7108_v55 }
0x3510   :  { %v7109_v58 = vsub.f32 %v10040_v24, %v7107_v23  ;;  %v7112_v54 = vmul.f32 %v10047_v26, %v10047_v26  ;;  %v7126_v18 = vmul.f32 %v7124_v50, %v10047_v26 }
0x3512   :  { %v7111_v27 = vmul.f32 %v7109_v58, %v7109_v58  ;;  %v7116_v28 = vsel %vm241_vm0, %v7112_v54, 0.0  ;;  %v7125_v32 = vmul.f32 %v7124_v50, %v7109_v58 }
0x3514   :  { %v7113_v10 = vsel %vm241_vm0, %v7111_v27, 0.0 }
0x3515   :  { %7114 = vadd.xlane.f32.xlu0 %v7113_v10 }
0x3519   :  { %7117 = vadd.xlane.f32.xlu0 %v7116_v28 }
0x359e   :  { %v7115_v22 = vpop.xlane.xlu0 %7114 }
0x359f   :  { %v7119_v34 = vmul.f32 0.032258064, %v7115_v22 }
0x35a1   :  { %8505 = vrsqrt.f32 %v7119_v34  ;;  %vm7129_vm5 = vcmp.eq.f32.partialorder %v7119_v34, inf  ;;  %v7132_v63 = vand.u32 2147483648, %v7119_v34  ;;  %vm7131_vm6 = vcmp.eq.f32.partialorder %v7119_v34, 0.0 }
0x35a2   :  { %v7118_v6 = vpop.xlane.xlu0 %7117 }
0x35a3   :  { %v7120_v57 = vmul.f32 0.032258064, %v7118_v6 }
0x35a5   :  { %8507 = vrsqrt.f32 %v7120_v57  ;;  %vm7136_vm9 = vcmp.eq.f32.partialorder %v7120_v57, inf  ;;  %v7139_v16 = vand.u32 2147483648, %v7120_v57  ;;  %vm7138_vm10 = vcmp.eq.f32.partialorder %v7120_v57, 0.0 }
0x35ae   :  { %v8506_v40 = vpop.eup %8505 }
0x35af   :  { %v7128_v44 = vmul.f32 %v8506_v40, %v7119_v34 }
0x35b1   :  { %v7130_v43 = vsel %vm7129_vm5, %v7119_v34, %v7128_v44 }
0x35b2   :  { %v8508_v45 = vpop.eup %8507  ;;  %v7133_v60 = vsel %vm7131_vm6, %v7132_v63, %v7130_v43 }
0x35b3   :  { %v7141_v46 = vadd.f32 1e-06, %v7133_v60  ;;  %v7135_v56 = vmul.f32 %v8508_v45, %v7120_v57 }
0x35b5   :  { %8509 = vrcp.f32 %v7141_v46  ;;  %v7137_v33 = vsel %vm7136_vm9, %v7120_v57, %v7135_v56  ;;  %v7594_v46 = vld [vmem:[#allocation19] ss:$0 sm:$0xff] }
0x35b6   :  { %v7140_v47 = vsel %vm7138_vm10, %v7139_v16, %v7137_v33  ;;  %v7595_v33 = vld [vmem:[#allocation20] ss:$0 sm:$0xff] }
0x35b7   :  { %v7142_v35 = vadd.f32 1e-06, %v7140_v47 }
0x35b9   :  { %8511 = vrcp.f32 %v7142_v35 }
0x35c2   :  { %v8510_v37 = vpop.eup %8509 }
0x35c3   :  { %v7144_v29 = vmul.f32 %v8510_v37, %v7125_v32 }
0x35c5   :  { %v7151_v59 = vadd.f32 %v7150_v2, %v7144_v29 }
0x35c6   :  { %v8512_v5 = vpop.eup %8511 }
0x35c7   :  { %v7146_v31 = vmul.f32 %v8512_v5, %v7126_v18  ;;  %8284 = vmatprep.mubr.msk.f32.mxu1 %vm241_vm0, %v7151_v59 }
0x35c9   :  { %v7152_v7 = vadd.f32 %v7150_v2, %v7146_v31 }
0x35cb   :  { %8285 = vmatmul.mubr.msk.f32.vlgmr.msra.gmra.mxu1 %vm241_vm0, %v7152_v7 }
0x368b   :  { %v8286_v9 = vpop.f32.mrf.mxu1 }
0x368c   :  { %v7244_v11 = vadd.f32 %v8286_v9, %v7580_v25 }
0x368d   :  { %v7238_v42 = vpop.f32.mrf.mxu1 }
0x368e   :  { %v7239_v15 = vadd.f32 %v7580_v25, %v7238_v42  ;;  %v7248_v4 = vmax.f32 %v7244_v11, 0.0 }
0x3690   :  { %v7247_v17 = vmax.f32 %v7239_v15, 0.0 }
0x3692   :  { %8303 = vmatprep.mubr.msk.f32.mxu0 %vm3702_vm12, %v7247_v17 }
0x3693   :  { %8304 = vmatmul.mubr.msk.f32.vlgmr.msra.gmra.mxu0 %vm3702_vm12, %v7248_v4 }
0x3753   :  { %v8305_v36 = vpop.f32.mrf.mxu0 }
0x3754   :  { %v7340_v62 = vadd.f32 %v8305_v36, %v10037_v61 }
0x3755   :  { %v7330_v1 = vpop.f32.mrf.mxu0 }
0x3756   :  { %v7350_v20 = vadd.f32 %v7593_v19, %v7340_v62  ;;  %v7339_v41 = vadd.f32 %v7330_v1, %v10040_v24 }
0x3758   :  { %v7349_v55 = vadd.f32 %v7593_v19, %v7339_v41  ;;  %v7356_v12 = vsel %vm241_vm0, %v7350_v20, 0.0 }
0x3759   :  { %7357 = vadd.xlane.f32.xlu1 %v7356_v12 }
0x375a   :  { %v7353_v23 = vsel %vm241_vm0, %v7349_v55, 0.0 }
0x375b   :  { %7354 = vadd.xlane.f32.xlu0 %v7353_v23 }
0x37e2   :  { %v7358_v26 = vpop.xlane.xlu1 %7357 }
0x37e3   :  { %v7360_v58 = vmul.f32 0.03125, %v7358_v26 }
0x37e4   :  { %v7355_v27 = vpop.xlane.xlu0 %7354 }
0x37e5   :  { %v7362_v10 = vsub.f32 %v7350_v20, %v7360_v58  ;;  %v7359_v54 = vmul.f32 0.03125, %v7355_v27 }
0x37e7   :  { %v7361_v28 = vsub.f32 %v7349_v55, %v7359_v54  ;;  %v7364_v39 = vmul.f32 %v7362_v10, %v7362_v10  ;;  %v7380_v56 = vmul.f32 %v7594_v46, %v7362_v10 }
0x37e9   :  { %v7368_v61 = vsel %vm241_vm0, %v7364_v39, 0.0  ;;  %v7363_v13 = vmul.f32 %v7361_v28, %v7361_v28  ;;  %v7379_v35 = vmul.f32 %v7594_v46, %v7361_v28 }
0x37ea   :  { %7369 = vadd.xlane.f32.xlu1 %v7368_v61 }
0x37eb   :  { %v7365_v24 = vsel %vm241_vm0, %v7363_v13, 0.0 }
0x37ec   :  { %7366 = vadd.xlane.f32.xlu0 %v7365_v24 }
0x3873   :  { %v7370_v21 = vpop.xlane.xlu1 %7369 }
0x3874   :  { %v7372_v52 = vmul.f32 0.032258064, %v7370_v21 }
0x3875   :  { %v7367_v30 = vpop.xlane.xlu0 %7366 }
0x3876   :  { %8513 = vrsqrt.f32 %v7372_v52  ;;  %v7371_v49 = vmul.f32 0.032258064, %v7367_v30  ;;  %vm7390_vm15 = vcmp.eq.f32.partialorder %v7372_v52, inf  ;;  %v7393_v22 = vand.u32 2147483648, %v7372_v52 }
0x3877   :  { %vm7392_vm1 = vcmp.eq.f32.partialorder %v7372_v52, 0.0 }
0x3878   :  { %8515 = vrsqrt.f32 %v7371_v49  ;;  %vm7383_vm12 = vcmp.eq.f32.partialorder %v7371_v49, inf  ;;  %v7386_v63 = vand.u32 2147483648, %v7371_v49  ;;  %vm7385_vm13 = vcmp.eq.f32.partialorder %v7371_v49, 0.0 }
0x3883   :  { %v8514_v3 = vpop.eup %8513 }
0x3884   :  { %v7389_v14 = vmul.f32 %v8514_v3, %v7372_v52 }
0x3885   :  { %v8516_v34 = vpop.eup %8515 }
0x3886   :  { %v7391_v6 = vsel %vm7390_vm15, %v7372_v52, %v7389_v14  ;;  %v7382_v40 = vmul.f32 %v8516_v34, %v7371_v49 }
0x3887   :  { %v7394_v57 = vsel %vm7392_vm1, %v7393_v22, %v7391_v6 }
0x3888   :  { %v7396_v44 = vadd.f32 1e-06, %v7394_v57  ;;  %v7384_v43 = vsel %vm7383_vm12, %v7371_v49, %v7382_v40 }
0x3889   :  { %v7387_v45 = vsel %vm7385_vm13, %v7386_v63, %v7384_v43 }
0x388a   :  { %8517 = vrcp.f32 %v7396_v44  ;;  %v7395_v60 = vadd.f32 1e-06, %v7387_v45 }
0x388c   :  { %8519 = vrcp.f32 %v7395_v60 }
0x3897   :  { %v8518_v16 = vpop.eup %8517 }
0x3898   :  { %v7400_v47 = vmul.f32 %v8518_v16, %v7380_v56 }
0x3899   :  { %v8520_v48 = vpop.eup %8519 }
0x389a   :  { %v7408_v50 = vadd.f32 %v7595_v33, %v7400_v47  ;;  %v7398_v32 = vmul.f32 %v8520_v48, %v7379_v35 }
0x389c   :  { %7410 = vst.msk [vmem:[#allocation22 + $0x8] sm:$0xff] %vm241_vm0, %v7408_v50  ;;  %v7407_v51 = vadd.f32 %v7595_v33, %v7398_v32 }
0x389e   :  { %7409 = vst.msk [vmem:[#allocation22] sm:$0xff] %vm241_vm0, %v7407_v51 }
0x389f   :  { %8778 = shalt.err (!%p8775_p8)
}
0x38a0   :  { %7422 = dma.vmem_to_hbm [thread:$0]  %s7417_s2, 256, %s10127_s22, [#allocation4], %s8807_s6, %s8807_s6, %s8808_s25  }
0x38a1   :  { %8801 = dma.done.wait [#allocation4], 256  }
0x38a2   :  { %8802 = vsyncadd [#allocation4], 4294967040 }
0x38a3   :  { %7426 = vsyncpa [#allocation3], 1 }
0x38a4   :  { %7427 = vsyncpa [#allocation6], 1 }
0x38a5   :  { %7428 = vsyncpa [#allocation9], 1 }
0x38a6   :  { %7429 = vsyncpa [#allocation12], 1 }
0x38a7   :  { %7430 = vsyncpa [#allocation15], 1 }
0x38a8   :  { %7431 = vsyncpa [#allocation18], 1 }
0x38a9   :  { %7432 = vsyncpa [#allocation21], 1 }
0x38aa   :  { %7433 = vsyncpa [#allocation4], 1 }

</bundles_post_ra>
